<compile_context>
chip_gen: v6e
topology: v6e:2x2x1
jax: 0.10.0
libtpu: 0.0.40
codegen_flags: <defaults>
</compile_context>

<pallas_src>
import jax
import jax.numpy as jnp
from jax.experimental import pallas as pl
from jax.experimental.pallas import tpu as pltpu


# ----------------------------------------------------------------------------
# Kernels
# ----------------------------------------------------------------------------
def _autorec_resident_kernel(x_ref, we_ref, be_ref, wd_ref, bd_ref, o_ref):
    """Both weight matrices resident in VMEM; 1-D grid over batch tiles."""
    xb = x_ref[...].astype(we_ref.dtype)                       # cast in-VMEM if f32
    h = jnp.dot(xb, we_ref[...], preferred_element_type=jnp.float32)
    h = jnp.maximum(h + be_ref[...], 0.0)                      # bias + ReLU in f32
    y = jnp.dot(h.astype(wd_ref.dtype), wd_ref[...],
                preferred_element_type=jnp.float32)
    o_ref[...] = (y + bd_ref[...]).astype(o_ref.dtype)         # bf16 writeback


def _autorec_ntiled_kernel(x_ref, we_ref, be_ref, wd_ref, bd_ref, o_ref, h_ref):
    """Decoder tiled over items (2nd grid axis); encoder runs once per batch
    tile (j == 0) and its activations persist in the h_ref VMEM scratch."""
    j = pl.program_id(1)

    @pl.when(j == 0)
    def _():
        xb = x_ref[...].astype(we_ref.dtype)
        h = jnp.dot(xb, we_ref[...], preferred_element_type=jnp.float32)
        h = jnp.maximum(h + be_ref[...], 0.0)
        h_ref[...] = h.astype(h_ref.dtype)

    y = jnp.dot(h_ref[...], wd_ref[...], preferred_element_type=jnp.float32)
    o_ref[...] = (y + bd_ref[...]).astype(o_ref.dtype)


# ----------------------------------------------------------------------------
# Helpers
# ----------------------------------------------------------------------------
def _round_up(x, m):
    return ((x + m - 1) // m) * m


def _vmem_capacity_bytes():
    """Per-core VMEM capacity; conservative 64 MiB (valid on v5e/v6e/v7x) if
    the query is unavailable."""
    try:
        info = pltpu.get_tpu_info()
        cap = getattr(info, "vmem_capacity_bytes", None)
        if cap:
            return int(cap)
    except Exception:
        pass
    return 64 * 2**20


_CONST_PIPELINE_MODE = "unprobed"


def _const_pipeline_mode():
    """Return pl.Buffered(1) if this jax build supports single-buffering a
    grid-invariant block (probed once with a tiny kernel), else None."""
    global _CONST_PIPELINE_MODE
    if _CONST_PIPELINE_MODE != "unprobed":
        return _CONST_PIPELINE_MODE
    try:
        mode = pl.Buffered(1)
        const_spec = pl.BlockSpec((8, 128), lambda i: (0, 0), pipeline_mode=mode)

        def _probe_kernel(c_ref, x_ref, o_ref):
            o_ref[...] = x_ref[...] + c_ref[...]

        out = pl.pallas_call(
            _probe_kernel,
            out_shape=jax.ShapeDtypeStruct((16, 128), jnp.float32),
            grid=(2,),
            in_specs=[const_spec, pl.BlockSpec((8, 128), lambda i: (i, 0))],
            out_specs=pl.BlockSpec((8, 128), lambda i: (i, 0)),
        )(jnp.zeros((8, 128), jnp.float32), jnp.zeros((16, 128), jnp.float32))
        jax.block_until_ready(out)
        _CONST_PIPELINE_MODE = mode
    except Exception:
        _CONST_PIPELINE_MODE = None
    return _CONST_PIPELINE_MODE


def _const_block_spec(shape, n_axes, mode):
    """BlockSpec for a grid-invariant block (index_map -> all zeros)."""
    zeros = (0,) * len(shape)
    idx = (lambda i: zeros) if n_axes == 1 else (lambda i, j: zeros)
    if mode is None:
        return pl.BlockSpec(shape, idx)
    return pl.BlockSpec(shape, idx, pipeline_mode=mode)


def _pick_tn(tn, ni_p):
    """Largest multiple of 128 <= tn that divides ni_p (ni_p % 128 == 0)."""
    tn = min(tn, ni_p)
    tn = max(128, (tn // 128) * 128)
    while ni_p % tn != 0:
        tn -= 128
    return tn


# ----------------------------------------------------------------------------
# Parameter preparation (run ONCE, not per forward call)
# ----------------------------------------------------------------------------
def prepare_autorec_params(w_enc, b_enc, w_dec, b_dec,
                           compute_dtype=jnp.bfloat16):
    """Pad lane dims to multiples of 128 and cast weights to compute_dtype.

    w_enc: [num_items, hidden]   (transposed vs. torch nn.Linear.weight)
    w_dec: [hidden, num_items]
    """
    num_items, hidden = w_enc.shape
    assert w_dec.shape == (hidden, num_items)
    ni_p = _round_up(num_items, 128)
    hid_p = _round_up(hidden, 128)
    f32 = jnp.float32
    we_p = jnp.zeros((ni_p, hid_p), compute_dtype).at[:num_items, :hidden].set(
        w_enc.astype(compute_dtype))
    wd_p = jnp.zeros((hid_p, ni_p), compute_dtype).at[:hidden, :num_items].set(
        w_dec.astype(compute_dtype))
    be_p = jnp.zeros((1, hid_p), f32).at[0, :hidden].set(
        b_enc.astype(f32).reshape(-1))
    bd_p = jnp.zeros((1, ni_p), f32).at[0, :num_items].set(
        b_dec.astype(f32).reshape(-1))
    return dict(we=we_p, be=be_p, wd=wd_p, bd=bd_p,
                num_items=num_items, hidden=hidden,
                compute_dtype=jnp.dtype(compute_dtype))


# ----------------------------------------------------------------------------
# Forward
# ----------------------------------------------------------------------------
def autorec_forward(x, params, *, tb=256, tn=2048, out_dtype=None,
                    force_ntiled=None):
    """relu(x @ w_enc + b_enc) @ w_dec + b_dec.

    x: [B, num_items]. Returns [B, num_items] in compute_dtype (bf16) unless
    out_dtype is given.
    """
    num_items = params["num_items"]
    we_p, be_p, wd_p, bd_p = params["we"], params["be"], params["wd"], params["bd"]
    compute_dtype = params["compute_dtype"]
    ni_p, hid_p = we_p.shape

    B = x.shape[0]
    assert x.shape == (B, num_items)

    # ---- batch tile / padding (tb multiple of 16: bf16 sublane tile) -------
    tb = max(16, _round_up(tb, 16))
    B_p = _round_up(max(B, tb), tb)
    if B_p == B and ni_p == num_items:
        x_p = x                                   # no pad; kernel casts in-VMEM
    else:
        x_p = jnp.zeros((B_p, ni_p), compute_dtype).at[:B, :num_items].set(
            x.astype(compute_dtype))

    out_kdtype = compute_dtype                    # bf16 writeback (halves DMA out)
    wb = jnp.dtype(compute_dtype).itemsize
    xb = jnp.dtype(x_p.dtype).itemsize
    ob = jnp.dtype(out_kdtype).itemsize

    cap = _vmem_capacity_bytes()
    const_mode = _const_pipeline_mode()
    const_bufs = 1 if const_mode is not None else 2

    # ---- strategy selection: resident weights vs. N-tiled decoder ---------
    est_resident = (
        const_bufs * ((ni_p * hid_p + hid_p * ni_p) * wb + (hid_p + ni_p) * 4)
        + 2 * tb * ni_p * xb                      # double-buffered x tiles
        + 2 * tb * ni_p * ob                      # double-buffered out tiles
        + tb * hid_p * 4 + tb * ni_p * 4          # f32 h / y temporaries
    )
    use_ntiled = force_ntiled
    if use_ntiled is None:
        use_ntiled = int(1.3 * est_resident) > int(0.85 * cap)

    if use_ntiled:
        tn_eff = _pick_tn(tn, ni_p)
        est = (
            const_bufs * (ni_p * hid_p * wb + hid_p * 4)      # resident W_enc/b_enc
            + 2 * (hid_p * tn_eff * wb + tn_eff * 4)          # streamed W_dec/b_dec
            + 2 * tb * ni_p * xb                              # x tiles
            + 2 * tb * tn_eff * ob                            # out tiles
            + tb * hid_p * wb                                 # h scratch
            + tb * hid_p * 4 + tb * tn_eff * 4                # f32 temporaries
        )
    else:
        tn_eff = ni_p
        est = est_resident

    vmem_limit = int(min(max(1.3 * est, 32 * 2**20), 0.9 * cap))

    # ---- pallas_call ------------------------------------------------------
    if not use_ntiled:
        call = pl.pallas_call(
            _autorec_resident_kernel,
            out_shape=jax.ShapeDtypeStruct((B_p, ni_p), out_kdtype),
            grid_spec=pltpu.PrefetchScalarGridSpec(
                num_scalar_prefetch=0,
                grid=(B_p // tb,),
                in_specs=[
                    pl.BlockSpec((tb, ni_p), lambda i: (i, 0)),   # x (streamed)
                    _const_block_spec((ni_p, hid_p), 1, const_mode),
                    _const_block_spec((1, hid_p), 1, const_mode),
                    _const_block_spec((hid_p, ni_p), 1, const_mode),
                    _const_block_spec((1, ni_p), 1, const_mode),
                ],
                out_specs=pl.BlockSpec((tb, ni_p), lambda i: (i, 0)),
            ),
            compiler_params=pltpu.CompilerParams(
                dimension_semantics=("parallel",),
                vmem_limit_bytes=vmem_limit,
            ),
        )
    else:
        call = pl.pallas_call(
            _autorec_ntiled_kernel,
            out_shape=jax.ShapeDtypeStruct((B_p, ni_p), out_kdtype),
            grid_spec=pltpu.PrefetchScalarGridSpec(
                num_scalar_prefetch=0,
                grid=(B_p // tb, ni_p // tn_eff),
                in_specs=[
                    pl.BlockSpec((tb, ni_p), lambda i, j: (i, 0)),     # x
                    _const_block_spec((ni_p, hid_p), 2, const_mode),   # W_enc
                    _const_block_spec((1, hid_p), 2, const_mode),      # b_enc
                    pl.BlockSpec((hid_p, tn_eff), lambda i, j: (0, j)),  # W_dec tile
                    pl.BlockSpec((1, tn_eff), lambda i, j: (0, j)),      # b_dec tile
                ],
                out_specs=pl.BlockSpec((tb, tn_eff), lambda i, j: (i, j)),
                scratch_shapes=[pltpu.VMEM((tb, hid_p), compute_dtype)],
            ),
            compiler_params=pltpu.CompilerParams(
                dimension_semantics=("parallel", "arbitrary"),
                vmem_limit_bytes=vmem_limit,
            ),
        )

    out_p = call(x_p, we_p, be_p, wd_p, bd_p)
    out = out_p[:B, :num_items]
    if out_dtype is not None and jnp.dtype(out_dtype) != jnp.dtype(out_kdtype):
        out = out.astype(out_dtype)
    return out


# ----------------------------------------------------------------------------
# Demo / self-test
# ----------------------------------------------------------------------------
if __name__ == "__main__":
    # Small but non-trivial shapes consistent with AutoRec(num_items, hidden=512).
    # B and num_items are deliberately NOT multiples of the tiles to exercise
    # the wrapper-side padding.
    B = 200
    num_items = 300
    hidden = 512

    key = jax.random.PRNGKey(0)
    k_x, k_we, k_be, k_wd, k_bd = jax.random.split(key, 5)

    # PyTorch nn.Linear-style init: U(-1/sqrt(fan_in), 1/sqrt(fan_in))
    bound_enc = 1.0 / jnp.sqrt(num_items)
    bound_dec = 1.0 / jnp.sqrt(hidden)
    w_enc = jax.random.uniform(k_we, (num_items, hidden), jnp.float32,
                               -bound_enc, bound_enc)
    b_enc = jax.random.uniform(k_be, (hidden,), jnp.float32,
                               -bound_enc, bound_enc)
    w_dec = jax.random.uniform(k_wd, (hidden, num_items), jnp.float32,
                               -bound_dec, bound_dec)
    b_dec = jax.random.uniform(k_bd, (num_items,), jnp.float32,
                               -bound_dec, bound_dec)

    x = jax.random.normal(k_x, (B, num_items), jnp.float32)

    # Pad/cast weights ONCE (out of the per-call hot path).
    params = prepare_autorec_params(w_enc, b_enc, w_dec, b_dec)

    # Auto-selected strategy (resident weights at these sizes).
    out = autorec_forward(x, params, tb=256)
    out = jax.block_until_ready(out)
    assert out.shape == (B, num_items)
    assert out.dtype == jnp.bfloat16

    # Also exercise the v7x-style N-tiled-decoder path.
    out_tiled = autorec_forward(x, params, tb=256, tn=128, force_ntiled=True)
    out_tiled = jax.block_until_ready(out_tiled)
    assert out_tiled.shape == (B, num_items)

    # Reference mirroring the kernel's numerics (bf16 inputs, f32 accumulation,
    # bf16 hand-off between the matmuls).
    bf16 = jnp.bfloat16
    xq = x.astype(bf16).astype(jnp.float32)
    weq = w_enc.astype(bf16).astype(jnp.float32)
    wdq = w_dec.astype(bf16).astype(jnp.float32)
    h_ref = jnp.maximum(xq @ weq + b_enc, 0.0)
    ref_bf16 = h_ref.astype(bf16).astype(jnp.float32) @ wdq + b_dec

    out_f32 = out.astype(jnp.float32)
    out_tiled_f32 = out_tiled.astype(jnp.float32)
    assert jnp.allclose(out_f32, ref_bf16, atol=3e-2, rtol=3e-2), \
        float(jnp.max(jnp.abs(out_f32 - ref_bf16)))
    assert jnp.allclose(out_tiled_f32, ref_bf16, atol=3e-2, rtol=3e-2), \
        float(jnp.max(jnp.abs(out_tiled_f32 - ref_bf16)))
    assert jnp.allclose(out_f32, out_tiled_f32, atol=3e-2, rtol=3e-2)

    # Loose sanity check vs. the exact f32 AutoRec forward.
    ref_f32 = jnp.maximum(x @ w_enc + b_enc, 0.0) @ w_dec + b_dec
    assert jnp.allclose(out_f32, ref_f32, atol=6e-2, rtol=6e-2), \
        float(jnp.max(jnp.abs(out_f32 - ref_f32)))

    print("KERNEL_OK")
</pallas_src>

<mosaic_0001>
module attributes {stable_mosaic.version = 11 : i64} {
  func.func @_probe_kernel(%arg0: i32, %arg1: memref<8x128xf32, #tpu.memory_space<vmem>>, %arg2: memref<8x128xf32, #tpu.memory_space<vmem>>, %arg3: memref<8x128xf32, #tpu.memory_space<vmem>>) attributes {dimension_semantics = [#tpu.dimension_semantics<arbitrary>], iteration_bounds = array<i64: 2>, scalar_prefetch = 0 : i64, scratch_operands = 0 : i64, tpu.core_type = #tpu.core_type<tc>, window_params = [{pipeline_mode = #tpu.pipeline_mode<synchronous>, transform_indices = @transform_0, window_bounds = array<i64: 8, 128>}, {transform_indices = @transform_1, window_bounds = array<i64: 8, 128>}, {transform_indices = @transform_2, window_bounds = array<i64: 8, 128>}]} {
    %c0 = arith.constant 0 : index
    %c0_0 = arith.constant 0 : index
    %0 = vector.load %arg2[%c0, %c0_0] : memref<8x128xf32, #tpu.memory_space<vmem>>, vector<8x128xf32>
    %c0_1 = arith.constant 0 : index
    %c0_2 = arith.constant 0 : index
    %1 = vector.load %arg1[%c0_1, %c0_2] : memref<8x128xf32, #tpu.memory_space<vmem>>, vector<8x128xf32>
    %2 = arith.addf %0, %1 : vector<8x128xf32>
    %c0_3 = arith.constant 0 : index
    %c0_4 = arith.constant 0 : index
    %3 = vector.load %arg3[%c0_3, %c0_4] : memref<8x128xf32, #tpu.memory_space<vmem>>, vector<8x128xf32>
    tpu.vector_store %arg3[%c0_3, %c0_4], %2 {strides = array<i32>} : memref<8x128xf32, #tpu.memory_space<vmem>>, vector<8x128xf32>,
    return
  }
  func.func @transform_0(%arg0: i32) -> (i32, i32) {
    %c0_i32 = arith.constant 0 : i32
    %c0_i32_0 = arith.constant 0 : i32
    %c0_i32_1 = arith.constant 0 : i32
    return %c0_i32, %c0_i32_0 : i32, i32
  }
  func.func @transform_1(%arg0: i32) -> (i32, i32) {
    %c0_i32 = arith.constant 0 : i32
    %c0_i32_0 = arith.constant 0 : i32
    return %arg0, %c0_i32 : i32, i32
  }
  func.func @transform_2(%arg0: i32) -> (i32, i32) {
    %c0_i32 = arith.constant 0 : i32
    %c0_i32_0 = arith.constant 0 : i32
    return %arg0, %c0_i32 : i32, i32
  }
}

module attributes {stable_mosaic.version = 11 : i64} {
  func.func @_autorec_resident_kernel(%arg0: i32, %arg1: memref<256x384xbf16, #tpu.memory_space<vmem>>, %arg2: memref<384x512xbf16, #tpu.memory_space<vmem>>, %arg3: memref<1x512xf32, #tpu.memory_space<vmem>>, %arg4: memref<512x384xbf16, #tpu.memory_space<vmem>>, %arg5: memref<1x384xf32, #tpu.memory_space<vmem>>, %arg6: memref<256x384xbf16, #tpu.memory_space<vmem>>) attributes {dimension_semantics = [#tpu.dimension_semantics<parallel>], iteration_bounds = array<i64: 1>, scalar_prefetch = 0 : i64, scratch_operands = 0 : i64, tpu.core_type = #tpu.core_type<tc>, window_params = [{transform_indices = @transform_0, window_bounds = array<i64: 256, 384>}, {pipeline_mode = #tpu.pipeline_mode<synchronous>, transform_indices = @transform_1, window_bounds = array<i64: 384, 512>}, {pipeline_mode = #tpu.pipeline_mode<synchronous>, transform_indices = @transform_2, window_bounds = array<i64: 1, 512>}, {pipeline_mode = #tpu.pipeline_mode<synchronous>, transform_indices = @transform_3, window_bounds = array<i64: 512, 384>}, {pipeline_mode = #tpu.pipeline_mode<synchronous>, transform_indices = @transform_4, window_bounds = array<i64: 1, 384>}, {transform_indices = @transform_5, window_bounds = array<i64: 256, 384>}]} {
    %c0 = arith.constant 0 : index
    %c0_0 = arith.constant 0 : index
    %0 = vector.load %arg1[%c0, %c0_0] : memref<256x384xbf16, #tpu.memory_space<vmem>>, vector<256x384xbf16>
    %c0_1 = arith.constant 0 : index
    %c0_2 = arith.constant 0 : index
    %1 = vector.load %arg2[%c0_1, %c0_2] : memref<384x512xbf16, #tpu.memory_space<vmem>>, vector<384x512xbf16>
    %cst = arith.constant dense<0.000000e+00> : vector<256x512xf32>
    %2 = tpu.matmul %0, %1, %cst {dimension_numbers = #tpu.dot_dimension_numbers<[1], [0], [0], [1], [0, 0, 1, 1], [], []>} : vector<256x384xbf16>, vector<384x512xbf16>, vector<256x512xf32> -> vector<256x512xf32>
    %c0_3 = arith.constant 0 : index
    %c0_4 = arith.constant 0 : index
    %3 = vector.load %arg3[%c0_3, %c0_4] : memref<1x512xf32, #tpu.memory_space<vmem>>, vector<1x512xf32>
    %4 = vector.broadcast %3 : vector<1x512xf32> to vector<256x512xf32>
    %5 = arith.addf %2, %4 : vector<256x512xf32>
    %cst_5 = arith.constant 0.000000e+00 : f32
    %6 = vector.broadcast %cst_5 : f32 to vector<256x512xf32>
    %7 = arith.maximumf %5, %6 : vector<256x512xf32>
    %8 = arith.truncf %7 : vector<256x512xf32> to vector<256x512xbf16>
    %c0_6 = arith.constant 0 : index
    %c0_7 = arith.constant 0 : index
    %9 = vector.load %arg4[%c0_6, %c0_7] : memref<512x384xbf16, #tpu.memory_space<vmem>>, vector<512x384xbf16>
    %cst_8 = arith.constant dense<0.000000e+00> : vector<256x384xf32>
    %10 = tpu.matmul %8, %9, %cst_8 {dimension_numbers = #tpu.dot_dimension_numbers<[1], [0], [0], [1], [0, 0, 1, 1], [], []>} : vector<256x512xbf16>, vector<512x384xbf16>, vector<256x384xf32> -> vector<256x384xf32>
    %c0_9 = arith.constant 0 : index
    %c0_10 = arith.constant 0 : index
    %11 = vector.load %arg5[%c0_9, %c0_10] : memref<1x384xf32, #tpu.memory_space<vmem>>, vector<1x384xf32>
    %12 = vector.broadcast %11 : vector<1x384xf32> to vector<256x384xf32>
    %13 = arith.addf %10, %12 : vector<256x384xf32>
    %14 = arith.truncf %13 : vector<256x384xf32> to vector<256x384xbf16>
    %c0_11 = arith.constant 0 : index
    %c0_12 = arith.constant 0 : index
    %15 = vector.load %arg6[%c0_11, %c0_12] : memref<256x384xbf16, #tpu.memory_space<vmem>>, vector<256x384xbf16>
    tpu.vector_store %arg6[%c0_11, %c0_12], %14 {strides = array<i32>} : memref<256x384xbf16, #tpu.memory_space<vmem>>, vector<256x384xbf16>,
    return
  }
  func.func @transform_0(%arg0: i32) -> (i32, i32) {
    %c0_i32 = arith.constant 0 : i32
    %c0_i32_0 = arith.constant 0 : i32
    return %arg0, %c0_i32 : i32, i32
  }
  func.func @transform_1(%arg0: i32) -> (i32, i32) {
    %c0_i32 = arith.constant 0 : i32
    %c0_i32_0 = arith.constant 0 : i32
    %c0_i32_1 = arith.constant 0 : i32
    return %c0_i32, %c0_i32_0 : i32, i32
  }
  func.func @transform_2(%arg0: i32) -> (i32, i32) {
    %c0_i32 = arith.constant 0 : i32
    %c0_i32_0 = arith.constant 0 : i32
    %c0_i32_1 = arith.constant 0 : i32
    return %c0_i32, %c0_i32_0 : i32, i32
  }
  func.func @transform_3(%arg0: i32) -> (i32, i32) {
    %c0_i32 = arith.constant 0 : i32
    %c0_i32_0 = arith.constant 0 : i32
    %c0_i32_1 = arith.constant 0 : i32
    return %c0_i32, %c0_i32_0 : i32, i32
  }
  func.func @transform_4(%arg0: i32) -> (i32, i32) {
    %c0_i32 = arith.constant 0 : i32
    %c0_i32_0 = arith.constant 0 : i32
    %c0_i32_1 = arith.constant 0 : i32
    return %c0_i32, %c0_i32_0 : i32, i32
  }
  func.func @transform_5(%arg0: i32) -> (i32, i32) {
    %c0_i32 = arith.constant 0 : i32
    %c0_i32_0 = arith.constant 0 : i32
    return %arg0, %c0_i32 : i32, i32
  }
}

</mosaic_0001>

<bundles_post_ra>
// kernel: tpu_custom_call.1
= control target key start
LH: loop header
LB: loop body
LE: loop exit
PB: predicated region body
PF: predicated region fallthrough
CT: control target
= control target key end

     0   :  { %7 = vsyncpa [#allocation3], 0  ;;  %s651_s0 = inlined_call_operand.hbm [shape: f32[8,128], index: 0, kind: input, shape index: {}]   ;;  %s652_s1 = inlined_call_operand.hbm [shape: f32[16,128], index: 1, kind: input, shape index: {}]   ;;  %s653_s2 = inlined_call_operand.hbm [shape: f32[16,128], index: 2, kind: output, shape index: {}]  }
   0x1   :  { %8 = vsyncpa [#allocation6], 0 }
   0x2   :  { %10 = vsyncpa [#allocation6 + $0x1], 0 }
   0x3   :  { %11 = vsyncpa [#allocation4], 0 }
   0x4   :  { %13 = vsyncpa [#allocation4 + $0x1], 0  ;;  %s485_s9 = smov 0   ;;  %s487_s10 = smov 0  }
   0x5   :  { %s489_s11 = smov 0   ;;  %s491_s12 = smov 0  }
   0x6 LB: > { %s506_s13 = sadd.s32 4294967295, %s465_s12   ;;  %s272_s14 = sadd.s32 4294967294, %s465_s12   ;;  %s465_s12 = sphi %s491_s12, %s676_s12   ;;  %s461_s11 = sphi %s489_s11, %s675_s11   ;;  %s457_s10 = sphi %s487_s10, %s674_s10   ;;  %s453_s9 = sphi %s485_s9, %s673_s9  }
   0x7   : > { %p60_p0 = scmp.ne.s32.totalorder %s457_s10, %s453_s9  ;;  %p654_p1 = scmp.eq.s32.totalorder %s506_s13, 0 }
   0x8   : > { %p90_p3 = scmp.eq.s32.totalorder %s272_s14, 1  ;;  %p273_p5 = scmp.ge.s32.totalorder %s465_s12, 1 }
   0x9   : > { %p515_p4 = por %p654_p1, %p60_p0  ;;  %p97_p7 = scmp.lt.s32.totalorder %s465_s12, 3 }
   0xa   : > { %p520_p6 = por %p90_p3, %p60_p0  ;;  %s467_s18 = smov [#allocation2]  }
   0xb   : > { %s658_s15 = scalar_select %p515_p4, 1, 0 }
   0xc   : > { %s659_s16 = scalar_select %p520_p6, 1, 0 }
   0xd   : > { %p525_p8 = pnand %p273_p5, %p97_p7  ;;  %s110_s19 = sshll.u32 %s467_s18, 4  ;;  %s111_s19 = int_to_ptr.vmem [resolvable:$true] %s110_s19 }
   0xe   : > { %s533_s20 = sadd.s32 1, %s465_s12   ;;  %s47_s24 = sadd.s32 1, %s461_s11 }
   0xf   : > { %s660_s17 = scalar_select %p525_p8, 1, 0 }
  0x10   : > { %p294_p10 = pneg %p525_p8  ;;  %s44_s22 = ssub.s32 %s465_s12, %s533_s20 }
  0x11   : > { %p543_p12 = scmp.eq.s32.totalorder %s44_s22, 0  ;;  %p54_p13 = scmp.ne.s32.totalorder %s461_s11, %s457_s10 }
  0x12   : > { %p537_p11 = pnand %p294_p10, %p654_p1  ;;  %s354_s25 = scalar_lea.vmem %s111_s19, 128 }
  0x13   : > { %p355_p3 = scmp.ne.s32.totalorder %s111_s19, %s354_s25  ;;  %p362_p9 = scmp.lt.s32.totalorder %s111_s19, %s111_s19 }
  0x14   : > { %p345_p0 = pneg %p537_p11  ;;  %p363_p2 = scmp.lt.s32.totalorder %s354_s25, %s354_s25 }
  0x16   : > { %p357_p5 = pnand %p355_p3, %p345_p0  ;;  %p364_p10 = por %p363_p2, %p362_p9 }
  0x18   : > { %p358_p7 = pneg %p357_p5 }
  0x1a   : > { %p365_p1 = pnand %p364_p10, %p358_p7 }
  0x1c   : > { %368 = shalt.err (!%p365_p1)
}
  0x1d   : > { %297 = dma.hbm_to_vmem [thread:$0]  (!%p537_p11), %s651_s0, 128, %s111_s19, [#allocation3]  }
  0x1e   : > { %s560_s28 = scalar_select %p543_p12, %s461_s11, %s47_s24  }
  0x1f   : > { %p55_p1 = scmp.eq.s32.totalorder %s465_s12, 0  ;;  %p663_p2 = scmp.eq.s32.totalorder %s506_s13, 1 }
  0x20   : > { %p307_p0 = scmp.lt.s32.totalorder %s465_s12, 2  ;;  %s121_s30 = sand.u32 1, %s461_s11  }
  0x21   : > { %p568_p9 = por %p663_p2, %p54_p13  ;;  %p56_p3 = por %p55_p1, %p54_p13 }
  0x22   : > { %s276_s3 = sshll.u32 %s121_s30, 3  ;;  %s277_s4 = sshll.u32 %s465_s12, 7 }
  0x23   : > { %s664_s29 = scalar_select %p568_p9, 1, 0 }
  0x24   : > { %s581_s7 = scalar_lea.hbm %s652_s1, %s277_s4  ;;  %s125_s8 = scalar_lea.vmem [#allocation5], %s276_s3 }
  0x25   : > { %s132_s14 = sshll.u32 %s125_s8, 4  ;;  %p583_p11 = pnand %p307_p0, %p56_p3  ;;  %s133_s14 = int_to_ptr.vmem [resolvable:$true] %s132_s14 }
  0x26   : > { %s122_s19 = scalar_lea.sflag [#allocation6], %s121_s30  ;;  %s369_s21 = scalar_lea.hbm %s581_s7, 128 }
  0x27   : > { %p370_p12 = scmp.ne.s32.totalorder %s581_s7, %s369_s21  ;;  %p371_p13 = pneg %p583_p11 }
  0x28   : > { %s374_s24 = scalar_lea.hbm %s652_s1, 256  ;;  %p375_p10 = scmp.lt.s32.totalorder %s581_s7, %s652_s1 }
  0x29   : > { %p372_p5 = pnand %p371_p13, %p370_p12  ;;  %p376_p1 = scmp.lt.s32.totalorder %s374_s24, %s369_s21 }
  0x2b   : > { %p373_p7 = pneg %p372_p5  ;;  %p377_p2 = por %p376_p1, %p375_p10 }
  0x2d   : > { %p378_p0 = pnand %p377_p2, %p373_p7 }
  0x2f   : > { %381 = shalt.err (!%p378_p0)
}
  0x30   : > { %s382_s27 = scalar_lea.vmem %s133_s14, 128  ;;  %s468_s30 = smov [#allocation5]  }
  0x31   : > { %p383_p3 = scmp.ne.s32.totalorder %s133_s14, %s382_s27  ;;  %s387_s3 = sshll.u32 %s468_s30, 4  ;;  %s388_s3 = int_to_ptr.vmem [resolvable:$false] %s387_s3 }
  0x32   : > { %s389_s4 = scalar_lea.vmem %s388_s3, 256  ;;  %p390_p12 = scmp.lt.s32.totalorder %s133_s14, %s388_s3 }
  0x33   : > { %p385_p6 = pnand %p383_p3, %p371_p13  ;;  %p391_p5 = scmp.lt.s32.totalorder %s389_s4, %s382_s27 }
  0x35   : > { %p386_p9 = pneg %p385_p6  ;;  %p392_p4 = por %p391_p5, %p390_p12 }
  0x37   : > { %p393_p8 = pnand %p392_p4, %p386_p9 }
  0x39   : > { %396 = shalt.err (!%p393_p8)
}
  0x3a   : > { %301 = dma.hbm_to_vmem [thread:$0]  (!%p583_p11), %s581_s7, 128, %s133_s14, %s122_s19  }
  0x3b   : > { %p666_p7 = scmp.ne.s32.totalorder %s660_s17, 0 }
  0x3c   : > { %p667_p10 = scmp.eq.s32.totalorder (!%p666_p7), %s506_s13, 0 }
  0x3d   : > { %141 = sbr.rel (%p666_p7) target bundleno = 96 (0x60), region = 28 }
  0x42   : > { %440 = dma.done.wait (%p667_p10), [#allocation3], 128   ;;  %p668_p6 = pmov %p667_p10 }
  0x43   : > { %s608_s5 = sand.u32 1, %s457_s10   ;;  %p669_p4 = scmp.ne.s32.totalorder %s658_s15, 0 }
  0x44   : > { %442 = vsyncadd (%p668_p6), [#allocation3], 4294967168  ;;  %s280_s6 = sshll.u32 %s608_s5, 3  ;;  %s148_s8 = scalar_lea.sflag [#allocation6], %s608_s5 }
  0x45   : > { %s151_s18 = scalar_lea.vmem [#allocation5], %s280_s6 }
  0x46   : > { %444 = dma.done.wait (%p669_p4), %s148_s8, 128  }
  0x47   : > { %446 = vsyncadd (%p669_p4), %s148_s8, 4294967168  ;;  %s171_s17 = scalar_lea.vmem [#allocation7], %s280_s6  ;;  %s283_s14 = sshll.u32 %s506_s13, 7  ;;  %v172_v0 = vld [vmem:[%s151_s18] sm:$0xff]  ;;  %v173_v1 = vld [vmem:[#allocation2] sm:$0xff] }
  0x48   : > { %s190_s7 = sshll.u32 %s171_s17, 4  ;;  %v174_v2 = vadd.f32 %v173_v1, %v172_v0  ;;  %s188_s22 = scalar_lea.hbm %s653_s2, %s283_s14  ;;  %s191_s7 = int_to_ptr.vmem [resolvable:$true] %s190_s7 }
  0x49   : > { %s177_s23 = scalar_lea.sflag [#allocation4], %s608_s5  ;;  %s397_s24 = scalar_lea.vmem %s191_s7, 128 }
  0x4a   : > { %175 = vst [vmem:[%s171_s17] sm:$0xff] %v174_v2  ;;  %p398_p8 = scmp.ne.s32.totalorder %s191_s7, %s397_s24  ;;  %p670_p9 = scmp.ne.s32.totalorder %s664_s29, 0 }
  0x4b   : > { %s469_s15 = smov [#allocation7]  }
  0x4c   : > { %p399_p11 = pnand %p398_p8, %p670_p9  ;;  %s401_s25 = sshll.u32 %s469_s15, 4  ;;  %s402_s25 = int_to_ptr.vmem [resolvable:$false] %s401_s25 }
  0x4d   : > { %s403_s26 = scalar_lea.vmem %s402_s25, 256  ;;  %p404_p1 = scmp.lt.s32.totalorder %s191_s7, %s402_s25 }
  0x4e   : > { %p400_p13 = pneg %p399_p11  ;;  %p405_p2 = scmp.lt.s32.totalorder %s403_s26, %s397_s24 }
  0x50   : > { %p406_p0 = por %p405_p2, %p404_p1 }
  0x52   : > { %p407_p3 = pnand %p406_p0, %p400_p13 }
  0x54   : > { %410 = shalt.err (!%p407_p3)
}
  0x55   : > { %s411_s13 = scalar_lea.hbm %s188_s22, 128  ;;  %s415_s3 = scalar_lea.hbm %s653_s2, 256 }
  0x56   : > { %p412_p12 = scmp.ne.s32.totalorder %s188_s22, %s411_s13  ;;  %p416_p10 = scmp.lt.s32.totalorder %s188_s22, %s653_s2 }
  0x57   : > { %p417_p6 = scmp.lt.s32.totalorder %s415_s3, %s411_s13 }
  0x58   : > { %p413_p5 = pnand %p412_p12, %p670_p9 }
  0x59   : > { %p418_p4 = por %p417_p6, %p416_p10 }
  0x5a   : > { %p414_p7 = pneg %p413_p5 }
  0x5c   : > { %p419_p8 = pnand %p418_p4, %p414_p7 }
  0x5e   : > { %422 = shalt.err (!%p419_p8)
}
  0x5f   : > { %292 = dma.vmem_to_hbm [thread:$0]  (%p670_p9), %s191_s7, 128, %s188_s22, %s177_s23  }
  0x60 PF: > { %s202_s6 = sand.u32 1, %s453_s9   ;;  %p671_p11 = scmp.ne.s32.totalorder %s659_s16, 0 }
  0x61   : > { %p672_p13 = scmp.ge.s32.totalorder %s465_s12, 2  ;;  %s203_s8 = scalar_lea.sflag [#allocation4], %s202_s6 }
  0x63   : > { %p303_p1 = pnand %p672_p13, %p671_p11 }
  0x65   : > { %p304_p2 = pneg %p303_p1 }
  0x67   : > { %448 = dma.done.wait (%p304_p2), %s203_s8, 128  }
  0x68   : > { %450 = vsyncadd (%p304_p2), %s203_s8, 4294967168  ;;  %p16_p0 = scmp.ge.s32.totalorder %s533_s20, 4   ;;  %s673_s9 = smov %s457_s10 }
  0x69   : > { %s674_s10 = smov %s461_s11  ;;  %s675_s11 = smov %s560_s28 }
  0x6a   : > { %s676_s12 = smov %s533_s20  ;;  %18 = sbr.rel (!%p16_p0) target bundleno = 6 (0x6), region = 78 }
  0x6f   :  { %208 = vsyncpa [#allocation3], 1 }
  0x70   :  { %210 = vsyncpa [#allocation3 + $0x1], 1 }
  0x71   :  { %211 = vsyncpa [#allocation6], 1 }
  0x72   :  { %213 = vsyncpa [#allocation6 + $0x1], 1 }
  0x73   :  { %214 = vsyncpa [#allocation4], 1 }
  0x74   :  { %216 = vsyncpa [#allocation4 + $0x1], 1 }

// kernel: tpu_custom_call.1
= control target key start
LH: loop header
LB: loop body
LE: loop exit
PB: predicated region body
PF: predicated region fallthrough
CT: control target
= control target key end

     0   :  { %10 = vsyncpa [#allocation3], 0  ;;  %s6327_s0 = inlined_call_operand.hbm [shape: bf16[256,384], index: 0, kind: input, shape index: {}]   ;;  %s6328_s1 = inlined_call_operand.hbm [shape: bf16[384,512], index: 1, kind: input, shape index: {}]   ;;  %s6329_s2 = inlined_call_operand.hbm [shape: f32[1,512], index: 2, kind: input, shape index: {}]   ;;  %s6330_s3 = inlined_call_operand.hbm [shape: bf16[512,384], index: 3, kind: input, shape index: {}]   ;;  %s6331_s4 = inlined_call_operand.vmem [shape: f32[1,384], index: 4, kind: input, shape index: {}]   ;;  %s6332_s5 = inlined_call_operand.hbm [shape: bf16[256,384], index: 5, kind: output, shape index: {}]  }
   0x1   :  { %11 = vsyncpa [#allocation6], 0 }
   0x2   :  { %12 = vsyncpa [#allocation9], 0 }
   0x3   :  { %13 = vsyncpa [#allocation4], 0  ;;  %s4789_s18 = smov [#allocation5]  }
   0x4   :  { %s31_s19 = sshll.u32 %s4789_s18, 4  ;;  %s32_s19 = int_to_ptr.vmem [resolvable:$true] %s31_s19 }
   0x5   :  { %s4689_s20 = scalar_lea.vmem %s32_s19, 12288  ;;  %p4694_p1 = scmp.lt.s32.totalorder %s32_s19, %s32_s19 }
   0x6   :  { %p4690_p0 = scmp.ne.s32.totalorder %s32_s19, %s4689_s20  ;;  %p4695_p2 = scmp.lt.s32.totalorder %s4689_s20, %s4689_s20 }
   0x8   :  { %p4696_p3 = por %p4695_p2, %p4694_p1 }
   0xa   :  { %p4697_p4 = pnand %p4696_p3, %p4690_p0 }
   0xc   :  { %4700 = shalt.err (!%p4697_p4)
}
   0xd   :  { %s4790_s21 = smov 256   ;;  %s4791_s22 = smov 16  }
   0xe   :  { %37 = dma.hbm_to_vmem [thread:$0]  %s6328_s1, 12288, %s32_s19, [#allocation6], %s4790_s21, %s4790_s21, %s4791_s22  }
   0xf   :  { %s4792_s25 = smov [#allocation2]  }
  0x10   :  { %s19_s26 = sshll.u32 %s4792_s25, 4  ;;  %s20_s26 = int_to_ptr.vmem [resolvable:$true] %s19_s26 }
  0x11   :  { %s4709_s27 = scalar_lea.vmem %s20_s26, 6144  ;;  %p4714_p6 = scmp.lt.s32.totalorder %s20_s26, %s20_s26 }
  0x12   :  { %p4710_p5 = scmp.ne.s32.totalorder %s20_s26, %s4709_s27  ;;  %p4715_p7 = scmp.lt.s32.totalorder %s4709_s27, %s4709_s27 }
  0x14   :  { %p4716_p8 = por %p4715_p7, %p4714_p6 }
  0x16   :  { %p4717_p9 = pnand %p4716_p8, %p4710_p5 }
  0x18   :  { %4720 = shalt.err (!%p4717_p9)
}
  0x19   :  { %s4793_s28 = smov 192   ;;  %s4794_s29 = smov 12  }
  0x1a   :  { %25 = dma.hbm_to_vmem [thread:$0]  %s6327_s0, 6144, %s20_s26, [#allocation3], %s4793_s28, %s4793_s28, %s4794_s29  }
  0x1b   :  { %s4795_s1 = smov [#allocation7]   ;;  %s4796_s8 = smov [#allocation8]  }
  0x1c   :  { %s44_s7 = sshll.u32 %s4795_s1, 4  ;;  %s53_s9 = sshll.u32 %s4796_s8, 4  ;;  %s45_s7 = int_to_ptr.vmem [resolvable:$true] %s44_s7  ;;  %s54_s9 = int_to_ptr.vmem [resolvable:$true] %s53_s9 }
  0x1d   :  { %s4729_s10 = scalar_lea.vmem %s45_s7, 64  ;;  %p4734_p11 = scmp.lt.s32.totalorder %s45_s7, %s45_s7 }
  0x1e   :  { %p4730_p10 = scmp.ne.s32.totalorder %s45_s7, %s4729_s10  ;;  %p4735_p12 = scmp.lt.s32.totalorder %s4729_s10, %s4729_s10 }
  0x20   :  { %p4736_p13 = por %p4735_p12, %p4734_p11 }
  0x22   :  { %p4737_p0 = pnand %p4736_p13, %p4730_p10 }
  0x24   :  { %4740 = shalt.err (!%p4737_p0)
}
  0x25   :  { %47 = dma.hbm_to_vmem [thread:$0]  %s6329_s2, 64, %s45_s7, [#allocation6]  }
  0x26   :  { %s4749_s13 = scalar_lea.vmem %s54_s9, 12288  ;;  %p4754_p2 = scmp.lt.s32.totalorder %s54_s9, %s54_s9 }
  0x27   :  { %p4750_p1 = scmp.ne.s32.totalorder %s54_s9, %s4749_s13  ;;  %p4755_p3 = scmp.lt.s32.totalorder %s4749_s13, %s4749_s13 }
  0x29   :  { %p4756_p4 = por %p4755_p3, %p4754_p2 }
  0x2b   :  { %p4757_p5 = pnand %p4756_p4, %p4750_p1 }
  0x2d   :  { %4760 = shalt.err (!%p4757_p5)
}
  0x2e   :  { %59 = dma.hbm_to_vmem [thread:$0]  %s6330_s3, 12288, %s54_s9, [#allocation9], %s4793_s28, %s4793_s28, %s4794_s29  }
  0x2f   :  { %4781 = dma.done.wait [#allocation3], 6144  }
  0x30   :  { %4782 = vsyncadd [#allocation3], 4294961152 }
  0x31   :  { %4783 = dma.done.wait [#allocation6], 12352  }
  0x32   :  { %4784 = vsyncadd [#allocation6], 4294954944 }
  0x33   :  { %4785 = dma.done.wait [#allocation9], 12288  }
  0x34   :  { %4786 = vsyncadd [#allocation9], 4294955008  ;;  %v4797_v0 = vmov 0   ;;  %v4343_v1 = vld [vmem:[#allocation5 + $0xe4] ss:$16 sps:$4 sm:$0xff]  }
  0x35   :  { %1218 = vmatprep.mubr.bf16.mxu1 %v4797_v0  ;;  %v4345_v2 = vld [vmem:[#allocation5 + $0x2e4] ss:$16 sps:$4 sm:$0xff]   ;;  %993 = vmatprep.subr.bf16.mxu0 %v4343_v1  ;;  %v4347_v3 = vld [vmem:[#allocation5 + $0xe0] ss:$16 sps:$4 sm:$0xff]   ;;  %v4419_v39 = vld [vmem:[#allocation5 + $0xe8] ss:$16 sps:$4 sm:$0xff]  }
  0x36   :  { %v4348_v4 = vld [vmem:[#allocation5 + $0x2e0] ss:$16 sps:$4 sm:$0xff]   ;;  %1186 = vmatprep.subr.bf16.mxu1 %v4345_v2  ;;  %v4349_v5 = vld [vmem:[#allocation5 + $0xc4] ss:$16 sps:$4 sm:$0xff]   ;;  %994 = vmatpush1.bf16.msra.mxu0 %v4347_v3  ;;  %v4421_v40 = vld [vmem:[#allocation5 + $0xec] ss:$16 sps:$4 sm:$0xff]  }
  0x37   :  { %1187 = vmatpush1.bf16.msra.mxu1 %v4348_v4  ;;  %v4351_v6 = vld [vmem:[#allocation5 + $0x2c4] ss:$16 sps:$4 sm:$0xff]   ;;  %v4353_v7 = vld [vmem:[#allocation5 + $0xc0] ss:$16 sps:$4 sm:$0xff]   ;;  %995 = vmatprep.subr.bf16.mxu0 %v4349_v5  ;;  %v4429_v45 = vld [vmem:[#allocation5 + $0xc8] ss:$16 sps:$4 sm:$0xff]  }
  0x38   :  { %v4354_v8 = vld [vmem:[#allocation5 + $0x2c0] ss:$16 sps:$4 sm:$0xff]   ;;  %1188 = vmatprep.subr.bf16.mxu1 %v4351_v6  ;;  %v4355_v9 = vld [vmem:[#allocation5 + $0xa4] ss:$16 sps:$4 sm:$0xff]   ;;  %v4431_v46 = vld [vmem:[#allocation5 + $0xcc] ss:$16 sps:$4 sm:$0xff]  }
  0x39   :  { %v4357_v10 = vld [vmem:[#allocation5 + $0x2a4] ss:$16 sps:$4 sm:$0xff]   ;;  %v4359_v11 = vld [vmem:[#allocation5 + $0xa0] ss:$16 sps:$4 sm:$0xff]   ;;  %v4438_v49 = vld [vmem:[#allocation5 + $0xac] ss:$16 sps:$4 sm:$0xff]  }
  0x3a   :  { %v4360_v12 = vld [vmem:[#allocation5 + $0x2a0] ss:$16 sps:$4 sm:$0xff]   ;;  %996 = vmatpush1.bf16.msra.mxu0 %v4353_v7  ;;  %v4361_v13 = vld [vmem:[#allocation5 + $0x84] ss:$16 sps:$4 sm:$0xff]   ;;  %v4436_v50 = vld [vmem:[#allocation5 + $0xa8] ss:$16 sps:$4 sm:$0xff]  }
  0x3b   :  { %1189 = vmatpush1.bf16.msra.mxu1 %v4354_v8  ;;  %997 = vmatprep.subr.bf16.mxu0 %v4355_v9  ;;  %v4363_v14 = vld [vmem:[#allocation5 + $0x284] ss:$16 sps:$4 sm:$0xff]   ;;  %v4365_v15 = vld [vmem:[#allocation5 + $0x80] ss:$16 sps:$4 sm:$0xff]   ;;  %v4446_v54 = vld [vmem:[#allocation5 + $0x88] ss:$16 sps:$4 sm:$0xff]  }
  0x3c   :  { %1190 = vmatprep.subr.bf16.mxu1 %v4357_v10  ;;  %v4366_v16 = vld [vmem:[#allocation5 + $0x280] ss:$16 sps:$4 sm:$0xff]   ;;  %v4367_v17 = vld [vmem:[#allocation5 + $0x64] ss:$16 sps:$4 sm:$0xff]   ;;  %v4448_v55 = vld [vmem:[#allocation5 + $0x8c] ss:$16 sps:$4 sm:$0xff]  }
  0x3d   :  { %v4369_v18 = vld [vmem:[#allocation5 + $0x264] ss:$16 sps:$4 sm:$0xff]   ;;  %v4371_v19 = vld [vmem:[#allocation5 + $0x60] ss:$16 sps:$4 sm:$0xff]   ;;  %v4453_v58 = vld [vmem:[#allocation5 + $0x68] ss:$16 sps:$4 sm:$0xff]  }
  0x3e   :  { %998 = vmatpush1.bf16.msra.mxu0 %v4359_v11  ;;  %v4372_v20 = vld [vmem:[#allocation5 + $0x260] ss:$16 sps:$4 sm:$0xff]   ;;  %v4373_v21 = vld [vmem:[#allocation5 + $0x44] ss:$16 sps:$4 sm:$0xff]   ;;  %v4455_v59 = vld [vmem:[#allocation5 + $0x6c] ss:$16 sps:$4 sm:$0xff]  }
  0x3f   :  { %1191 = vmatpush1.bf16.msra.mxu1 %v4360_v12  ;;  %999 = vmatprep.subr.bf16.mxu0 %v4361_v13  ;;  %v4375_v22 = vld [vmem:[#allocation5 + $0x244] ss:$16 sps:$4 sm:$0xff]   ;;  %v4377_v23 = vld [vmem:[#allocation5 + $0x40] ss:$16 sps:$4 sm:$0xff]   ;;  %v4463_v63 = vld [vmem:[#allocation5 + $0x48] ss:$16 sps:$4 sm:$0xff]  }
  0x40   :  { %1192 = vmatprep.subr.bf16.mxu1 %v4363_v14  ;;  %v4378_v24 = vld [vmem:[#allocation5 + $0x240] ss:$16 sps:$4 sm:$0xff]   ;;  %v4379_v25 = vld [vmem:[#allocation5 + $0x24] ss:$16 sps:$4 sm:$0xff]   ;;  %v4465_v1 = vld [vmem:[#allocation5 + $0x4c] ss:$16 sps:$4 sm:$0xff]  }
  0x41   :  { %v4381_v26 = vld [vmem:[#allocation5 + $0x224] ss:$16 sps:$4 sm:$0xff]   ;;  %v4383_v27 = vld [vmem:[#allocation5 + $0x20] ss:$16 sps:$4 sm:$0xff]   ;;  %v4428_v5 = vld [vmem:[#allocation5 + $0x2ec] ss:$16 sps:$4 sm:$0xff]  }
  0x42   :  { %1000 = vmatpush1.bf16.msra.mxu0 %v4365_v15  ;;  %v4384_v28 = vld [vmem:[#allocation5 + $0x220] ss:$16 sps:$4 sm:$0xff]   ;;  %v4385_v29 = vld [vmem:[#allocation5 + $0x4] ss:$16 sps:$4 sm:$0xff]   ;;  %v4470_v6 = vld [vmem:[#allocation5 + $0x28] ss:$16 sps:$4 sm:$0xff]  }
  0x43   :  { %1193 = vmatpush1.bf16.msra.mxu1 %v4366_v16  ;;  %1001 = vmatprep.subr.bf16.mxu0 %v4367_v17  ;;  %v4387_v30 = vld [vmem:[#allocation5 + $0x204] ss:$16 sps:$4 sm:$0xff]   ;;  %v4389_v31 = vld [vmem:[#allocation5] ss:$16 sps:$4 sm:$0xff]   ;;  %v4472_v7 = vld [vmem:[#allocation5 + $0x2c] ss:$16 sps:$4 sm:$0xff]  }
  0x44   :  { %1194 = vmatprep.subr.bf16.mxu1 %v4369_v18  ;;  %v4390_v32 = vld [vmem:[#allocation5 + $0x200] ss:$16 sps:$4 sm:$0xff]   ;;  %v4391_v33 = vld [vmem:[#allocation5 + $0x1e4] ss:$16 sps:$4 sm:$0xff]   ;;  %v4426_v8 = vld [vmem:[#allocation5 + $0x2e8] ss:$16 sps:$4 sm:$0xff]  }
  0x45   :  { %v4393_v34 = vld [vmem:[#allocation2 + $0x8] ss:$12 sps:$4 sm:$0xff]   ;;  %v4394_v35 = vld [vmem:[#allocation5 + $0x1e0] ss:$16 sps:$4 sm:$0xff]   ;;  %v4853_v51 = vld [vmem:[#allocation2 + $0x38] ss:$12 sps:$4 sm:$0xff]  }
  0x46   :  { %1002 = vmatpush1.bf16.msra.mxu0 %v4371_v19  ;;  %v4395_v36 = vld [vmem:[#allocation5 + $0x1c4] ss:$16 sps:$4 sm:$0xff]   ;;  %v4397_v37 = vld [vmem:[#allocation5 + $0x1c0] ss:$16 sps:$4 sm:$0xff]   ;;  %v4865_v9 = vld [vmem:[#allocation2 + $0x1c] ss:$12 sps:$4 sm:$0xff]  }
  0x47   :  { %1195 = vmatpush1.bf16.msra.mxu1 %v4372_v20  ;;  %1003 = vmatprep.subr.bf16.mxu0 %v4373_v21  ;;  %v4398_v38 = vld [vmem:[#allocation5 + $0x1a4] ss:$16 sps:$4 sm:$0xff]   ;;  %v4400_v42 = vld [vmem:[#allocation2 + $0x20] ss:$12 sps:$4 sm:$0xff]   ;;  %v4857_v60 = vld [vmem:[#allocation2 + $0x50] ss:$12 sps:$4 sm:$0xff]  }
  0x48   :  { %1196 = vmatprep.subr.bf16.mxu1 %v4375_v22  ;;  %v4849_v41 = vld [vmem:[#allocation2 + $0x4] ss:$12 sps:$4 sm:$0xff]   ;;  %v4861_v3 = vld [vmem:[#allocation2] ss:$12 sps:$4 sm:$0xff]   ;;  %v4863_v4 = vld [vmem:[#allocation2 + $0x68] ss:$12 sps:$4 sm:$0xff]  }
  0x49   :  { %v4401_v43 = vld [vmem:[#allocation5 + $0x1a0] ss:$16 sps:$4 sm:$0xff]   ;;  %v4402_v44 = vld [vmem:[#allocation5 + $0x184] ss:$16 sps:$4 sm:$0xff]   ;;  %1025 = vmatprep.mubr.bf16.mxu0 %v4849_v41  ;;  %v4445_v10 = vld [vmem:[#allocation5 + $0x2cc] ss:$16 sps:$4 sm:$0xff]  }
  0x4a   :  { %1004 = vmatpush1.bf16.msra.mxu0 %v4377_v23  ;;  %v4404_v47 = vld [vmem:[#allocation5 + $0x180] ss:$16 sps:$4 sm:$0xff]   ;;  %v4405_v48 = vld [vmem:[#allocation5 + $0x164] ss:$16 sps:$4 sm:$0xff]   ;;  %v4443_v11 = vld [vmem:[#allocation5 + $0x2c8] ss:$16 sps:$4 sm:$0xff]  }
  0x4b   :  { %1197 = vmatpush1.bf16.msra.mxu1 %v4378_v24  ;;  %1005 = vmatprep.subr.bf16.mxu0 %v4379_v25  ;;  %v4408_v52 = vld [vmem:[#allocation5 + $0x160] ss:$16 sps:$4 sm:$0xff]   ;;  %v4409_v53 = vld [vmem:[#allocation5 + $0x144] ss:$16 sps:$4 sm:$0xff]   ;;  %v4480_v12 = vld [vmem:[#allocation5 + $0x8] ss:$16 sps:$4 sm:$0xff]  }
  0x4c   :  { %1198 = vmatprep.subr.bf16.mxu1 %v4381_v26  ;;  %v4411_v56 = vld [vmem:[#allocation5 + $0x140] ss:$16 sps:$4 sm:$0xff]   ;;  %v4412_v57 = vld [vmem:[#allocation5 + $0x124] ss:$16 sps:$4 sm:$0xff]   ;;  %v4482_v13 = vld [vmem:[#allocation5 + $0xc] ss:$16 sps:$4 sm:$0xff]  }
  0x4d   :  { %v4415_v61 = vld [vmem:[#allocation5 + $0x120] ss:$16 sps:$4 sm:$0xff]   ;;  %v4416_v62 = vld [vmem:[#allocation5 + $0x104] ss:$16 sps:$4 sm:$0xff]   ;;  %v4462_v15 = vld [vmem:[#allocation5 + $0x2ac] ss:$16 sps:$4 sm:$0xff]  }
  0x4e   :  { %1006 = vmatpush1.bf16.msra.mxu0 %v4383_v27  ;;  %v4418_v2 = vld [vmem:[#allocation5 + $0x100] ss:$16 sps:$4 sm:$0xff]   ;;  %v4871_v14 = vld [vmem:[#allocation2 + $0x18] ss:$12 sps:$4 sm:$0xff]   ;;  %v4489_v18 = vld [vmem:[#allocation5 + $0x1ec] ss:$16 sps:$4 sm:$0xff]  }
  0x4f   :  { %1199 = vmatpush1.bf16.msra.mxu1 %v4384_v28  ;;  %1007 = vmatprep.subr.bf16.mxu0 %v4385_v29  ;;  %v4873_v16 = vld [vmem:[#allocation2 + $0x80] ss:$12 sps:$4 sm:$0xff]   ;;  %v4460_v19 = vld [vmem:[#allocation5 + $0x2a8] ss:$16 sps:$4 sm:$0xff]   ;;  %v4881_v24 = vld [vmem:[#allocation2 + $0x30] ss:$12 sps:$4 sm:$0xff]  }
  0x50   :  { %1200 = vmatprep.subr.bf16.mxu1 %v4387_v30  ;;  %v4875_v17 = vld [vmem:[#allocation2 + $0x34] ss:$12 sps:$4 sm:$0xff]   ;;  %v4487_v20 = vld [vmem:[#allocation5 + $0x1e8] ss:$16 sps:$4 sm:$0xff]   ;;  %v4479_v21 = vld [vmem:[#allocation5 + $0x28c] ss:$16 sps:$4 sm:$0xff]  }
  0x51   :  { %v4477_v22 = vld [vmem:[#allocation5 + $0x288] ss:$16 sps:$4 sm:$0xff]   ;;  %v4499_v23 = vld [vmem:[#allocation5 + $0x1cc] ss:$16 sps:$4 sm:$0xff]  }
  0x52   :  { %1008 = vmatpush1.bf16.msra.mxu0 %v4389_v31  ;;  %v4497_v25 = vld [vmem:[#allocation5 + $0x1c8] ss:$16 sps:$4 sm:$0xff]   ;;  %v4496_v26 = vld [vmem:[#allocation5 + $0x26c] ss:$16 sps:$4 sm:$0xff]  }
  0x53   :  { %1201 = vmatpush1.bf16.msra.mxu1 %v4390_v32  ;;  %1009 = vmatprep.subr.bf16.mxu0 %v4391_v33  ;;  %v4883_v27 = vld [vmem:[#allocation2 + $0x98] ss:$12 sps:$4 sm:$0xff]   ;;  %v4506_v29 = vld [vmem:[#allocation5 + $0x1ac] ss:$16 sps:$4 sm:$0xff]   ;;  %v4891_v33 = vld [vmem:[#allocation2 + $0x48] ss:$12 sps:$4 sm:$0xff]  }
  0x54   :  { %1379 = vmatprep.subr.bf16.mxu1 %v4421_v40  ;;  %v4885_v28 = vld [vmem:[#allocation2 + $0x4c] ss:$12 sps:$4 sm:$0xff]  }
  0x55   :  { %v4494_v30 = vld [vmem:[#allocation5 + $0x268] ss:$16 sps:$4 sm:$0xff]   ;;  %v4509_v32 = vld [vmem:[#allocation5 + $0x18c] ss:$16 sps:$4 sm:$0xff]  }
  0x56   :  { %1219 = vmatmul.mubr.bf16.vlgmr.msra.gmra.mxu1 %v4393_v34  ;;  %1010 = vmatpush2.bf16.msra.mxu0 %v4394_v35  ;;  %v4504_v31 = vld [vmem:[#allocation5 + $0x1a8] ss:$16 sps:$4 sm:$0xff]   ;;  %v4516_v35 = vld [vmem:[#allocation5 + $0x16c] ss:$16 sps:$4 sm:$0xff]  }
  0x57   :  { %1228 = vmatprep.mubr.bf16.mxu1 %v4797_v0  ;;  %1011 = vmatprep.subr.bf16.mxu0 %v4395_v36  ;;  %v4507_v34 = vld [vmem:[#allocation5 + $0x188] ss:$16 sps:$4 sm:$0xff]  }
  0x58   :  { %1380 = vmatpush1.bf16.msra.mxu1 %v4419_v39  ;;  %v4517_v36 = vld [vmem:[#allocation5 + $0x248] ss:$16 sps:$4 sm:$0xff]   ;;  %v4895_v39 = vld [vmem:[#allocation2 + $0x64] ss:$12 sps:$4 sm:$0xff]  }
  0x59   :  { %1381 = vmatprep.subr.bf16.mxu1 %v4431_v46  ;;  %v4514_v40 = vld [vmem:[#allocation5 + $0x168] ss:$16 sps:$4 sm:$0xff]   ;;  %v4529_v46 = vld [vmem:[#allocation5 + $0x12c] ss:$16 sps:$4 sm:$0xff]  }
  0x5a   :  { %1012 = vmatpush2.bf16.msra.mxu0 %v4397_v37  ;;  %v4519_v37 = vld [vmem:[#allocation5 + $0x24c] ss:$16 sps:$4 sm:$0xff]  }
  0x5b   :  { %1013 = vmatprep.subr.bf16.mxu0 %v4398_v38  ;;  %v4893_v38 = vld [vmem:[#allocation2 + $0xb0] ss:$12 sps:$4 sm:$0xff]  }
  0x5c   :  { %1382 = vmatpush1.bf16.msra.mxu1 %v4429_v45  ;;  %v4903_v45 = vld [vmem:[#allocation2 + $0xc8] ss:$12 sps:$4 sm:$0xff]  }
  0x5d   :  { %1383 = vmatprep.subr.bf16.mxu1 %v4438_v49  ;;  %v4905_v49 = vld [vmem:[#allocation2 + $0x7c] ss:$12 sps:$4 sm:$0xff]  }
  0x5e   :  { %1229 = vmatmul.mubr.bf16.gmra.mxu1 %v4400_v42  ;;  %1014 = vmatpush2.bf16.msra.mxu0 %v4401_v43  ;;  %v4522_v42 = vld [vmem:[#allocation5 + $0x14c] ss:$16 sps:$4 sm:$0xff]  }
  0x5f   :  { %1238 = vmatprep.mubr.bf16.mxu1 %v4797_v0  ;;  %1015 = vmatprep.subr.bf16.mxu0 %v4402_v44  ;;  %v4901_v43 = vld [vmem:[#allocation2 + $0x60] ss:$12 sps:$4 sm:$0xff]   ;;  %v4520_v44 = vld [vmem:[#allocation5 + $0x148] ss:$16 sps:$4 sm:$0xff]  }
  0x60   :  { %1384 = vmatpush1.bf16.msra.mxu1 %v4436_v50  ;;  %v4527_v50 = vld [vmem:[#allocation5 + $0x128] ss:$16 sps:$4 sm:$0xff]  }
  0x61   :  { %1385 = vmatprep.subr.bf16.mxu1 %v4448_v55  ;;  %v4530_v55 = vld [vmem:[#allocation5 + $0x108] ss:$16 sps:$4 sm:$0xff]  }
  0x62   :  { %1016 = vmatpush2.bf16.msra.mxu0 %v4404_v47  ;;  %v4536_v47 = vld [vmem:[#allocation5 + $0x228] ss:$16 sps:$4 sm:$0xff]  }
  0x63   :  { %1017 = vmatprep.subr.bf16.mxu0 %v4405_v48  ;;  %v4538_v48 = vld [vmem:[#allocation5 + $0x22c] ss:$16 sps:$4 sm:$0xff]  }
  0x64   :  { %1386 = vmatpush1.bf16.msra.mxu1 %v4446_v54  ;;  %v4547_v54 = vld [vmem:[#allocation5 + $0x20c] ss:$16 sps:$4 sm:$0xff]  }
  0x65   :  { %1387 = vmatprep.subr.bf16.mxu1 %v4455_v59  ;;  %v4915_v59 = vld [vmem:[#allocation2 + $0x94] ss:$12 sps:$4 sm:$0xff]  }
  0x66   :  { %1239 = vmatmul.mubr.bf16.gmra.mxu1 %v4853_v51  ;;  %1018 = vmatpush2.bf16.msra.mxu0 %v4408_v52  ;;  %v4532_v52 = vld [vmem:[#allocation5 + $0x10c] ss:$16 sps:$4 sm:$0xff]  }
  0x67   :  { %1248 = vmatprep.mubr.bf16.mxu1 %v4797_v0  ;;  %1019 = vmatprep.subr.bf16.mxu0 %v4409_v53  ;;  %v4545_v53 = vld [vmem:[#allocation5 + $0x208] ss:$16 sps:$4 sm:$0xff]  }
  0x68   :  { %1388 = vmatpush1.bf16.msra.mxu1 %v4453_v58  ;;  %v4913_v58 = vld [vmem:[#allocation2 + $0xe0] ss:$12 sps:$4 sm:$0xff]  }
  0x69   :  { %1389 = vmatprep.subr.bf16.mxu1 %v4465_v1  ;;  %v4931_v1 = vld [vmem:[#allocation2 + $0xa8] ss:$12 sps:$4 sm:$0xff]  }
  0x6a   :  { %1020 = vmatpush2.bf16.msra.mxu0 %v4411_v56  ;;  %v4911_v56 = vld [vmem:[#allocation2 + $0x78] ss:$12 sps:$4 sm:$0xff]  }
  0x6b   :  { %1021 = vmatprep.subr.bf16.mxu0 %v4412_v57  ;;  %v4553_v57 = vld [vmem:[#allocation8 + $0xac] ss:$12 sps:$4 sm:$0xff]  }
  0x6c   :  { %1390 = vmatpush1.bf16.msra.mxu1 %v4463_v63  ;;  %v4925_v63 = vld [vmem:[#allocation2 + $0xac] ss:$12 sps:$4 sm:$0xff]  }
  0x6d   :  { %1391 = vmatprep.subr.bf16.mxu1 %v4472_v7  ;;  %v4943_v7 = vld [vmem:[#allocation2 + $0x128] ss:$12 sps:$4 sm:$0xff]  }
  0x6e   :  { %1249 = vmatmul.mubr.bf16.gmra.mxu1 %v4857_v60  ;;  %1022 = vmatpush2.bf16.msra.mxu0 %v4415_v61  ;;  %v4921_v61 = vld [vmem:[#allocation2 + $0x90] ss:$12 sps:$4 sm:$0xff]  }
  0x6f   :  { %1258 = vmatprep.mubr.bf16.mxu1 %v4797_v0  ;;  %1023 = vmatprep.subr.bf16.mxu0 %v4416_v62  ;;  %v4923_v62 = vld [vmem:[#allocation2 + $0xf8] ss:$12 sps:$4 sm:$0xff]  }
  0x70   :  { %1392 = vmatpush1.bf16.msra.mxu1 %v4470_v6  ;;  %v4941_v6 = vld [vmem:[#allocation2 + $0xc0] ss:$12 sps:$4 sm:$0xff]  }
  0x71   :  { %1393 = vmatprep.subr.bf16.mxu1 %v4482_v13  ;;  %v4961_v13 = vld [vmem:[#allocation2 + $0xf0] ss:$12 sps:$4 sm:$0xff]  }
  0x72   :  { %1024 = vmatpush2.bf16.msra.mxu0 %v4418_v2  ;;  %v4933_v2 = vld [vmem:[#allocation2 + $0x110] ss:$12 sps:$4 sm:$0xff]  }
  0x73   :  { %1572 = vmatprep.subr.bf16.mxu0 %v4428_v5  ;;  %v4935_v5 = vld [vmem:[#allocation2 + $0xc4] ss:$12 sps:$4 sm:$0xff]  }
  0x74   :  { %1394 = vmatpush1.bf16.msra.mxu1 %v4480_v12  ;;  %v4955_v12 = vld [vmem:[#allocation2 + $0xf4] ss:$12 sps:$4 sm:$0xff]  }
  0x75   :  { %1026 = vmatmul.mubr.bf16.vlgmr.msra.gmra.mxu0 %v4861_v3  ;;  %1395 = vmatprep.subr.bf16.mxu1 %v4489_v18  ;;  %v4965_v18 = vld [vmem:[#allocation2 + $0x10c] ss:$12 sps:$4 sm:$0xff]  }
  0x76   :  { %1259 = vmatmul.mubr.bf16.gmra.mxu1 %v4863_v4  ;;  %1573 = vmatpush1.bf16.msra.mxu0 %v4426_v8  ;;  %v4945_v8 = vld [vmem:[#allocation2 + $0xdc] ss:$12 sps:$4 sm:$0xff]  }
  0x77   :  { %1035 = vmatprep.mubr.bf16.mxu0 %v4865_v9  ;;  %1268 = vmatprep.mubr.bf16.mxu1 %v4797_v0 }
  0x78   :  { %1574 = vmatprep.subr.bf16.mxu0 %v4445_v10  ;;  %1396 = vmatpush2.bf16.msra.mxu1 %v4487_v20  ;;  %v4951_v10 = vld [vmem:[#allocation2 + $0xd8] ss:$12 sps:$4 sm:$0xff]   ;;  %v4973_v20 = vld [vmem:[#allocation2 + $0x170] ss:$12 sps:$4 sm:$0xff]  }
  0x79   :  { %1397 = vmatprep.subr.bf16.mxu1 %v4499_v23  ;;  %v4981_v23 = vld [vmem:[#allocation2 + $0x120] ss:$12 sps:$4 sm:$0xff]  }
  0x7a   :  { %1575 = vmatpush1.bf16.msra.mxu0 %v4443_v11  ;;  %v4953_v11 = vld [vmem:[#allocation2 + $0x140] ss:$12 sps:$4 sm:$0xff]  }
  0x7b   :  { %1576 = vmatprep.subr.bf16.mxu0 %v4462_v15  ;;  %v4963_v15 = vld [vmem:[#allocation2 + $0x158] ss:$12 sps:$4 sm:$0xff]  }
  0x7c   :  { %1398 = vmatpush2.bf16.msra.mxu1 %v4497_v25  ;;  %v4983_v25 = vld [vmem:[#allocation2 + $0x13c] ss:$12 sps:$4 sm:$0xff]  }
  0x7d   :  { %1036 = vmatmul.mubr.bf16.gmra.mxu0 %v4871_v14  ;;  %1399 = vmatprep.subr.bf16.mxu1 %v4506_v29  ;;  %v4556_v29 = vld [vmem:[#allocation8 + $0x94] ss:$12 sps:$4 sm:$0xff]  }
  0x7e   :  { %1269 = vmatmul.mubr.bf16.gmra.mxu1 %v4873_v16  ;;  %1045 = vmatprep.mubr.bf16.mxu0 %v4875_v17 }
  0x7f   :  { %1278 = vmatprep.mubr.bf16.mxu1 %v4797_v0  ;;  %1577 = vmatpush1.bf16.msra.mxu0 %v4460_v19  ;;  %v4971_v19 = vld [vmem:[#allocation2 + $0x108] ss:$12 sps:$4 sm:$0xff]  }
  0x80   :  { %1578 = vmatprep.subr.bf16.mxu0 %v4479_v21  ;;  %1400 = vmatpush2.bf16.msra.mxu1 %v4504_v31  ;;  %v4975_v21 = vld [vmem:[#allocation2 + $0x124] ss:$12 sps:$4 sm:$0xff]   ;;  %v4559_v31 = vld [vmem:[#allocation8 + $0x7c] ss:$12 sps:$4 sm:$0xff]  }
  0x81   :  { %1401 = vmatprep.subr.bf16.mxu1 %v4509_v32  ;;  %v4989_v32 = vld [vmem:[#allocation2 + $0x138] ss:$12 sps:$4 sm:$0xff]  }
  0x83   :  { %1579 = vmatpush1.bf16.msra.mxu0 %v4477_v22  ;;  %v4589_v22 = vld [vmem:[#allocation8 + $0x22c] ss:$12 sps:$4 sm:$0xff]  }
  0x84   :  { %1580 = vmatprep.subr.bf16.mxu0 %v4496_v26  ;;  %1402 = vmatpush2.bf16.msra.mxu1 %v4507_v34  ;;  %v4551_v26 = vld [vmem:[#allocation8 + $0xa8] ss:$12 sps:$4 sm:$0xff]   ;;  %v4557_v34 = vld [vmem:[#allocation8 + $0x78] ss:$12 sps:$4 sm:$0xff]  }
  0x85   :  { %1046 = vmatmul.mubr.bf16.gmra.mxu0 %v4881_v24  ;;  %1403 = vmatprep.subr.bf16.mxu1 %v4516_v35  ;;  %v4562_v35 = vld [vmem:[#allocation8 + $0x64] ss:$12 sps:$4 sm:$0xff]  }
  0x86   :  { %1279 = vmatmul.mubr.bf16.gmra.mxu1 %v4883_v27  ;;  %1055 = vmatprep.mubr.bf16.mxu0 %v4885_v28 }
  0x87   :  { %1288 = vmatprep.mubr.bf16.mxu1 %v4797_v0  ;;  %1581 = vmatpush1.bf16.msra.mxu0 %v4494_v30  ;;  %v4554_v30 = vld [vmem:[#allocation8 + $0x90] ss:$12 sps:$4 sm:$0xff]  }
  0x88   :  { %1582 = vmatprep.subr.bf16.mxu0 %v4519_v37  ;;  %1404 = vmatpush2.bf16.msra.mxu1 %v4514_v40  ;;  %v4999_v37 = vld [vmem:[#allocation2 + $0x16c] ss:$12 sps:$4 sm:$0xff]  }
  0x89   :  { %1405 = vmatprep.subr.bf16.mxu1 %v4522_v42  ;;  %v4563_v40 = vld [vmem:[#allocation8 + $0x48] ss:$12 sps:$4 sm:$0xff]  }
  0x8a   :  { %v4568_v42 = vld [vmem:[#allocation8 + $0x34] ss:$12 sps:$4 sm:$0xff]  }
  0x8b   :  { %1583 = vmatpush1.bf16.msra.mxu0 %v4517_v36  ;;  %v4997_v36 = vld [vmem:[#allocation2 + $0x150] ss:$12 sps:$4 sm:$0xff]  }
  0x8c   :  { %1406 = vmatpush2.bf16.msra.mxu1 %v4520_v44  ;;  %1584 = vmatprep.subr.bf16.mxu0 %v4538_v48  ;;  %v5005_v44 = vld [vmem:[#allocation2 + $0x168] ss:$12 sps:$4 sm:$0xff]   ;;  %v4575_v48 = vld [vmem:[#allocation8 + $0x168] ss:$12 sps:$4 sm:$0xff]  }
  0x8d   :  { %1056 = vmatmul.mubr.bf16.gmra.mxu0 %v4891_v33  ;;  %1407 = vmatprep.subr.bf16.mxu1 %v4529_v46  ;;  %v4569_v46 = vld [vmem:[#allocation8 + $0x18] ss:$12 sps:$4 sm:$0xff]  }
  0x8e   :  { %1289 = vmatmul.mubr.bf16.gmra.mxu1 %v4893_v38  ;;  %1065 = vmatprep.mubr.bf16.mxu0 %v4895_v39 }
  0x8f   :  { %1298 = vmatprep.mubr.bf16.mxu1 %v4797_v0  ;;  %1585 = vmatpush1.bf16.msra.mxu0 %v4536_v47  ;;  %v4574_v47 = vld [vmem:[#allocation8 + $0x4] ss:$12 sps:$4 sm:$0xff]  }
  0x90   :  { %1408 = vmatpush2.bf16.msra.mxu1 %v4527_v50  ;;  %1586 = vmatprep.subr.bf16.mxu0 %v4547_v54  ;;  %v4587_v50 = vld [vmem:[#allocation8 + $0x228] ss:$12 sps:$4 sm:$0xff]   ;;  %v4679_v54 = vld [vmem:[#allocation2 + $0x8] ss:$12 sps:$4 sm:$0xff]  }
  0x91   :  { %1409 = vmatprep.subr.bf16.mxu1 %v4532_v52  ;;  %v4580_v52 = vld [vmem:[#allocation8 + $0x154] ss:$12 sps:$4 sm:$0xff]  }
  0x93   :  { %1587 = vmatpush1.bf16.msra.mxu0 %v4545_v53  ;;  %v4598_v53 = vld [vmem:[#allocation8 + $0x214] ss:$12 sps:$4 sm:$0xff]  }
  0x94   :  { %1410 = vmatpush2.bf16.msra.mxu1 %v4530_v55  ;;  %2807 = vmatprep.subr.bf16.mxu0 %v4589_v22  ;;  %v4583_v55 = vld [vmem:[#allocation8 + $0x13c] ss:$12 sps:$4 sm:$0xff]   ;;  %v4581_v22 = vld [vmem:[#allocation8 + $0x138] ss:$12 sps:$4 sm:$0xff]  }
  0x95   :  { %1066 = vmatmul.mubr.bf16.gmra.mxu0 %v4901_v43  ;;  %2614 = vmatprep.subr.bf16.mxu1 %v4553_v57  ;;  %v4607_v57 = vld [vmem:[#allocation8 + $0x1fc] ss:$12 sps:$4 sm:$0xff]  }
  0x96   :  { %1299 = vmatmul.mubr.bf16.gmra.mxu1 %v4903_v45  ;;  %1075 = vmatprep.mubr.bf16.mxu0 %v4905_v49 }
  0x97   :  { %1308 = vmatprep.mubr.bf16.mxu1 %v4797_v0 }
  0x9d   :  { %1076 = vmatmul.mubr.bf16.gmra.mxu0 %v4911_v56 }
  0x9e   :  { %1309 = vmatmul.mubr.bf16.gmra.mxu1 %v4913_v58  ;;  %1085 = vmatprep.mubr.bf16.mxu0 %v4915_v59 }
  0x9f   :  { %1318 = vmatprep.mubr.bf16.mxu1 %v4797_v0 }
  0xa5   :  { %1086 = vmatmul.mubr.bf16.gmra.mxu0 %v4921_v61 }
  0xa6   :  { %1319 = vmatmul.mubr.bf16.gmra.mxu1 %v4923_v62  ;;  %1095 = vmatprep.mubr.bf16.mxu0 %v4925_v63 }
  0xa7   :  { %1328 = vmatprep.mubr.bf16.mxu1 %v4797_v0 }
  0xad   :  { %1096 = vmatmul.mubr.bf16.gmra.mxu0 %v4931_v1 }
  0xae   :  { %1329 = vmatmul.mubr.bf16.gmra.mxu1 %v4933_v2  ;;  %1105 = vmatprep.mubr.bf16.mxu0 %v4935_v5 }
  0xaf   :  { %1338 = vmatprep.mubr.bf16.mxu1 %v4797_v0 }
  0xb5   :  { %1106 = vmatmul.mubr.bf16.gmra.mxu0 %v4941_v6 }
  0xb6   :  { %1339 = vmatmul.mubr.bf16.gmra.mxu1 %v4943_v7  ;;  %1115 = vmatprep.mubr.bf16.mxu0 %v4945_v8 }
  0xb7   :  { %1348 = vmatprep.mubr.bf16.mxu1 %v4797_v0 }
  0xbd   :  { %1116 = vmatmul.mubr.bf16.gmra.mxu0 %v4951_v10 }
  0xbe   :  { %1349 = vmatmul.mubr.bf16.gmra.mxu1 %v4953_v11  ;;  %1125 = vmatprep.mubr.bf16.mxu0 %v4955_v12 }
  0xbf   :  { %1358 = vmatprep.mubr.bf16.mxu1 %v4797_v0 }
  0xc5   :  { %1126 = vmatmul.mubr.bf16.gmra.mxu0 %v4961_v13 }
  0xc6   :  { %1359 = vmatmul.mubr.bf16.gmra.mxu1 %v4963_v15  ;;  %1135 = vmatprep.mubr.bf16.mxu0 %v4965_v18 }
  0xc7   :  { %1368 = vmatprep.mubr.bf16.mxu1 %v4797_v0 }
  0xcd   :  { %1136 = vmatmul.mubr.bf16.gmra.mxu0 %v4971_v19 }
  0xce   :  { %1369 = vmatmul.mubr.bf16.gmra.mxu1 %v4973_v20  ;;  %1145 = vmatprep.mubr.bf16.mxu0 %v4975_v21 }
  0xcf   :  { %1411 = vmatprep.mubr.bf16.mxu1 %v4849_v41  ;;  %v4991_v41 = vld [vmem:[#allocation2 + $0x154] ss:$12 sps:$4 sm:$0xff]  }
  0xd5   :  { %1146 = vmatmul.mubr.bf16.gmra.mxu0 %v4981_v23 }
  0xd6   :  { %1412 = vmatmul.mubr.bf16.vlgmr.msra.gmra.mxu1 %v4861_v3  ;;  %1155 = vmatprep.mubr.bf16.mxu0 %v4983_v25  ;;  %v4560_v3 = vld [vmem:[#allocation8 + $0x60] ss:$12 sps:$4 sm:$0xff]  }
  0xd7   :  { %1421 = vmatprep.mubr.bf16.mxu1 %v4865_v9  ;;  %2615 = vmatpush1.bf16.msra.mxu1 %v4551_v26  ;;  %v4565_v9 = vld [vmem:[#allocation8 + $0x4c] ss:$12 sps:$4 sm:$0xff]  }
  0xd8   :  { %2616 = vmatprep.subr.bf16.mxu1 %v4556_v29  ;;  %v4605_v26 = vld [vmem:[#allocation8 + $0x1f8] ss:$12 sps:$4 sm:$0xff]  }
  0xd9   :  { %v4610_v29 = vld [vmem:[#allocation8 + $0x1e4] ss:$12 sps:$4 sm:$0xff]  }
  0xdb   :  { %2617 = vmatpush1.bf16.msra.mxu1 %v4554_v30  ;;  %v4584_v30 = vld [vmem:[#allocation8 + $0x120] ss:$12 sps:$4 sm:$0xff]  }
  0xdc   :  { %2618 = vmatprep.subr.bf16.mxu1 %v4559_v31  ;;  %v4608_v31 = vld [vmem:[#allocation8 + $0x1e0] ss:$12 sps:$4 sm:$0xff]  }
  0xdd   :  { %1156 = vmatmul.mubr.bf16.gmra.mxu0 %v4989_v32 }
  0xde   :  { %1422 = vmatmul.mubr.bf16.gmra.mxu1 %v4871_v14  ;;  %1165 = vmatprep.mubr.bf16.mxu0 %v4991_v41  ;;  %v4566_v14 = vld [vmem:[#allocation8 + $0x30] ss:$12 sps:$4 sm:$0xff]  }
  0xdf   :  { %1431 = vmatprep.mubr.bf16.mxu1 %v4875_v17  ;;  %2619 = vmatpush1.bf16.msra.mxu1 %v4557_v34  ;;  %v4571_v17 = vld [vmem:[#allocation8 + $0x1c] ss:$12 sps:$4 sm:$0xff]   ;;  %v4592_v34 = vld [vmem:[#allocation8 + $0x10c] ss:$12 sps:$4 sm:$0xff]  }
  0xe0   :  { %2620 = vmatprep.subr.bf16.mxu1 %v4562_v35  ;;  %v4613_v35 = vld [vmem:[#allocation8 + $0x1cc] ss:$12 sps:$4 sm:$0xff]  }
  0xe3   :  { %2621 = vmatpush1.bf16.msra.mxu1 %v4560_v3  ;;  %v4590_v3 = vld [vmem:[#allocation8 + $0x108] ss:$12 sps:$4 sm:$0xff]  }
  0xe4   :  { %2622 = vmatprep.subr.bf16.mxu1 %v4565_v9  ;;  %v4611_v9 = vld [vmem:[#allocation8 + $0x1c8] ss:$12 sps:$4 sm:$0xff]  }
  0xe5   :  { %1166 = vmatmul.mubr.bf16.gmra.mxu0 %v4997_v36 }
  0xe6   :  { %1432 = vmatmul.mubr.bf16.gmra.mxu1 %v4881_v24  ;;  %1175 = vmatprep.mubr.bf16.mxu0 %v4999_v37  ;;  %v4572_v24 = vld [vmem:[#allocation8] ss:$12 sps:$4 sm:$0xff]  }
  0xe7   :  { %1441 = vmatprep.mubr.bf16.mxu1 %v4885_v28  ;;  %2623 = vmatpush1.bf16.msra.mxu1 %v4563_v40  ;;  %v4577_v28 = vld [vmem:[#allocation8 + $0x16c] ss:$12 sps:$4 sm:$0xff]   ;;  %v4616_v40 = vld [vmem:[#allocation8 + $0x1b4] ss:$12 sps:$4 sm:$0xff]  }
  0xe8   :  { %2624 = vmatprep.subr.bf16.mxu1 %v4568_v42  ;;  %v4614_v42 = vld [vmem:[#allocation8 + $0x1b0] ss:$12 sps:$4 sm:$0xff]  }
  0xeb   :  { %2625 = vmatpush1.bf16.msra.mxu1 %v4566_v14  ;;  %v4601_v14 = vld [vmem:[#allocation8 + $0xdc] ss:$12 sps:$4 sm:$0xff]  }
  0xec   :  { %2626 = vmatprep.subr.bf16.mxu1 %v4571_v17  ;;  %v4619_v17 = vld [vmem:[#allocation8 + $0x19c] ss:$12 sps:$4 sm:$0xff]  }
  0xed   :  { %1176 = vmatmul.mubr.bf16.gmra.mxu0 %v5005_v44 }
  0xee   :  { %1442 = vmatmul.mubr.bf16.gmra.mxu1 %v4891_v33  ;;  %1604 = vmatprep.mubr.bf16.mxu0 %v4797_v0  ;;  %v4578_v33 = vld [vmem:[#allocation8 + $0x150] ss:$12 sps:$4 sm:$0xff]  }
  0xef   :  { %1451 = vmatprep.mubr.bf16.mxu1 %v4895_v39  ;;  %2627 = vmatpush1.bf16.msra.mxu1 %v4569_v46  ;;  %v4596_v39 = vld [vmem:[#allocation8 + $0x210] ss:$12 sps:$4 sm:$0xff]   ;;  %v4599_v46 = vld [vmem:[#allocation8 + $0xd8] ss:$12 sps:$4 sm:$0xff]  }
  0xf0   :  { %2628 = vmatprep.subr.bf16.mxu1 %v4574_v47  ;;  %v4617_v47 = vld [vmem:[#allocation8 + $0x198] ss:$12 sps:$4 sm:$0xff]  }
  0xf3   :  { %2629 = vmatpush1.bf16.msra.mxu1 %v4572_v24  ;;  %v4620_v24 = vld [vmem:[#allocation8 + $0x180] ss:$12 sps:$4 sm:$0xff]  }
  0xf4   :  { %2630 = vmatprep.subr.bf16.mxu1 %v4577_v28  ;;  %v4625_v28 = vld [vmem:[#allocation8 + $0x2ec] ss:$12 sps:$4 sm:$0xff]  }
  0xf5   :  { %1605 = vmatmul.mubr.bf16.vlgmr.msra.gmra.mxu0 %v4679_v54 }
  0xf6   :  { %1452 = vmatmul.mubr.bf16.gmra.mxu1 %v4901_v43  ;;  %1614 = vmatprep.mubr.bf16.mxu0 %v4797_v0  ;;  %v4586_v43 = vld [vmem:[#allocation8 + $0x124] ss:$12 sps:$4 sm:$0xff]  }
  0xf7   :  { %1461 = vmatprep.mubr.bf16.mxu1 %v4905_v49  ;;  %2631 = vmatpush2.bf16.msra.mxu1 %v4575_v48  ;;  %v4680_v49 = vld [vmem:[#allocation2 + $0x20] ss:$12 sps:$4 sm:$0xff]  }
  0xf8   :  { %2808 = vmatpush1.bf16.msra.mxu0 %v4587_v50  ;;  %2632 = vmatprep.subr.bf16.mxu1 %v4580_v52  ;;  %v4623_v48 = vld [vmem:[#allocation8 + $0x2e8] ss:$12 sps:$4 sm:$0xff]  }
  0xf9   :  { %2809 = vmatprep.subr.bf16.mxu0 %v4598_v53  ;;  %v4628_v50 = vld [vmem:[#allocation8 + $0x2d4] ss:$12 sps:$4 sm:$0xff]  }
  0xfb   :  { %2633 = vmatpush2.bf16.msra.mxu1 %v4578_v33  ;;  %v4629_v33 = vld [vmem:[#allocation8 + $0x2b8] ss:$12 sps:$4 sm:$0xff]  }
  0xfc   :  { %2810 = vmatpush1.bf16.msra.mxu0 %v4596_v39  ;;  %2634 = vmatprep.subr.bf16.mxu1 %v4583_v55  ;;  %v4634_v39 = vld [vmem:[#allocation8 + $0x2a4] ss:$12 sps:$4 sm:$0xff]  }
  0xfd   :  { %2811 = vmatprep.subr.bf16.mxu0 %v4607_v57  ;;  %1615 = vmatmul.mubr.bf16.gmra.mxu0 %v4680_v49 }
  0xfe   :  { %1462 = vmatmul.mubr.bf16.gmra.mxu1 %v4911_v56  ;;  %1624 = vmatprep.mubr.bf16.mxu0 %v4797_v0  ;;  %v4595_v56 = vld [vmem:[#allocation8 + $0xf4] ss:$12 sps:$4 sm:$0xff]  }
  0xff   :  { %1471 = vmatprep.mubr.bf16.mxu1 %v4915_v59  ;;  %2635 = vmatpush2.bf16.msra.mxu1 %v4581_v22  ;;  %v4593_v59 = vld [vmem:[#allocation8 + $0xf0] ss:$12 sps:$4 sm:$0xff]  }
 0x100   :  { %2812 = vmatpush1.bf16.msra.mxu0 %v4605_v26  ;;  %2636 = vmatprep.subr.bf16.mxu1 %v4586_v43  ;;  %v4638_v26 = vld [vmem:[#allocation8 + $0x170] ss:$12 sps:$4 sm:$0xff]  }
 0x101   :  { %2813 = vmatprep.subr.bf16.mxu0 %v4610_v29 }
 0x103   :  { %2637 = vmatpush2.bf16.msra.mxu1 %v4584_v30 }
 0x104   :  { %2814 = vmatpush1.bf16.msra.mxu0 %v4608_v31  ;;  %2638 = vmatprep.subr.bf16.mxu1 %v4592_v34  ;;  %v237_v34 = vlaneseq }
 0x105   :  { %2815 = vmatprep.subr.bf16.mxu0 %v4613_v35  ;;  %1625 = vmatmul.mubr.bf16.gmra.mxu0 %v4853_v51  ;;  %v4622_v51 = vld [vmem:[#allocation8 + $0x184] ss:$12 sps:$4 sm:$0xff]  }
 0x106   :  { %1472 = vmatmul.mubr.bf16.gmra.mxu1 %v4921_v61  ;;  %1634 = vmatprep.mubr.bf16.mxu0 %v4797_v0  ;;  %v4604_v61 = vld [vmem:[#allocation8 + $0xc4] ss:$12 sps:$4 sm:$0xff]  }
 0x107   :  { %1481 = vmatprep.mubr.bf16.mxu1 %v4925_v63  ;;  %2639 = vmatpush2.bf16.msra.mxu1 %v4590_v3  ;;  %v4602_v63 = vld [vmem:[#allocation8 + $0xc0] ss:$12 sps:$4 sm:$0xff]  }
 0x108   :  { %2816 = vmatpush1.bf16.msra.mxu0 %v4611_v9  ;;  %2640 = vmatprep.subr.bf16.mxu1 %v4595_v56  ;;  %v4643_v9 = vld [vmem:[#allocation8 + $0x258] ss:$12 sps:$4 sm:$0xff]   ;;  %v4645_v56 = vld [vmem:[#allocation8 + $0x25c] ss:$12 sps:$4 sm:$0xff]  }
 0x109   :  { %2817 = vmatprep.subr.bf16.mxu0 %v4616_v40 }
 0x10b   :  { %2641 = vmatpush2.bf16.msra.mxu1 %v4593_v59 }
 0x10c   :  { %2818 = vmatpush1.bf16.msra.mxu0 %v4614_v42  ;;  %2642 = vmatprep.subr.bf16.mxu1 %v4601_v14 }
 0x10d   :  { %2819 = vmatprep.subr.bf16.mxu0 %v4619_v17  ;;  %1635 = vmatmul.mubr.bf16.gmra.mxu0 %v4857_v60 }
 0x10e   :  { %1482 = vmatmul.mubr.bf16.gmra.mxu1 %v4931_v1  ;;  %1644 = vmatprep.mubr.bf16.mxu0 %v4797_v0  ;;  %v4626_v1 = vld [vmem:[#allocation8 + $0x2d0] ss:$12 sps:$4 sm:$0xff]  }
 0x10f   :  { %1491 = vmatprep.mubr.bf16.mxu1 %v4935_v5  ;;  %2643 = vmatpush2.bf16.msra.mxu1 %v4599_v46  ;;  %v4631_v5 = vld [vmem:[#allocation8 + $0x2bc] ss:$12 sps:$4 sm:$0xff]  }
 0x110   :  { %2820 = vmatpush1.bf16.msra.mxu0 %v4617_v47  ;;  %2644 = vmatprep.subr.bf16.mxu1 %v4604_v61  ;;  %v4648_v47 = vld [vmem:[#allocation8 + $0x240] ss:$12 sps:$4 sm:$0xff]   ;;  %v4650_v61 = vld [vmem:[#allocation8 + $0x244] ss:$12 sps:$4 sm:$0xff]  }
 0x111   :  { %2821 = vmatprep.subr.bf16.mxu0 %v4622_v51 }
 0x113   :  { %2645 = vmatpush2.bf16.msra.mxu1 %v4602_v63 }
 0x114   :  { %2822 = vmatpush1.bf16.msra.mxu0 %v4620_v24  ;;  %4093 = vmatprep.subr.bf16.mxu1 %v4638_v26 }
 0x115   :  { %2823 = vmatprep.subr.bf16.mxu0 %v4625_v28  ;;  %1645 = vmatmul.mubr.bf16.gmra.mxu0 %v4863_v4 }
 0x116   :  { %v5025_v52 = vpop.f32.mrf.mxu1  ;;  %1492 = vmatmul.mubr.bf16.gmra.mxu1 %v4941_v6  ;;  %1654 = vmatprep.mubr.bf16.mxu0 %v4797_v0 }
 0x117   :  { %1501 = vmatprep.mubr.bf16.mxu1 %v4945_v8  ;;  %v4632_v8 = vld [vmem:[#allocation8 + $0x2a0] ss:$12 sps:$4 sm:$0xff]  }
 0x118   :  { %v5031_v60 = vpop.f32.mrf.mxu1  ;;  %2824 = vmatpush2.bf16.msra.mxu0 %v4623_v48 }
 0x119   :  { %2825 = vmatprep.subr.bf16.mxu0 %v4628_v50 }
 0x11a   :  { %v5033_v53 = vpop.f32.mrf.mxu1 }
 0x11c   :  { %v5035_v54 = vpop.f32.mrf.mxu1  ;;  %2826 = vmatpush2.bf16.msra.mxu0 %v4626_v1 }
 0x11d   :  { %2827 = vmatprep.subr.bf16.mxu0 %v4631_v5  ;;  %1655 = vmatmul.mubr.bf16.gmra.mxu0 %v4873_v16 }
 0x11e   :  { %v5037_v6 = vpop.f32.mrf.mxu1  ;;  %1502 = vmatmul.mubr.bf16.gmra.mxu1 %v4951_v10  ;;  %1664 = vmatprep.mubr.bf16.mxu0 %v4797_v0  ;;  %v4635_v10 = vld [vmem:[#allocation8 + $0x288] ss:$12 sps:$4 sm:$0xff]  }
 0x11f   :  { %1511 = vmatprep.mubr.bf16.mxu1 %v4955_v12  ;;  %v4637_v12 = vld [vmem:[#allocation8 + $0x28c] ss:$12 sps:$4 sm:$0xff]  }
 0x120   :  { %v5043_v4 = vpop.f32.mrf.mxu1  ;;  %2828 = vmatpush2.bf16.msra.mxu0 %v4629_v33 }
 0x121   :  { %2829 = vmatprep.subr.bf16.mxu0 %v4634_v39 }
 0x122   :  { %v5045_v55 = vpop.f32.mrf.mxu1 }
 0x124   :  { %v5047_v57 = vpop.f32.mrf.mxu1  ;;  %2830 = vmatpush2.bf16.msra.mxu0 %v4632_v8 }
 0x125   :  { %1665 = vmatmul.mubr.bf16.gmra.mxu0 %v4883_v27  ;;  %2831 = vmatprep.subr.bf16.mxu0 %v4637_v12 }
 0x126   :  { %v5049_v22 = vpop.f32.mrf.mxu1  ;;  %1512 = vmatmul.mubr.bf16.gmra.mxu1 %v4961_v13  ;;  %1674 = vmatprep.mubr.bf16.mxu0 %v4797_v0  ;;  %v4640_v13 = vld [vmem:[#allocation8 + $0x270] ss:$12 sps:$4 sm:$0xff]  }
 0x127   :  { %1521 = vmatprep.mubr.bf16.mxu1 %v4965_v18  ;;  %v4642_v18 = vld [vmem:[#allocation8 + $0x274] ss:$12 sps:$4 sm:$0xff]  }
 0x128   :  { %v5055_v16 = vpop.f32.mrf.mxu1  ;;  %2832 = vmatpush2.bf16.msra.mxu0 %v4635_v10 }
 0x129   :  { %2833 = vmatprep.subr.bf16.mxu0 %v4642_v18 }
 0x12a   :  { %v5057_v43 = vpop.f32.mrf.mxu1 }
 0x12c   :  { %v5059_v29 = vpop.f32.mrf.mxu1  ;;  %2834 = vmatpush2.bf16.msra.mxu0 %v4640_v13 }
 0x12d   :  { %1675 = vmatmul.mubr.bf16.gmra.mxu0 %v4893_v38  ;;  %2835 = vmatprep.subr.bf16.mxu0 %v4645_v56 }
 0x12e   :  { %v5061_v49 = vpop.f32.mrf.mxu1  ;;  %1522 = vmatmul.mubr.bf16.gmra.mxu1 %v4971_v19  ;;  %1684 = vmatprep.mubr.bf16.mxu0 %v4797_v0 }
 0x12f   :  { %1531 = vmatprep.mubr.bf16.mxu1 %v4975_v21  ;;  %v5081_v21 = vshrl.u32 %v237_v34, 7 }
 0x130   :  { %v5067_v27 = vpop.f32.mrf.mxu1  ;;  %2836 = vmatpush2.bf16.msra.mxu0 %v4643_v9 }
 0x131   :  { %6366 = vst [vmem:[#allocation15_spill] sm:$0xff] %v5081_v21  ;;  %v6333_v42 = vsub.s32 1, %v5081_v21  ;;  %2837 = vmatprep.subr.bf16.mxu0 %v4650_v61 }
 0x132   :  { %v5069_v30 = vpop.f32.mrf.mxu1 }
 0x134   :  { %v5071_v31 = vpop.f32.mrf.mxu1  ;;  %2838 = vmatpush2.bf16.msra.mxu0 %v4648_v47 }
 0x135   :  { %v1027_v35 = vpop.f32.mrf.mxu0  ;;  %1685 = vmatmul.mubr.bf16.gmra.mxu0 %v4903_v45  ;;  %v5088_v45 = vld [vmem:[#allocation7] sm:$0xf] }
 0x136   :  { %v5073_v3 = vpop.f32.mrf.mxu1  ;;  %1532 = vmatmul.mubr.bf16.gmra.mxu1 %v4981_v23  ;;  %1694 = vmatprep.mubr.bf16.mxu0 %v4797_v0  ;;  %v5097_v46 = vrot.slane %v5088_v45, %v6333_v42 }
 0x137   :  { %1541 = vmatprep.mubr.bf16.mxu1 %v4983_v25  ;;  %v1029_v38 = vpop.f32.mrf.mxu0 }
 0x138   :  { %v5079_v19 = vpop.f32.mrf.mxu1  ;;  %v1030_v48 = vadd.f32 %v1029_v38, %v5097_v46 }
 0x139   :  { %v1031_v40 = vpop.f32.mrf.mxu0 }
 0x13a   :  { %v5083_v59 = vpop.f32.mrf.mxu1  ;;  %v1223_v39 = vadd.f32 %v5031_v60, %v1030_v48 }
 0x13b   :  { %v1033_v23 = vpop.f32.mrf.mxu0 }
 0x13c   :  { %v5086_v14 = vpop.f32.mrf.mxu1  ;;  %v1034_v24 = vadd.f32 %v1033_v23, %v5097_v46 }
 0x13d   :  { %v1037_v25 = vpop.f32.mrf.mxu0  ;;  %1695 = vmatmul.mubr.bf16.gmra.mxu0 %v4913_v58 }
 0x13e   :  { %v5090_v17 = vpop.f32.mrf.mxu1  ;;  %1542 = vmatmul.mubr.bf16.gmra.mxu1 %v4989_v32  ;;  %1704 = vmatprep.mubr.bf16.mxu0 %v4797_v0  ;;  %v6334_v32 = vsub.s32 0, %v5081_v21  ;;  %v1227_v1 = vadd.f32 %v5035_v54, %v1034_v24  ;;  %v5125_v54 = vld [vmem:[#allocation8 + $0x2f0] ss:$12 sps:$4 sm:$0xff]  }
 0x13f   :  { %1551 = vmatprep.mubr.bf16.mxu1 %v4991_v41  ;;  %v1039_v51 = vpop.f32.mrf.mxu0  ;;  %4205 = vmatprep.subr.bf16.mxu0 %v5125_v54 }
 0x140   :  { %v5101_v63 = vpop.f32.mrf.mxu1  ;;  %v5114_v5 = vrot.slane %v5088_v45, %v6334_v32  ;;  %v1770_v13 = vmax.f32 %v1227_v1, 0.0  ;;  %v1040_v34 = vadd.f32 %v1039_v51, %v5097_v46 }
 0x141   :  { %v1041_v58 = vpop.f32.mrf.mxu0 }
 0x142   :  { %v5105_v28 = vpop.f32.mrf.mxu1  ;;  %v1032_v10 = vadd.f32 %v1031_v40, %v5114_v5  ;;  %v1233_v51 = vadd.f32 %v5043_v4, %v1040_v34 }
 0x143   :  { %v1043_v50 = vpop.f32.mrf.mxu0 }
 0x144   :  { %v5108_v41 = vpop.f32.mrf.mxu1  ;;  %v1044_v18 = vadd.f32 %v1043_v50, %v5097_v46  ;;  %v1225_v38 = vadd.f32 %v5033_v53, %v1032_v10  ;;  %v1774_v4 = vmax.f32 %v1233_v51, 0.0 }
 0x145   :  { %v5116_v33 = vpop.f32.mrf.mxu0  ;;  %1705 = vmatmul.mubr.bf16.gmra.mxu0 %v4923_v62  ;;  %v1028_v62 = vadd.f32 %v1027_v35, %v5114_v5 }
 0x146   :  { %v5118_v8 = vpop.f32.mrf.mxu1  ;;  %1552 = vmatmul.mubr.bf16.gmra.mxu1 %v4997_v36  ;;  %1714 = vmatprep.mubr.bf16.mxu0 %v4797_v0  ;;  %v1237_v40 = vadd.f32 %v5047_v57, %v1044_v18  ;;  %v1769_v53 = vmax.f32 %v1225_v38, 0.0  ;;  %v1042_v57 = vadd.f32 %v1041_v58, %v5114_v5 }
 0x147   :  { %1561 = vmatprep.mubr.bf16.mxu1 %v4999_v37  ;;  %v1049_v12 = vpop.f32.mrf.mxu0  ;;  %v1766_v37 = vmax.f32 %v1223_v39, 0.0  ;;  %v1221_v47 = vadd.f32 %v5025_v52, %v1028_v62 }
 0x148   :  { %v5128_v26 = vpop.f32.mrf.mxu1  ;;  %v1778_v52 = vmax.f32 %v1237_v40, 0.0  ;;  %v1050_v10 = vadd.f32 %v1049_v12, %v5097_v46  ;;  %v1235_v18 = vadd.f32 %v5045_v55, %v1042_v57 }
 0x149   :  { %v1051_v36 = vpop.f32.mrf.mxu0  ;;  %v5140_v23 = vpack.c.bf16 %v1770_v13, %v1766_v37  ;;  %v1765_v1 = vmax.f32 %v1221_v47, 0.0  ;;  %v4639_v37 = vld [vmem:[#allocation8 + $0xb0] ss:$12 sps:$4 sm:$0xff]  }
 0x14a   :  { %v5133_v60 = vpop.f32.mrf.mxu1  ;;  %v5166_v38 = vpack.c.bf16 %v1778_v52, %v1774_v4  ;;  %v1243_v55 = vadd.f32 %v5055_v16, %v1050_v10  ;;  %v1052_v12 = vadd.f32 %v1051_v36, %v5114_v5  ;;  %v1048_v16 = vadd.f32 %v5116_v33, %v5114_v5  ;;  %v4653_v33 = vld [vmem:[#allocation8 + $0x128] ss:$12 sps:$4 sm:$0xff]  }
 0x14b   :  { %v1053_v9 = vpop.f32.mrf.mxu0  ;;  %v5160_v13 = vpack.c.bf16 %v1769_v53, %v1765_v1 }
 0x14c   :  { %v5137_v56 = vpop.f32.mrf.mxu1  ;;  %v1054_v50 = vadd.f32 %v1053_v9, %v5097_v46  ;;  %v4646_v9 = vld [vmem:[#allocation8 + $0x158] ss:$12 sps:$4 sm:$0xff]   ;;  %v1782_v4 = vmax.f32 %v1243_v55, 0.0  ;;  %v1241_v42 = vadd.f32 %v5049_v22, %v1048_v16  ;;  %v4654_v22 = vld [vmem:[#allocation8 + $0x68] ss:$12 sps:$4 sm:$0xff]  }
 0x14d   :  { %v5143_v61 = vpop.f32.mrf.mxu0  ;;  %1715 = vmatmul.mubr.bf16.gmra.mxu0 %v4933_v2 }
 0x14e   :  { %v5145_v35 = vpop.f32.mrf.mxu1  ;;  %1562 = vmatmul.mubr.bf16.gmra.mxu1 %v5005_v44  ;;  %1724 = vmatprep.mubr.bf16.mxu0 %v4797_v0  ;;  %v1038_v44 = vadd.f32 %v1037_v25, %v5114_v5  ;;  %v1247_v34 = vadd.f32 %v5059_v29, %v1054_v50  ;;  %v1777_v29 = vmax.f32 %v1235_v18, 0.0  ;;  %v1245_v18 = vadd.f32 %v5057_v43, %v1052_v12 }
 0x14f   :  { %2646 = vmatprep.mubr.bf16.mxu1 %v5140_v23  ;;  %v1059_v24 = vpop.f32.mrf.mxu0 }
 0x150   :  { %v5153_v48 = vpop.f32.mrf.mxu1  ;;  %v1231_v25 = vadd.f32 %v5037_v6, %v1038_v44  ;;  %v4647_v6 = vld [vmem:[#allocation8 + $0x98] ss:$12 sps:$4 sm:$0xff]   ;;  %v1786_v57 = vmax.f32 %v1247_v34, 0.0  ;;  %v1060_v36 = vadd.f32 %v1059_v24, %v5097_v46 }
 0x151   :  { %v1061_v39 = vpop.f32.mrf.mxu0 }
 0x152   :  { %v5157_v2 = vpop.f32.mrf.mxu1  ;;  %v1773_v50 = vmax.f32 %v1231_v25, 0.0  ;;  %v5193_v25 = vpack.c.bf16 %v1786_v57, %v1782_v4  ;;  %v1253_v43 = vadd.f32 %v5067_v27, %v1060_v36  ;;  %v1058_v27 = vadd.f32 %v5143_v61, %v5114_v5  ;;  %v4659_v61 = vld [vmem:[#allocation8 + $0xf8] ss:$12 sps:$4 sm:$0xff]  }
 0x153   :  { %v1063_v58 = vpop.f32.mrf.mxu0 }
 0x154   :  { %v5163_v62 = vpop.f32.mrf.mxu1  ;;  %v1064_v52 = vadd.f32 %v1063_v58, %v5097_v46  ;;  %v5187_v10 = vpack.c.bf16 %v1777_v29, %v1773_v50  ;;  %v4652_v58 = vld [vmem:[#allocation8 + $0x80] ss:$12 sps:$4 sm:$0xff]   ;;  %v1062_v29 = vadd.f32 %v1061_v39, %v5114_v5  ;;  %v1790_v4 = vmax.f32 %v1253_v43, 0.0 }
 0x155   :  { %v5169_v40 = vpop.f32.mrf.mxu0  ;;  %1725 = vmatmul.mubr.bf16.gmra.mxu0 %v4943_v7  ;;  %v4651_v7 = vld [vmem:[#allocation8 + $0x140] ss:$12 sps:$4 sm:$0xff]   ;;  %v1251_v32 = vadd.f32 %v5061_v49, %v1058_v27  ;;  %v4660_v49 = vld [vmem:[#allocation8 + $0x38] ss:$12 sps:$4 sm:$0xff]  }
 0x156   :  { %v5171_v47 = vpop.f32.mrf.mxu1  ;;  %2647 = vmatmul.mubr.bf16.vlgmr.msra.gmra.mxu1 %v5160_v13  ;;  %1734 = vmatprep.mubr.bf16.mxu0 %v4797_v0 }
 0x157   :  { %2656 = vmatprep.mubr.bf16.mxu1 %v5166_v38  ;;  %v1069_v51 = vpop.f32.mrf.mxu0  ;;  %4094 = vmatpush3.bf16.msra.mxu1 %v4639_v37 }
 0x158   :  { %v5179_v53 = vpop.f32.mrf.mxu1  ;;  %4095 = vmatprep.subr.bf16.mxu1 %v4646_v9  ;;  %v1257_v9 = vadd.f32 %v5071_v31, %v1064_v52  ;;  %v1785_v31 = vmax.f32 %v1245_v18, 0.0  ;;  %v1070_v39 = vadd.f32 %v1069_v51, %v5097_v46  ;;  %v1255_v18 = vadd.f32 %v5069_v30, %v1062_v29 }
 0x159   :  { %v1071_v1 = vpop.f32.mrf.mxu0 }
 0x15a   :  { %v5184_v44 = vpop.f32.mrf.mxu1  ;;  %v1794_v57 = vmax.f32 %v1257_v9, 0.0  ;;  %v1263_v30 = vadd.f32 %v5079_v19, %v1070_v39  ;;  %v1068_v19 = vadd.f32 %v5169_v40, %v5114_v5  ;;  %v4663_v40 = vld [vmem:[#allocation8 + $0xc8] ss:$12 sps:$4 sm:$0xff]  }
 0x15b   :  { %v1073_v37 = vpop.f32.mrf.mxu0  ;;  %4096 = vmatpush3.bf16.msra.mxu1 %v4647_v6 }
 0x15c   :  { %v5190_v34 = vpop.f32.mrf.mxu1  ;;  %4097 = vmatprep.subr.bf16.mxu1 %v4651_v7  ;;  %v1074_v52 = vadd.f32 %v1073_v37, %v5097_v46  ;;  %v1781_v7 = vmax.f32 %v1241_v42, 0.0  ;;  %v4658_v37 = vld [vmem:[#allocation8 + $0x50] ss:$12 sps:$4 sm:$0xff]  }
 0x15d   :  { %v5196_v55 = vpop.f32.mrf.mxu0  ;;  %1735 = vmatmul.mubr.bf16.gmra.mxu0 %v4953_v11  ;;  %v4657_v11 = vld [vmem:[#allocation8 + $0x110] ss:$12 sps:$4 sm:$0xff]  }
 0x15e   :  { %v5198_v24 = vpop.f32.mrf.mxu1  ;;  %2657 = vmatmul.mubr.bf16.gmra.mxu1 %v5187_v10  ;;  %1744 = vmatprep.mubr.bf16.mxu0 %v4797_v0  ;;  %v5214_v36 = vpack.c.bf16 %v1785_v31, %v1781_v7  ;;  %v1267_v42 = vadd.f32 %v5086_v14, %v1074_v52  ;;  %v1793_v14 = vmax.f32 %v1255_v18, 0.0  ;;  %v1072_v31 = vadd.f32 %v1071_v1, %v5114_v5 }
 0x15f   :  { %2666 = vmatprep.mubr.bf16.mxu1 %v5193_v25  ;;  %v1079_v12 = vpop.f32.mrf.mxu0  ;;  %4098 = vmatpush3.bf16.msra.mxu1 %v4652_v58 }
 0x160   :  { %v5206_v6 = vpop.f32.mrf.mxu1  ;;  %4099 = vmatprep.subr.bf16.mxu1 %v4653_v33  ;;  %v5220_v33 = vpack.c.bf16 %v1794_v57, %v1790_v4  ;;  %v1802_v57 = vmax.f32 %v1267_v42, 0.0  ;;  %v1080_v1 = vadd.f32 %v1079_v12, %v5097_v46  ;;  %v1265_v39 = vadd.f32 %v5083_v59, %v1072_v31 }
 0x161   :  { %v1081_v50 = vpop.f32.mrf.mxu0 }
 0x162   :  { %v5211_v16 = vpop.f32.mrf.mxu1  ;;  %v1273_v59 = vadd.f32 %v5101_v63, %v1080_v1 }
 0x163   :  { %v1083_v58 = vpop.f32.mrf.mxu0  ;;  %4100 = vmatpush3.bf16.msra.mxu1 %v4654_v22 }
 0x164   :  { %v5217_v9 = vpop.f32.mrf.mxu1  ;;  %4101 = vmatprep.subr.bf16.mxu1 %v4657_v11  ;;  %v1084_v52 = vadd.f32 %v1083_v58, %v5097_v46  ;;  %v1789_v11 = vmax.f32 %v1251_v32, 0.0  ;;  %v4662_v58 = vld [vmem:[#allocation8 + $0x20] ss:$12 sps:$4 sm:$0xff]  }
 0x165   :  { %v5223_v43 = vpop.f32.mrf.mxu0  ;;  %1745 = vmatmul.mubr.bf16.gmra.mxu0 %v4963_v15  ;;  %v4661_v15 = vld [vmem:[#allocation8 + $0xe0] ss:$12 sps:$4 sm:$0xff]  }
 0x166   :  { %v5225_v51 = vpop.f32.mrf.mxu1  ;;  %2667 = vmatmul.mubr.bf16.gmra.mxu1 %v5214_v36  ;;  %1754 = vmatprep.mubr.bf16.mxu0 %v4797_v0  ;;  %v1798_v0 = vmax.f32 %v1263_v30, 0.0  ;;  %v5241_v4 = vpack.c.bf16 %v1793_v14, %v1789_v11  ;;  %v1277_v32 = vadd.f32 %v5108_v41, %v1084_v52  ;;  %v1801_v14 = vmax.f32 %v1265_v39, 0.0 }
 0x167   :  { %2676 = vmatprep.mubr.bf16.mxu1 %v5220_v33  ;;  %v1089_v29 = vpop.f32.mrf.mxu0  ;;  %4102 = vmatpush3.bf16.msra.mxu1 %v4658_v37  ;;  %v1082_v41 = vadd.f32 %v1081_v50, %v5114_v5 }
 0x168   :  { %v5233_v22 = vpop.f32.mrf.mxu1  ;;  %4103 = vmatprep.subr.bf16.mxu1 %v4659_v61  ;;  %v5247_v42 = vpack.c.bf16 %v1802_v57, %v1798_v0  ;;  %v1261_v61 = vadd.f32 %v5073_v3, %v1068_v19  ;;  %v4664_v3 = vld [vmem:[#allocation8 + $0x8] ss:$12 sps:$4 sm:$0xff]   ;;  %v1810_v57 = vmax.f32 %v1277_v32, 0.0  ;;  %v1806_v19 = vmax.f32 %v1273_v59, 0.0 }
 0x169   :  { %v1091_v7 = vpop.f32.mrf.mxu0  ;;  %v1090_v0 = vadd.f32 %v1089_v29, %v5097_v46  ;;  %v1275_v1 = vadd.f32 %v5105_v28, %v1082_v41 }
 0x16a   :  { %v5238_v27 = vpop.f32.mrf.mxu1  ;;  %6367 = vst [vmem:[#allocation16_spill] sm:$0xff] %v5247_v42  ;;  %v5273_v32 = vpack.c.bf16 %v1810_v57, %v1806_v19  ;;  %v1092_v59 = vadd.f32 %v1091_v7, %v5114_v5 }
 0x16b   :  { %v1093_v18 = vpop.f32.mrf.mxu0  ;;  %4104 = vmatpush3.bf16.msra.mxu1 %v4660_v49  ;;  %v1283_v29 = vadd.f32 %v5128_v26, %v1090_v0  ;;  %v1809_v28 = vmax.f32 %v1275_v1, 0.0 }
 0x16c   :  { %v5244_v37 = vpop.f32.mrf.mxu1  ;;  %4105 = vmatprep.subr.bf16.mxu1 %v4661_v15  ;;  %v1094_v52 = vadd.f32 %v1093_v18, %v5097_v46  ;;  %v1797_v15 = vmax.f32 %v1261_v61, 0.0  ;;  %6369 = vst [vmem:[#allocation18_spill] sm:$0xff] %v5273_v32  ;;  %v1285_v7 = vadd.f32 %v5133_v60, %v1092_v59 }
 0x16d   :  { %v5250_v30 = vpop.f32.mrf.mxu0  ;;  %1755 = vmatmul.mubr.bf16.gmra.mxu0 %v4973_v20  ;;  %v1078_v20 = vadd.f32 %v5196_v55, %v5114_v5 }
 0x16e   :  { %v5252_v12 = vpop.f32.mrf.mxu1  ;;  %2677 = vmatmul.mubr.bf16.gmra.mxu1 %v5241_v4  ;;  %v5267_v50 = vpack.c.bf16 %v1801_v14, %v1797_v15  ;;  %v1287_v18 = vadd.f32 %v5137_v56, %v1094_v52  ;;  %v1814_v15 = vmax.f32 %v1283_v29, 0.0  ;;  %v1817_v29 = vmax.f32 %v1285_v7, 0.0 }
 0x16f   :  { %2686 = vmatprep.mubr.bf16.mxu1 %v5247_v42  ;;  %v1099_v31 = vpop.f32.mrf.mxu0  ;;  %4106 = vmatpush3.bf16.msra.mxu1 %v4662_v58  ;;  %v1271_v55 = vadd.f32 %v5090_v17, %v1078_v20  ;;  %v1088_v17 = vadd.f32 %v5223_v43, %v5114_v5 }
 0x170   :  { %v5259_v49 = vpop.f32.mrf.mxu1  ;;  %4107 = vmatprep.subr.bf16.mxu1 %v4663_v40  ;;  %6368 = vst [vmem:[#allocation17_spill] sm:$0xff] %v5267_v50  ;;  %v1818_v41 = vmax.f32 %v1287_v18, 0.0  ;;  %v1100_v26 = vadd.f32 %v1099_v31, %v5097_v46 }
 0x171   :  { %v1101_v11 = vpop.f32.mrf.mxu0  ;;  %v1281_v18 = vadd.f32 %v5118_v8, %v1088_v17  ;;  %v1098_v8 = vadd.f32 %v5250_v30, %v5114_v5 }
 0x172   :  { %v5264_v63 = vpop.f32.mrf.mxu1  ;;  %v1293_v31 = vadd.f32 %v5153_v48, %v1100_v26  ;;  %v1102_v60 = vadd.f32 %v1101_v11, %v5114_v5 }
 0x173   :  { %v1103_v39 = vpop.f32.mrf.mxu0  ;;  %4108 = vmatpush3.bf16.msra.mxu1 %v4664_v3  ;;  %v1805_v3 = vmax.f32 %v1271_v55, 0.0 }
 0x174   :  { %v5270_v58 = vpop.f32.mrf.mxu1  ;;  %4317 = vmatprep.subr.bf16.mxu1 %v5125_v54  ;;  %v1104_v54 = vadd.f32 %v1103_v39, %v5097_v46  ;;  %v5297_v39 = vpack.c.bf16 %v1818_v41, %v1814_v15  ;;  %v1822_v15 = vmax.f32 %v1293_v31, 0.0  ;;  %v1295_v11 = vadd.f32 %v5157_v2, %v1102_v60 }
 0x175   :  { %v1107_v40 = vpop.f32.mrf.mxu0  ;;  %v5291_v20 = vpack.c.bf16 %v1809_v28, %v1805_v3 }
 0x176   :  { %v5277_v61 = vpop.f32.mrf.mxu1  ;;  %2687 = vmatmul.mubr.bf16.gmra.mxu1 %v5267_v50  ;;  %v1297_v1 = vadd.f32 %v5163_v62, %v1104_v54  ;;  %6371 = vst [vmem:[#allocation20_spill] sm:$0xff] %v5297_v39  ;;  %v1813_v54 = vmax.f32 %v1281_v18, 0.0  ;;  %v1291_v18 = vadd.f32 %v5145_v35, %v1098_v8  ;;  %v1825_v31 = vmax.f32 %v1295_v11, 0.0 }
 0x177   :  { %2696 = vmatprep.mubr.bf16.mxu1 %v5273_v32  ;;  %v1109_v14 = vpop.f32.mrf.mxu0  ;;  %6370 = vst [vmem:[#allocation19_spill] sm:$0xff] %v5291_v20  ;;  %v1108_v35 = vadd.f32 %v1107_v40, %v5114_v5 }
 0x178   :  { %v5283_v56 = vpop.f32.mrf.mxu1  ;;  %v1826_v62 = vmax.f32 %v1297_v1, 0.0  ;;  %v1110_v48 = vadd.f32 %v1109_v14, %v5097_v46  ;;  %v5314_v26 = vpack.c.bf16 %v1817_v29, %v1813_v54 }
 0x179   :  { %v1111_v57 = vpop.f32.mrf.mxu0 }
 0x17a   :  { %v5288_v52 = vpop.f32.mrf.mxu1  ;;  %6372 = vst [vmem:[#allocation21_spill] sm:$0xff] %v5314_v26  ;;  %v1303_v14 = vadd.f32 %v5179_v53, %v1110_v48  ;;  %v1112_v2 = vadd.f32 %v1111_v57, %v5114_v5 }
 0x17b   :  { %v1113_v19 = vpop.f32.mrf.mxu0 }
 0x17c   :  { %v5294_v0 = vpop.f32.mrf.mxu1  ;;  %v1114_v41 = vadd.f32 %v1113_v19, %v5097_v46  ;;  %v5320_v19 = vpack.c.bf16 %v1826_v62, %v1822_v15  ;;  %v1830_v15 = vmax.f32 %v1303_v14, 0.0  ;;  %v1305_v11 = vadd.f32 %v5184_v44, %v1112_v2 }
 0x17d   :  { %v1117_v43 = vpop.f32.mrf.mxu0 }
 0x17e   :  { %v5300_v55 = vpop.f32.mrf.mxu1  ;;  %2697 = vmatmul.mubr.bf16.gmra.mxu1 %v5291_v20  ;;  %v1307_v1 = vadd.f32 %v5190_v34, %v1114_v41  ;;  %6373 = vst [vmem:[#allocation22_spill] sm:$0xff] %v5320_v19  ;;  %v1821_v41 = vmax.f32 %v1291_v18, 0.0  ;;  %v1833_v14 = vmax.f32 %v1305_v11, 0.0 }
 0x17f   :  { %2706 = vmatprep.mubr.bf16.mxu1 %v5297_v39  ;;  %v1119_v28 = vpop.f32.mrf.mxu0 }
 0x180   :  { %v5306_v59 = vpop.f32.mrf.mxu1  ;;  %v1834_v34 = vmax.f32 %v1307_v1, 0.0  ;;  %v1120_v53 = vadd.f32 %v1119_v28, %v5097_v46  ;;  %v5336_v48 = vpack.c.bf16 %v1825_v31, %v1821_v41 }
 0x181   :  { %v1121_v3 = vpop.f32.mrf.mxu0 }
 0x182   :  { %v5311_v17 = vpop.f32.mrf.mxu1  ;;  %6374 = vst [vmem:[#allocation23_spill] sm:$0xff] %v5336_v48  ;;  %v1313_v28 = vadd.f32 %v5206_v6, %v1120_v53  ;;  %v1122_v44 = vadd.f32 %v1121_v3, %v5114_v5 }
 0x183   :  { %v1123_v7 = vpop.f32.mrf.mxu0 }
 0x184   :  { %v5317_v39 = vpop.f32.mrf.mxu1  ;;  %v1124_v62 = vadd.f32 %v1123_v7, %v5097_v46  ;;  %v1301_v7 = vadd.f32 %v5171_v47, %v1108_v35  ;;  %v1118_v47 = vadd.f32 %v1117_v43, %v5114_v5  ;;  %v1315_v11 = vadd.f32 %v5211_v16, %v1122_v44 }
 0x185   :  { %v1127_v30 = vpop.f32.mrf.mxu0 }
 0x186   :  { %v5323_v20 = vpop.f32.mrf.mxu1  ;;  %2707 = vmatmul.mubr.bf16.gmra.mxu1 %v5314_v26  ;;  %v1317_v1 = vadd.f32 %v5217_v9, %v1124_v62  ;;  %v5342_v26 = vpack.c.bf16 %v1834_v34, %v1830_v15  ;;  %v1829_v62 = vmax.f32 %v1301_v7, 0.0  ;;  %v1838_v15 = vmax.f32 %v1313_v28, 0.0 }
 0x187   :  { %2716 = vmatprep.mubr.bf16.mxu1 %v5320_v19  ;;  %v1129_v29 = vpop.f32.mrf.mxu0  ;;  %v1841_v28 = vmax.f32 %v1315_v11, 0.0 }
 0x188   :  { %v5329_v60 = vpop.f32.mrf.mxu1  ;;  %6375 = vst [vmem:[#allocation24_spill] sm:$0xff] %v5342_v26  ;;  %v1842_v9 = vmax.f32 %v1317_v1, 0.0  ;;  %v1130_v6 = vadd.f32 %v1129_v29, %v5097_v46  ;;  %v5358_v53 = vpack.c.bf16 %v1833_v14, %v1829_v62 }
 0x189   :  { %v1131_v54 = vpop.f32.mrf.mxu0 }
 0x18a   :  { %v5333_v8 = vpop.f32.mrf.mxu1  ;;  %6376 = vst [vmem:[#allocation25_spill] sm:$0xff] %v5358_v53  ;;  %v1323_v29 = vadd.f32 %v5233_v22, %v1130_v6  ;;  %v1132_v16 = vadd.f32 %v1131_v54, %v5114_v5 }
 0x18b   :  { %v1133_v57 = vpop.f32.mrf.mxu0 }
 0x18c   :  { %v5339_v19 = vpop.f32.mrf.mxu1  ;;  %v1134_v34 = vadd.f32 %v1133_v57, %v5097_v46  ;;  %v1311_v57 = vadd.f32 %v5198_v24, %v1118_v47  ;;  %v1128_v24 = vadd.f32 %v1127_v30, %v5114_v5  ;;  %v1325_v11 = vadd.f32 %v5238_v27, %v1132_v16 }
 0x18d   :  { %v1137_v40 = vpop.f32.mrf.mxu0 }
 0x18e   :  { %v5345_v18 = vpop.f32.mrf.mxu1  ;;  %2717 = vmatmul.mubr.bf16.gmra.mxu1 %v5336_v48  ;;  %v1327_v1 = vadd.f32 %v5244_v37, %v1134_v34  ;;  %v5364_v48 = vpack.c.bf16 %v1842_v9, %v1838_v15  ;;  %v1837_v34 = vmax.f32 %v1311_v57, 0.0  ;;  %v1846_v15 = vmax.f32 %v1323_v29, 0.0 }
 0x18f   :  { %2726 = vmatprep.mubr.bf16.mxu1 %v5342_v26  ;;  %v1139_v31 = vpop.f32.mrf.mxu0  ;;  %v1849_v29 = vmax.f32 %v1325_v11, 0.0 }
 0x190   :  { %v5351_v2 = vpop.f32.mrf.mxu1  ;;  %6377 = vst [vmem:[#allocation26_spill] sm:$0xff] %v5364_v48  ;;  %v1850_v37 = vmax.f32 %v1327_v1, 0.0  ;;  %v1140_v22 = vadd.f32 %v1139_v31, %v5097_v46  ;;  %v5380_v6 = vpack.c.bf16 %v1841_v28, %v1837_v34 }
 0x191   :  { %v1141_v41 = vpop.f32.mrf.mxu0 }
 0x192   :  { %v5355_v35 = vpop.f32.mrf.mxu1  ;;  %6378 = vst [vmem:[#allocation27_spill] sm:$0xff] %v5380_v6  ;;  %v1333_v31 = vadd.f32 %v5259_v49, %v1140_v22  ;;  %v1142_v27 = vadd.f32 %v1141_v41, %v5114_v5 }
 0x193   :  { %v1143_v3 = vpop.f32.mrf.mxu0 }
 0x194   :  { %v5361_v26 = vpop.f32.mrf.mxu1  ;;  %v1144_v9 = vadd.f32 %v1143_v3, %v5097_v46  ;;  %v1321_v3 = vadd.f32 %v5225_v51, %v1128_v24  ;;  %v1138_v51 = vadd.f32 %v1137_v40, %v5114_v5  ;;  %v1335_v11 = vadd.f32 %v5264_v63, %v1142_v27 }
 0x195   :  { %v1147_v43 = vpop.f32.mrf.mxu0 }
 0x196   :  { %v5367_v7 = vpop.f32.mrf.mxu1  ;;  %2727 = vmatmul.mubr.bf16.gmra.mxu1 %v5358_v53  ;;  %v1337_v1 = vadd.f32 %v5270_v58, %v1144_v9  ;;  %v5386_v53 = vpack.c.bf16 %v1850_v37, %v1846_v15  ;;  %v1845_v9 = vmax.f32 %v1321_v3, 0.0  ;;  %v1854_v15 = vmax.f32 %v1333_v31, 0.0 }
 0x197   :  { %2736 = vmatprep.mubr.bf16.mxu1 %v5364_v48  ;;  %v1149_v14 = vpop.f32.mrf.mxu0  ;;  %v1857_v63 = vmax.f32 %v1335_v11, 0.0 }
 0x198   :  { %v5373_v44 = vpop.f32.mrf.mxu1  ;;  %6379 = vst [vmem:[#allocation28_spill] sm:$0xff] %v5386_v53  ;;  %v1858_v58 = vmax.f32 %v1337_v1, 0.0  ;;  %v1150_v49 = vadd.f32 %v1149_v14, %v5097_v46  ;;  %v5402_v22 = vpack.c.bf16 %v1849_v29, %v1845_v9 }
 0x199   :  { %v1151_v62 = vpop.f32.mrf.mxu0 }
 0x19a   :  { %v5377_v47 = vpop.f32.mrf.mxu1  ;;  %6380 = vst [vmem:[#allocation29_spill] sm:$0xff] %v5402_v22  ;;  %v1343_v14 = vadd.f32 %v5283_v56, %v1150_v49  ;;  %v1152_v31 = vadd.f32 %v1151_v62, %v5114_v5 }
 0x19b   :  { %v1153_v54 = vpop.f32.mrf.mxu0 }
 0x19c   :  { %v5383_v48 = vpop.f32.mrf.mxu1  ;;  %v1154_v37 = vadd.f32 %v1153_v54, %v5097_v46  ;;  %v1331_v54 = vadd.f32 %v5252_v12, %v1138_v51  ;;  %v1345_v11 = vadd.f32 %v5288_v52, %v1152_v31 }
 0x19d   :  { %v1157_v30 = vpop.f32.mrf.mxu0 }
 0x19e   :  { %v5389_v57 = vpop.f32.mrf.mxu1  ;;  %2737 = vmatmul.mubr.bf16.gmra.mxu1 %v5380_v6  ;;  %v1347_v1 = vadd.f32 %v5294_v0, %v1154_v37  ;;  %v5408_v6 = vpack.c.bf16 %v1858_v58, %v1854_v15  ;;  %v1853_v12 = vmax.f32 %v1331_v54, 0.0  ;;  %v1148_v37 = vadd.f32 %v1147_v43, %v5114_v5 }
 0x19f   :  { %2746 = vmatprep.mubr.bf16.mxu1 %v5386_v53  ;;  %v1159_v28 = vpop.f32.mrf.mxu0  ;;  %v1862_v15 = vmax.f32 %v1343_v14, 0.0  ;;  %v1865_v14 = vmax.f32 %v1345_v11, 0.0  ;;  %v6384_v11 = vsub.s32 2, %v5081_v21 }
 0x1a0   :  { %v5395_v16 = vpop.f32.mrf.mxu1  ;;  %6381 = vst [vmem:[#allocation30_spill] sm:$0xff] %v5408_v6  ;;  %v1866_v0 = vmax.f32 %v1347_v1, 0.0  ;;  %v1160_v56 = vadd.f32 %v1159_v28, %v5097_v46  ;;  %v5426_v49 = vpack.c.bf16 %v1857_v63, %v1853_v12 }
 0x1a1   :  { %v1161_v34 = vpop.f32.mrf.mxu0 }
 0x1a2   :  { %v5399_v24 = vpop.f32.mrf.mxu1  ;;  %6382 = vst [vmem:[#allocation31_spill] sm:$0xff] %v5426_v49  ;;  %v1353_v28 = vadd.f32 %v5306_v59, %v1160_v56  ;;  %v1162_v63 = vadd.f32 %v1161_v34, %v5114_v5  ;;  %v5455_v34 = vrot.slane %v5088_v45, %v6384_v11 }
 0x1a3   :  { %v1163_v41 = vpop.f32.mrf.mxu0 }
 0x1a4   :  { %v5405_v53 = vpop.f32.mrf.mxu1  ;;  %v1164_v58 = vadd.f32 %v1163_v41, %v5097_v46  ;;  %v1341_v41 = vadd.f32 %v5277_v61, %v1148_v37  ;;  %v251_v61 = vsub.s32 3, %v5081_v21  ;;  %v1158_v37 = vadd.f32 %v1157_v30, %v5114_v5 }
 0x1a5   :  { %v5411_v40 = vpop.f32.mrf.mxu0  ;;  %v1870_v56 = vmax.f32 %v1353_v28, 0.0 }
 0x1a6   :  { %v5413_v3 = vpop.f32.mrf.mxu1  ;;  %2747 = vmatmul.mubr.bf16.gmra.mxu1 %v5402_v22  ;;  %v1357_v1 = vadd.f32 %v5317_v39, %v1164_v58  ;;  %v5432_v22 = vpack.c.bf16 %v1866_v0, %v1862_v15  ;;  %v1861_v12 = vmax.f32 %v1341_v41, 0.0  ;;  %v5463_v30 = vrot.slane %v5088_v45, %v251_v61 }
 0x1a7   :  { %2756 = vmatprep.mubr.bf16.mxu1 %v5408_v6  ;;  %v1169_v29 = vpop.f32.mrf.mxu0 }
 0x1a8   :  { %v5419_v27 = vpop.f32.mrf.mxu1  ;;  %6383 = vst [vmem:[#allocation32_spill] sm:$0xff] %v5432_v22  ;;  %v1874_v0 = vmax.f32 %v1357_v1, 0.0  ;;  %v1170_v52 = vadd.f32 %v1169_v29, %v5097_v46  ;;  %v1355_v1 = vadd.f32 %v5311_v17, %v1162_v63  ;;  %v1351_v29 = vadd.f32 %v5300_v55, %v1158_v37 }
 0x1a9   :  { %v1171_v9 = vpop.f32.mrf.mxu0  ;;  %v1414_v17 = vadd.f32 %v5367_v7, %v5455_v34  ;;  %v1416_v55 = vadd.f32 %v5373_v44, %v5463_v30  ;;  %v1168_v7 = vadd.f32 %v5411_v40, %v5114_v5 }
 0x1aa   :  { %v5423_v51 = vpop.f32.mrf.mxu1  ;;  %v5466_v28 = vpack.c.bf16 %v1874_v0, %v1870_v56  ;;  %v1873_v45 = vmax.f32 %v1355_v1, 0.0  ;;  %v1172_v63 = vadd.f32 %v1171_v9, %v5114_v5  ;;  %v1418_v0 = vadd.f32 %v5377_v47, %v5455_v34 }
 0x1ab   :  { %v1173_v62 = vpop.f32.mrf.mxu0  ;;  %v1361_v50 = vadd.f32 %v5323_v20, %v1168_v7 }
 0x1ac   :  { %v5429_v6 = vpop.f32.mrf.mxu1  ;;  %v1174_v58 = vadd.f32 %v1173_v62, %v5097_v46  ;;  %6386 = vst [vmem:[#allocation34_spill] sm:$0xff] %v5466_v28  ;;  %v1365_v47 = vadd.f32 %v5333_v8, %v1172_v63 }
 0x1ad   :  { %v5435_v43 = vpop.f32.mrf.mxu0 }
 0x1ae   :  { %v5437_v54 = vpop.f32.mrf.mxu1  ;;  %2757 = vmatmul.mubr.bf16.gmra.mxu1 %v5426_v49  ;;  %v1367_v41 = vadd.f32 %v5339_v19, %v1174_v58 }
 0x1af   :  { %2766 = vmatprep.mubr.bf16.mxu1 %v5432_v22  ;;  %v1179_v39 = vpop.f32.mrf.mxu0  ;;  %v5457_v22 = vpack.c.bf16 %v1865_v14, %v1861_v12  ;;  %v1363_v14 = vadd.f32 %v5329_v60, %v1170_v52  ;;  %v1420_v52 = vadd.f32 %v5383_v48, %v5463_v30  ;;  %v1869_v12 = vmax.f32 %v1351_v29, 0.0 }
 0x1b0   :  { %v5444_v31 = vpop.f32.mrf.mxu1  ;;  %v1882_v58 = vmax.f32 %v1367_v41, 0.0  ;;  %v1180_v1 = vadd.f32 %v1179_v39, %v5097_v46 }
 0x1b1   :  { %v1181_v15 = vpop.f32.mrf.mxu0  ;;  %6385 = vst [vmem:[#allocation33_spill] sm:$0xff] %v5457_v22  ;;  %v1878_v56 = vmax.f32 %v1363_v14, 0.0 }
 0x1b2   :  { %v5449_v59 = vpop.f32.mrf.mxu1  ;;  %v1373_v39 = vadd.f32 %v5351_v2, %v1180_v1  ;;  %v1428_v2 = vadd.f32 %v5399_v24, %v5455_v34 }
 0x1b3   :  { %v1183_v49 = vpop.f32.mrf.mxu0  ;;  %v5497_v40 = vpack.c.bf16 %v1882_v58, %v1878_v56  ;;  %v1877_v58 = vmax.f32 %v1361_v50, 0.0 }
 0x1b4   :  { %v5460_v62 = vpop.f32.mrf.mxu1  ;;  %v1184_v60 = vadd.f32 %v1183_v49, %v5097_v46  ;;  %v1886_v24 = vmax.f32 %v1373_v39, 0.0 }
 0x1b5   :  { %v1606_v11 = vpop.f32.mrf.mxu0 }
 0x1b6   :  { %v5469_v21 = vpop.f32.mrf.mxu1  ;;  %2767 = vmatmul.mubr.bf16.gmra.mxu1 %v5457_v22  ;;  %v5491_v22 = vpack.c.bf16 %v1873_v45, %v1869_v12  ;;  %v1607_v49 = vadd.f32 %v1606_v11, %v1414_v17  ;;  %v1377_v29 = vadd.f32 %v5361_v26, %v1184_v60  ;;  %v1424_v26 = vadd.f32 %v5389_v57, %v5455_v34  ;;  %v5524_v12 = vld [vmem:[#allocation8 + $0x2d8] ss:$12 sps:$4 sm:$0xff]  }
 0x1b7   :  { %2776 = vmatprep.mubr.bf16.mxu1 %v5466_v28  ;;  %v1608_v61 = vpop.f32.mrf.mxu0  ;;  %v1881_v17 = vmax.f32 %v1365_v47, 0.0  ;;  %v1182_v45 = vadd.f32 %v1181_v15, %v5114_v5  ;;  %v1178_v57 = vadd.f32 %v5435_v43, %v5114_v5 }
 0x1b8   :  { %v5477_v19 = vpop.f32.mrf.mxu1  ;;  %v1609_v44 = vadd.f32 %v1608_v61, %v1416_v55  ;;  %v1767_v63 = vmax.f32 %v1607_v49, 0.0  ;;  %v1426_v61 = vadd.f32 %v5395_v16, %v5463_v30  ;;  %v1890_v55 = vmax.f32 %v1377_v29, 0.0 }
 0x1b9   :  { %v1610_v37 = vpop.f32.mrf.mxu0  ;;  %v1430_v16 = vadd.f32 %v5405_v53, %v5463_v30  ;;  %v5529_v56 = vpack.c.bf16 %v1881_v17, %v1877_v58  ;;  %v1375_v50 = vadd.f32 %v5355_v35, %v1182_v45  ;;  %v5538_v53 = vld [vmem:[#allocation8 + $0x218] ss:$12 sps:$4 sm:$0xff]   ;;  %v1371_v49 = vadd.f32 %v5345_v18, %v1178_v57  ;;  %v5545_v35 = vld [vmem:[#allocation8 + $0x2c0] ss:$12 sps:$4 sm:$0xff]   ;;  %v5566_v57 = vld [vmem:[#allocation8 + $0x2a8] ss:$12 sps:$4 sm:$0xff]  }
 0x1ba   :  { %v5488_v9 = vpop.f32.mrf.mxu1  ;;  %v1611_v28 = vadd.f32 %v1610_v37, %v1418_v0  ;;  %v1768_v8 = vmax.f32 %v1609_v44, 0.0  ;;  %v5516_v0 = vld [vmem:[#allocation8 + $0x230] ss:$12 sps:$4 sm:$0xff]   ;;  %v5536_v47 = vpack.c.bf16 %v1890_v55, %v1886_v24  ;;  %v1436_v45 = vadd.f32 %v5419_v27, %v5463_v30 }
 0x1bb   :  { %v1612_v48 = vpop.f32.mrf.mxu0  ;;  %v1440_v27 = vadd.f32 %v5429_v6, %v5463_v30 }
 0x1bc   :  { %v5494_v41 = vpop.f32.mrf.mxu1  ;;  %v1613_v32 = vadd.f32 %v1612_v48, %v1420_v52  ;;  %v1771_v14 = vmax.f32 %v1611_v28, 0.0 }
 0x1bd   :  { %v1616_v46 = vpop.f32.mrf.mxu0 }
 0x1be   :  { %v5500_v42 = vpop.f32.mrf.mxu1  ;;  %2777 = vmatmul.mubr.bf16.gmra.mxu1 %v5491_v22  ;;  %v1772_v11 = vmax.f32 %v1613_v32, 0.0  ;;  %v5520_v15 = vpack.c.bf16 %v1771_v14, %v1767_v63  ;;  %v1617_v5 = vadd.f32 %v1616_v46, %v1424_v26  ;;  %v1438_v63 = vadd.f32 %v5423_v51, %v5455_v34 }
 0x1bf   :  { %2786 = vmatprep.mubr.bf16.mxu1 %v5497_v40  ;;  %v1618_v28 = vpop.f32.mrf.mxu0 }
 0x1c0   :  { %v5508_v20 = vpop.f32.mrf.mxu1  ;;  %v5514_v32 = vpack.c.bf16 %v1772_v11, %v1768_v8  ;;  %v1619_v7 = vadd.f32 %v1618_v28, %v1426_v61  ;;  %v1434_v8 = vadd.f32 %v5413_v3, %v5455_v34  ;;  %v1889_v11 = vmax.f32 %v1375_v50, 0.0  ;;  %v5559_v61 = vld [vmem:[#allocation8 + $0x200] ss:$12 sps:$4 sm:$0xff]  }
 0x1c1   :  { %v1620_v52 = vpop.f32.mrf.mxu0  ;;  %v1775_v26 = vmax.f32 %v1617_v5, 0.0  ;;  %v5577_v5 = vld [vmem:[#allocation8 + $0x1e8] ss:$12 sps:$4 sm:$0xff]  }
 0x1c2   :  { %v5522_v60 = vpop.f32.mrf.mxu1  ;;  %v1621_v37 = vadd.f32 %v1620_v52, %v1428_v2  ;;  %2839 = vmatprep.mubr.bf16.mxu0 %v5514_v32  ;;  %v1776_v46 = vmax.f32 %v1619_v7, 0.0  ;;  %v1885_v2 = vmax.f32 %v1371_v49, 0.0  ;;  %v5583_v49 = vld [vmem:[#allocation8 + $0x290] ss:$12 sps:$4 sm:$0xff]  }
 0x1c3   :  { %v1622_v1 = vpop.f32.mrf.mxu0  ;;  %2840 = vmatmul.mubr.bf16.vlgmr.msra.gmra.mxu0 %v5520_v15 }
 0x1c4   :  { %v5532_v43 = vpop.f32.mrf.mxu1  ;;  %v1623_v44 = vadd.f32 %v1622_v1, %v1430_v16  ;;  %4206 = vmatpush3.bf16.msra.mxu0 %v5516_v0  ;;  %v1779_v48 = vmax.f32 %v1621_v37, 0.0  ;;  %v5571_v16 = vpack.c.bf16 %v1889_v11, %v1885_v2 }
 0x1c5   :  { %v1626_v14 = vpop.f32.mrf.mxu0  ;;  %4207 = vmatprep.subr.bf16.mxu0 %v5524_v12 }
 0x1c6   :  { %v5541_v29 = vpop.f32.mrf.mxu1  ;;  %2787 = vmatmul.mubr.bf16.gmra.mxu1 %v5529_v56  ;;  %v1780_v39 = vmax.f32 %v1623_v44, 0.0  ;;  %v5561_v55 = vpack.c.bf16 %v1779_v48, %v1775_v26  ;;  %v1627_v24 = vadd.f32 %v1626_v14, %v1434_v8  ;;  %v1446_v26 = vadd.f32 %v5444_v31, %v5463_v30 }
 0x1c7   :  { %2796 = vmatprep.mubr.bf16.mxu1 %v5536_v47  ;;  %v1628_v17 = vpop.f32.mrf.mxu0  ;;  %v1450_v31 = vadd.f32 %v5460_v62, %v5463_v30  ;;  %v5619_v62 = vld [vmem:[#allocation8 + $0x260] ss:$12 sps:$4 sm:$0xff]  }
 0x1c8   :  { %v5550_v18 = vpop.f32.mrf.mxu1  ;;  %v5556_v28 = vpack.c.bf16 %v1780_v39, %v1776_v46  ;;  %4208 = vmatpush3.bf16.msra.mxu0 %v5538_v53  ;;  %v1629_v51 = vadd.f32 %v1628_v17, %v1436_v45  ;;  %v1444_v46 = vadd.f32 %v5437_v54, %v5455_v34  ;;  %v1783_v39 = vmax.f32 %v1627_v24, 0.0 }
 0x1c9   :  { %v1630_v58 = vpop.f32.mrf.mxu0  ;;  %4209 = vmatprep.subr.bf16.mxu0 %v5545_v35  ;;  %v1448_v17 = vadd.f32 %v5449_v59, %v5455_v34 }
 0x1ca   :  { %v5563_v3 = vpop.f32.mrf.mxu1  ;;  %v1631_v52 = vadd.f32 %v1630_v58, %v1438_v63  ;;  %2849 = vmatprep.mubr.bf16.mxu0 %v5556_v28  ;;  %v1784_v48 = vmax.f32 %v1629_v51, 0.0  ;;  %v5597_v63 = vld [vmem:[#allocation8 + $0x1d0] ss:$12 sps:$4 sm:$0xff]   ;;  %v5604_v58 = vld [vmem:[#allocation8 + $0x278] ss:$12 sps:$4 sm:$0xff]  }
 0x1cb   :  { %v1632_v37 = vpop.f32.mrf.mxu0  ;;  %2850 = vmatmul.mubr.bf16.gmra.mxu0 %v5561_v55 }
 0x1cc   :  { %v5573_v7 = vpop.f32.mrf.mxu1  ;;  %v1633_v50 = vadd.f32 %v1632_v37, %v1440_v27  ;;  %4210 = vmatpush3.bf16.msra.mxu0 %v5559_v61  ;;  %v1787_v1 = vmax.f32 %v1631_v52, 0.0 }
 0x1cd   :  { %v1636_v6 = vpop.f32.mrf.mxu0  ;;  %4211 = vmatprep.subr.bf16.mxu0 %v5566_v57 }
 0x1ce   :  { %v5579_v44 = vpop.f32.mrf.mxu1  ;;  %2797 = vmatmul.mubr.bf16.gmra.mxu1 %v5571_v16  ;;  %v1788_v14 = vmax.f32 %v1633_v50, 0.0  ;;  %v1637_v51 = vadd.f32 %v1636_v6, %v1444_v46  ;;  %v5613_v50 = vld [vmem:[#allocation8 + $0x1b8] ss:$12 sps:$4 sm:$0xff]  }
 0x1cf   :  { %3032 = vmatprep.mubr.bf16.mxu1 %v5140_v23  ;;  %v1638_v11 = vpop.f32.mrf.mxu0  ;;  %v5599_v23 = vpack.c.bf16 %v1787_v1, %v1783_v39  ;;  %v1454_v39 = vadd.f32 %v5469_v21, %v5455_v34 }
 0x1d0   :  { %v5588_v8 = vpop.f32.mrf.mxu1  ;;  %v5594_v45 = vpack.c.bf16 %v1788_v14, %v1784_v48  ;;  %4212 = vmatpush3.bf16.msra.mxu0 %v5577_v5  ;;  %v1639_v27 = vadd.f32 %v1638_v11, %v1446_v26  ;;  %v1791_v11 = vmax.f32 %v1637_v51, 0.0 }
 0x1d1   :  { %v1640_v54 = vpop.f32.mrf.mxu0  ;;  %4213 = vmatprep.subr.bf16.mxu0 %v5583_v49 }
 0x1d2   :  { %v5601_v2 = vpop.f32.mrf.mxu1  ;;  %v1641_v59 = vadd.f32 %v1640_v54, %v1448_v17  ;;  %2859 = vmatprep.mubr.bf16.mxu0 %v5594_v45  ;;  %v1792_v6 = vmax.f32 %v1639_v27, 0.0  ;;  %v1458_v54 = vadd.f32 %v5488_v9, %v5455_v34 }
 0x1d3   :  { %v1642_v24 = vpop.f32.mrf.mxu0  ;;  %2860 = vmatmul.mubr.bf16.gmra.mxu0 %v5599_v23 }
 0x1d4   :  { %v5609_v52 = vpop.f32.mrf.mxu1  ;;  %v1643_v37 = vadd.f32 %v1642_v24, %v1450_v31  ;;  %4214 = vmatpush3.bf16.msra.mxu0 %v5597_v63  ;;  %v1795_v1 = vmax.f32 %v1641_v59, 0.0 }
 0x1d5   :  { %v1646_v14 = vpop.f32.mrf.mxu0  ;;  %4215 = vmatprep.subr.bf16.mxu0 %v5604_v58 }
 0x1d6   :  { %v5615_v48 = vpop.f32.mrf.mxu1  ;;  %3033 = vmatmul.mubr.bf16.vlgmr.msra.gmra.mxu1 %v5160_v13  ;;  %v1796_v46 = vmax.f32 %v1643_v37, 0.0  ;;  %v1456_v13 = vadd.f32 %v5477_v19, %v5463_v30  ;;  %v1460_v19 = vadd.f32 %v5494_v41, %v5463_v30  ;;  %v1647_v51 = vadd.f32 %v1646_v14, %v1454_v39 }
 0x1d7   :  { %3040 = vmatprep.mubr.bf16.mxu1 %v5166_v38  ;;  %4325 = vmatpush3.bf16.msra.mxu1 %v5516_v0  ;;  %v1648_v17 = vpop.f32.mrf.mxu0  ;;  %v5635_v38 = vld [vmem:[#allocation8 + $0x1a0] ss:$12 sps:$4 sm:$0xff]   ;;  %v5637_v0 = vpack.c.bf16 %v1795_v1, %v1791_v11 }
 0x1d8   :  { %v5625_v26 = vpop.f32.mrf.mxu1  ;;  %4318 = vmatprep.subr.bf16.mxu1 %v5524_v12  ;;  %v5632_v31 = vpack.c.bf16 %v1796_v46, %v1792_v6  ;;  %4216 = vmatpush3.bf16.msra.mxu0 %v5613_v50  ;;  %v5642_v12 = vld [vmem:[#allocation8 + $0x248] ss:$12 sps:$4 sm:$0xff]   ;;  %v1649_v59 = vadd.f32 %v1648_v17, %v1456_v13  ;;  %v1799_v39 = vmax.f32 %v1647_v51, 0.0 }
 0x1d9   :  { %v1650_v27 = vpop.f32.mrf.mxu0  ;;  %4217 = vmatprep.subr.bf16.mxu0 %v5619_v62  ;;  %v5653_v6 = vld [vmem:[#allocation8 + $0x188] ss:$12 sps:$4 sm:$0xff]  }
 0x1da   :  { %v5639_v21 = vpop.f32.mrf.mxu1  ;;  %v1651_v9 = vadd.f32 %v1650_v27, %v1458_v54  ;;  %2869 = vmatprep.mubr.bf16.mxu0 %v5632_v31  ;;  %v1468_v54 = vadd.f32 %v5522_v60, %v5455_v34 }
 0x1db   :  { %4326 = vmatpush3.bf16.msra.mxu1 %v5538_v53  ;;  %v1652_v37 = vpop.f32.mrf.mxu0  ;;  %2870 = vmatmul.mubr.bf16.gmra.mxu0 %v5637_v0  ;;  %v1800_v53 = vmax.f32 %v1649_v59, 0.0 }
 0x1dc   :  { %v5648_v24 = vpop.f32.mrf.mxu1  ;;  %4319 = vmatprep.subr.bf16.mxu1 %v5545_v35  ;;  %v1653_v1 = vadd.f32 %v1652_v37, %v1460_v19  ;;  %4218 = vmatpush3.bf16.msra.mxu0 %v5635_v38  ;;  %v1803_v41 = vmax.f32 %v1651_v9, 0.0  ;;  %v1464_v35 = vadd.f32 %v5500_v42, %v5455_v34  ;;  %v1470_v19 = vadd.f32 %v5532_v43, %v5463_v30 }
 0x1dd   :  { %v1656_v11 = vpop.f32.mrf.mxu0  ;;  %4219 = vmatprep.subr.bf16.mxu0 %v5642_v12 }
 0x1de   :  { %v5655_v46 = vpop.f32.mrf.mxu1  ;;  %3041 = vmatmul.mubr.bf16.gmra.mxu1 %v5187_v10  ;;  %v1804_v14 = vmax.f32 %v1653_v1, 0.0  ;;  %v1466_v10 = vadd.f32 %v5508_v20, %v5463_v30  ;;  %v1657_v20 = vadd.f32 %v1656_v11, %v1464_v35  ;;  %v1476_v35 = vadd.f32 %v5550_v18, %v5463_v30 }
 0x1df   :  { %3048 = vmatprep.mubr.bf16.mxu1 %v5193_v25  ;;  %4327 = vmatpush3.bf16.msra.mxu1 %v5559_v61  ;;  %v1658_v13 = vpop.f32.mrf.mxu0  ;;  %v5673_v25 = vpack.c.bf16 %v1803_v41, %v1799_v39 }
 0x1e0   :  { %v5663_v17 = vpop.f32.mrf.mxu1  ;;  %4320 = vmatprep.subr.bf16.mxu1 %v5566_v57  ;;  %v5670_v27 = vpack.c.bf16 %v1804_v14, %v1800_v53  ;;  %4220 = vmatpush3.bf16.msra.mxu0 %v5653_v6  ;;  %v1659_v59 = vadd.f32 %v1658_v13, %v1466_v10  ;;  %v1807_v11 = vmax.f32 %v1657_v20, 0.0 }
 0x1e1   :  { %v1660_v42 = vpop.f32.mrf.mxu0 }
 0x1e2   :  { %v5675_v61 = vpop.f32.mrf.mxu1  ;;  %v1661_v57 = vadd.f32 %v1660_v42, %v1468_v54  ;;  %2879 = vmatprep.mubr.bf16.mxu0 %v5670_v27  ;;  %v1808_v43 = vmax.f32 %v1659_v59, 0.0 }
 0x1e3   :  { %4328 = vmatpush3.bf16.msra.mxu1 %v5577_v5  ;;  %v1662_v9 = vpop.f32.mrf.mxu0  ;;  %2880 = vmatmul.mubr.bf16.gmra.mxu0 %v5673_v25  ;;  %v1474_v5 = vadd.f32 %v5541_v29, %v5455_v34  ;;  %v1480_v29 = vadd.f32 %v5573_v7, %v5463_v30 }
 0x1e4   :  { %v5681_v60 = vpop.f32.mrf.mxu1  ;;  %4321 = vmatprep.subr.bf16.mxu1 %v5583_v49  ;;  %v1663_v51 = vadd.f32 %v1662_v9, %v1470_v19  ;;  %v1811_v37 = vmax.f32 %v1661_v57, 0.0  ;;  %v6387_v9 = vld [vmem:[#allocation16_spill] sm:$0xff] }
 0x1e5   :  { %v1666_v41 = vpop.f32.mrf.mxu0 }
 0x1e6   :  { %v5685_v1 = vpop.f32.mrf.mxu1  ;;  %3049 = vmatmul.mubr.bf16.gmra.mxu1 %v5214_v36  ;;  %v1812_v53 = vmax.f32 %v1663_v51, 0.0  ;;  %v1478_v36 = vadd.f32 %v5563_v3, %v5455_v34  ;;  %v1667_v18 = vadd.f32 %v1666_v41, %v1474_v5  ;;  %v1486_v41 = vadd.f32 %v5588_v8, %v5463_v30 }
 0x1e7   :  { %3056 = vmatprep.mubr.bf16.mxu1 %v5220_v33  ;;  %4329 = vmatpush3.bf16.msra.mxu1 %v5597_v63  ;;  %v1668_v49 = vpop.f32.mrf.mxu0  ;;  %v5701_v33 = vpack.c.bf16 %v1811_v37, %v1807_v11 }
 0x1e8   :  { %v5692_v14 = vpop.f32.mrf.mxu1  ;;  %4322 = vmatprep.subr.bf16.mxu1 %v5604_v58  ;;  %v5699_v39 = vpack.c.bf16 %v1812_v53, %v1808_v43  ;;  %v1669_v10 = vadd.f32 %v1668_v49, %v1476_v35  ;;  %v1815_v51 = vmax.f32 %v1667_v18, 0.0  ;;  %v6389_v18 = vld [vmem:[#allocation18_spill] sm:$0xff] }
 0x1e9   :  { %v1670_v13 = vpop.f32.mrf.mxu0 }
 0x1ea   :  { %v5703_v63 = vpop.f32.mrf.mxu1  ;;  %v1671_v54 = vadd.f32 %v1670_v13, %v1478_v36  ;;  %2889 = vmatprep.mubr.bf16.mxu0 %v5699_v39  ;;  %v1816_v7 = vmax.f32 %v1669_v10, 0.0  ;;  %v6388_v10 = vld [vmem:[#allocation17_spill] sm:$0xff] }
 0x1eb   :  { %4330 = vmatpush3.bf16.msra.mxu1 %v5613_v50  ;;  %v1672_v3 = vpop.f32.mrf.mxu0  ;;  %2890 = vmatmul.mubr.bf16.gmra.mxu0 %v5701_v33  ;;  %v1484_v50 = vadd.f32 %v5579_v44, %v5455_v34  ;;  %v1490_v44 = vadd.f32 %v5609_v52, %v5463_v30 }
 0x1ec   :  { %v5709_v58 = vpop.f32.mrf.mxu1  ;;  %4323 = vmatprep.subr.bf16.mxu1 %v5619_v62  ;;  %v1673_v42 = vadd.f32 %v1672_v3, %v1480_v29  ;;  %v1819_v19 = vmax.f32 %v1671_v54, 0.0 }
 0x1ed   :  { %v1676_v57 = vpop.f32.mrf.mxu0 }
 0x1ee   :  { %v5713_v59 = vpop.f32.mrf.mxu1  ;;  %3057 = vmatmul.mubr.bf16.gmra.mxu1 %v5241_v4  ;;  %v1820_v20 = vmax.f32 %v1673_v42, 0.0  ;;  %v1488_v4 = vadd.f32 %v5601_v2, %v5455_v34  ;;  %v5729_v53 = vpack.c.bf16 %v1819_v19, %v1815_v51  ;;  %v1677_v8 = vadd.f32 %v1676_v57, %v1484_v50 }
 0x1ef   :  { %3064 = vmatprep.mubr.bf16.mxu1 %v6387_v9  ;;  %4331 = vmatpush3.bf16.msra.mxu1 %v5635_v38  ;;  %v1678_v62 = vpop.f32.mrf.mxu0  ;;  %v1496_v57 = vadd.f32 %v5625_v26, %v5463_v30 }
 0x1f0   :  { %v5720_v37 = vpop.f32.mrf.mxu1  ;;  %4324 = vmatprep.subr.bf16.mxu1 %v5642_v12  ;;  %v5727_v43 = vpack.c.bf16 %v1820_v20, %v1816_v7  ;;  %v1679_v11 = vadd.f32 %v1678_v62, %v1486_v41  ;;  %v1823_v3 = vmax.f32 %v1677_v8, 0.0  ;;  %v1498_v7 = vadd.f32 %v5639_v21, %v5455_v34  ;;  %v6390_v8 = vld [vmem:[#allocation19_spill] sm:$0xff] }
 0x1f1   :  { %v1680_v5 = vpop.f32.mrf.mxu0 }
 0x1f2   :  { %v5731_v38 = vpop.f32.mrf.mxu1  ;;  %v1681_v49 = vadd.f32 %v1680_v5, %v1488_v4  ;;  %2899 = vmatprep.mubr.bf16.mxu0 %v5727_v43  ;;  %v1824_v52 = vmax.f32 %v1679_v11, 0.0 }
 0x1f3   :  { %4332 = vmatpush3.bf16.msra.mxu1 %v5653_v6  ;;  %v1682_v2 = vpop.f32.mrf.mxu0  ;;  %2900 = vmatmul.mubr.bf16.gmra.mxu0 %v5729_v53  ;;  %v1494_v6 = vadd.f32 %v5615_v48, %v5455_v34  ;;  %v1500_v48 = vadd.f32 %v5648_v24, %v5463_v30  ;;  %v6391_v24 = vld [vmem:[#allocation20_spill] sm:$0xff] }
 0x1f4   :  { %v5737_v12 = vpop.f32.mrf.mxu1  ;;  %v1683_v35 = vadd.f32 %v1682_v2, %v1490_v44  ;;  %v1827_v36 = vmax.f32 %v1681_v49, 0.0 }
 0x1f5   :  { %v1686_v29 = vpop.f32.mrf.mxu0 }
 0x1f6   :  { %v5740_v13 = vpop.f32.mrf.mxu1  ;;  %3065 = vmatmul.mubr.bf16.gmra.mxu1 %v6388_v10  ;;  %v1828_v54 = vmax.f32 %v1683_v35, 0.0  ;;  %v5754_v9 = vpack.c.bf16 %v1827_v36, %v1823_v3  ;;  %v1687_v4 = vadd.f32 %v1686_v29, %v1494_v6  ;;  %v1504_v36 = vadd.f32 %v5655_v46, %v5455_v34 }
 0x1f7   :  { %3072 = vmatprep.mubr.bf16.mxu1 %v6389_v18  ;;  %v1688_v19 = vpop.f32.mrf.mxu0  ;;  %v1508_v18 = vadd.f32 %v5675_v61, %v5455_v34  ;;  %v1510_v46 = vadd.f32 %v5681_v60, %v5463_v30  ;;  %v6393_v60 = vld [vmem:[#allocation22_spill] sm:$0xff] }
 0x1f8   :  { %v5746_v42 = vpop.f32.mrf.mxu1  ;;  %v5752_v20 = vpack.c.bf16 %v1828_v54, %v1824_v52  ;;  %v1689_v62 = vadd.f32 %v1688_v19, %v1496_v57  ;;  %v1831_v29 = vmax.f32 %v1687_v4, 0.0  ;;  %v1506_v54 = vadd.f32 %v5663_v17, %v5463_v30 }
 0x1f9   :  { %v1690_v51 = vpop.f32.mrf.mxu0 }
 0x1fa   :  { %v5756_v50 = vpop.f32.mrf.mxu1  ;;  %v1691_v41 = vadd.f32 %v1690_v51, %v1498_v7  ;;  %2909 = vmatprep.mubr.bf16.mxu0 %v5752_v20  ;;  %v1832_v2 = vmax.f32 %v1689_v62, 0.0 }
 0x1fb   :  { %v1692_v26 = vpop.f32.mrf.mxu0  ;;  %2910 = vmatmul.mubr.bf16.gmra.mxu0 %v5754_v9 }
 0x1fc   :  { %v5761_v5 = vpop.f32.mrf.mxu1  ;;  %v1693_v21 = vadd.f32 %v1692_v26, %v1500_v48  ;;  %v1835_v44 = vmax.f32 %v1691_v41, 0.0 }
 0x1fd   :  { %v1696_v49 = vpop.f32.mrf.mxu0 }
 0x1fe   :  { %v5764_v11 = vpop.f32.mrf.mxu1  ;;  %3073 = vmatmul.mubr.bf16.gmra.mxu1 %v6390_v8  ;;  %v1836_v35 = vmax.f32 %v1693_v21, 0.0  ;;  %v5778_v3 = vpack.c.bf16 %v1835_v44, %v1831_v29  ;;  %v1697_v48 = vadd.f32 %v1696_v49, %v1504_v36  ;;  %v6392_v21 = vld [vmem:[#allocation21_spill] sm:$0xff]  ;;  %v1516_v36 = vadd.f32 %v5692_v14, %v5463_v30 }
 0x1ff   :  { %3080 = vmatprep.mubr.bf16.mxu1 %v6391_v24  ;;  %v1698_v52 = vpop.f32.mrf.mxu0  ;;  %v1518_v29 = vadd.f32 %v5703_v63, %v5455_v34 }
 0x200   :  { %v5770_v10 = vpop.f32.mrf.mxu1  ;;  %v5776_v6 = vpack.c.bf16 %v1836_v35, %v1832_v2  ;;  %v1699_v7 = vadd.f32 %v1698_v52, %v1506_v54  ;;  %v1514_v2 = vadd.f32 %v5685_v1, %v5455_v34  ;;  %v1839_v49 = vmax.f32 %v1697_v48, 0.0 }
 0x201   :  { %v1700_v57 = vpop.f32.mrf.mxu0  ;;  %v1520_v1 = vadd.f32 %v5709_v58, %v5463_v30  ;;  %v6395_v58 = vld [vmem:[#allocation24_spill] sm:$0xff] }
 0x202   :  { %v5780_v19 = vpop.f32.mrf.mxu1  ;;  %v1701_v51 = vadd.f32 %v1700_v57, %v1508_v18  ;;  %2919 = vmatprep.mubr.bf16.mxu0 %v5776_v6  ;;  %v1840_v44 = vmax.f32 %v1699_v7, 0.0 }
 0x203   :  { %v1702_v17 = vpop.f32.mrf.mxu0  ;;  %2920 = vmatmul.mubr.bf16.gmra.mxu0 %v5778_v3 }
 0x204   :  { %v5785_v62 = vpop.f32.mrf.mxu1  ;;  %v1703_v61 = vadd.f32 %v1702_v17, %v1510_v46  ;;  %v1843_v41 = vmax.f32 %v1701_v51, 0.0 }
 0x205   :  { %v1706_v26 = vpop.f32.mrf.mxu0 }
 0x206   :  { %v5788_v4 = vpop.f32.mrf.mxu1  ;;  %3081 = vmatmul.mubr.bf16.gmra.mxu1 %v6392_v21  ;;  %v1844_v8 = vmax.f32 %v1703_v61, 0.0  ;;  %v5802_v54 = vpack.c.bf16 %v1843_v41, %v1839_v49  ;;  %v1707_v51 = vadd.f32 %v1706_v26, %v1514_v2  ;;  %v6394_v21 = vld [vmem:[#allocation23_spill] sm:$0xff] }
 0x207   :  { %3088 = vmatprep.mubr.bf16.mxu1 %v6393_v60  ;;  %v1708_v24 = vpop.f32.mrf.mxu0  ;;  %v1524_v60 = vadd.f32 %v5713_v59, %v5455_v34  ;;  %v1530_v59 = vadd.f32 %v5737_v12, %v5463_v30  ;;  %v6399_v12 = vld [vmem:[#allocation26_spill] sm:$0xff] }
 0x208   :  { %v5794_v35 = vpop.f32.mrf.mxu1  ;;  %v5800_v52 = vpack.c.bf16 %v1844_v8, %v1840_v44  ;;  %v1709_v46 = vadd.f32 %v1708_v24, %v1516_v36  ;;  %v1847_v26 = vmax.f32 %v1707_v51, 0.0  ;;  %v1526_v24 = vadd.f32 %v5720_v37, %v5463_v30 }
 0x209   :  { %v1710_v57 = vpop.f32.mrf.mxu0  ;;  %v1528_v36 = vadd.f32 %v5731_v38, %v5455_v34 }
 0x20a   :  { %v5804_v18 = vpop.f32.mrf.mxu1  ;;  %v1711_v7 = vadd.f32 %v1710_v57, %v1518_v29  ;;  %2929 = vmatprep.mubr.bf16.mxu0 %v5800_v52  ;;  %v1848_v44 = vmax.f32 %v1709_v46, 0.0 }
 0x20b   :  { %v1712_v14 = vpop.f32.mrf.mxu0  ;;  %2930 = vmatmul.mubr.bf16.gmra.mxu0 %v5802_v54 }
 0x20c   :  { %v5809_v48 = vpop.f32.mrf.mxu1  ;;  %v1713_v63 = vadd.f32 %v1712_v14, %v1520_v1  ;;  %v1851_v17 = vmax.f32 %v1711_v7, 0.0 }
 0x20d   :  { %v1716_v41 = vpop.f32.mrf.mxu0 }
 0x20e   :  { %v5812_v61 = vpop.f32.mrf.mxu1  ;;  %3089 = vmatmul.mubr.bf16.gmra.mxu1 %v6394_v21  ;;  %v1852_v8 = vmax.f32 %v1713_v63, 0.0  ;;  %v5826_v57 = vpack.c.bf16 %v1851_v17, %v1847_v26  ;;  %v1717_v14 = vadd.f32 %v1716_v41, %v1524_v60 }
 0x20f   :  { %3096 = vmatprep.mubr.bf16.mxu1 %v6395_v58  ;;  %v1718_v49 = vpop.f32.mrf.mxu0 }
 0x210   :  { %v5818_v2 = vpop.f32.mrf.mxu1  ;;  %v5824_v29 = vpack.c.bf16 %v1852_v8, %v1848_v44  ;;  %6397 = vst [vmem:[#allocation17_spill] sm:$0xff] %v5826_v57  ;;  %v1719_v7 = vadd.f32 %v1718_v49, %v1526_v24  ;;  %v6398_v8 = vld [vmem:[#allocation25_spill] sm:$0xff]  ;;  %v1534_v49 = vadd.f32 %v5740_v13, %v5455_v34  ;;  %v1855_v41 = vmax.f32 %v1717_v14, 0.0 }
 0x211   :  { %v1720_v46 = vpop.f32.mrf.mxu0  ;;  %v1540_v13 = vadd.f32 %v5761_v5, %v5463_v30  ;;  %v6403_v5 = vld [vmem:[#allocation28_spill] sm:$0xff] }
 0x212   :  { %6396 = vst [vmem:[#allocation16_spill] sm:$0xff] %v5824_v29  ;;  %v5828_v1 = vpop.f32.mrf.mxu1  ;;  %v1721_v51 = vadd.f32 %v1720_v46, %v1528_v36  ;;  %2939 = vmatprep.mubr.bf16.mxu0 %v5824_v29  ;;  %v1856_v58 = vmax.f32 %v1719_v7, 0.0  ;;  %v1536_v36 = vadd.f32 %v5746_v42, %v5463_v30  ;;  %v1538_v46 = vadd.f32 %v5756_v50, %v5455_v34 }
 0x213   :  { %v1722_v37 = vpop.f32.mrf.mxu0  ;;  %2940 = vmatmul.mubr.bf16.gmra.mxu0 %v5826_v57 }
 0x214   :  { %v5833_v63 = vpop.f32.mrf.mxu1  ;;  %v1723_v38 = vadd.f32 %v1722_v37, %v1530_v59  ;;  %v1859_v21 = vmax.f32 %v1721_v51, 0.0 }
 0x215   :  { %v1726_v17 = vpop.f32.mrf.mxu0 }
 0x216   :  { %v5836_v44 = vpop.f32.mrf.mxu1  ;;  %3097 = vmatmul.mubr.bf16.gmra.mxu1 %v6398_v8  ;;  %v1860_v26 = vmax.f32 %v1723_v38, 0.0  ;;  %v5850_v51 = vpack.c.bf16 %v1859_v21, %v1855_v41  ;;  %v1727_v8 = vadd.f32 %v1726_v17, %v1534_v49  ;;  %v6402_v41 = vld [vmem:[#allocation27_spill] sm:$0xff] }
 0x217   :  { %3104 = vmatprep.mubr.bf16.mxu1 %v6399_v12  ;;  %v1728_v60 = vpop.f32.mrf.mxu0 }
 0x218   :  { %v5842_v24 = vpop.f32.mrf.mxu1  ;;  %v5848_v59 = vpack.c.bf16 %v1860_v26, %v1856_v58  ;;  %6401 = vst [vmem:[#allocation19_spill] sm:$0xff] %v5850_v51  ;;  %v1729_v14 = vadd.f32 %v1728_v60, %v1536_v36  ;;  %v1544_v60 = vadd.f32 %v5764_v11, %v5455_v34  ;;  %v1863_v17 = vmax.f32 %v1727_v8, 0.0 }
 0x219   :  { %v1730_v7 = vpop.f32.mrf.mxu0  ;;  %v1550_v11 = vadd.f32 %v5785_v62, %v5463_v30  ;;  %v6407_v62 = vld [vmem:[#allocation30_spill] sm:$0xff] }
 0x21a   :  { %6400 = vst [vmem:[#allocation18_spill] sm:$0xff] %v5848_v59  ;;  %v5852_v37 = vpop.f32.mrf.mxu1  ;;  %v1731_v38 = vadd.f32 %v1730_v7, %v1538_v46  ;;  %2949 = vmatprep.mubr.bf16.mxu0 %v5848_v59  ;;  %v1864_v57 = vmax.f32 %v1729_v14, 0.0  ;;  %v1546_v46 = vadd.f32 %v5770_v10, %v5463_v30  ;;  %v1548_v7 = vadd.f32 %v5780_v19, %v5455_v34 }
 0x21b   :  { %v1732_v12 = vpop.f32.mrf.mxu0  ;;  %2950 = vmatmul.mubr.bf16.gmra.mxu0 %v5850_v51 }
 0x21c   :  { %v5857_v42 = vpop.f32.mrf.mxu1  ;;  %v1733_v50 = vadd.f32 %v1732_v12, %v1540_v13  ;;  %v1867_v58 = vmax.f32 %v1731_v38, 0.0 }
 0x21d   :  { %v1736_v21 = vpop.f32.mrf.mxu0 }
 0x21e   :  { %v5860_v26 = vpop.f32.mrf.mxu1  ;;  %3105 = vmatmul.mubr.bf16.gmra.mxu1 %v6402_v41  ;;  %v1868_v29 = vmax.f32 %v1733_v50, 0.0  ;;  %v5874_v38 = vpack.c.bf16 %v1867_v58, %v1863_v17  ;;  %v1737_v41 = vadd.f32 %v1736_v21, %v1544_v60  ;;  %v6406_v17 = vld [vmem:[#allocation29_spill] sm:$0xff] }
 0x21f   :  { %3112 = vmatprep.mubr.bf16.mxu1 %v6403_v5  ;;  %v1738_v49 = vpop.f32.mrf.mxu0 }
 0x220   :  { %v5866_v36 = vpop.f32.mrf.mxu1  ;;  %v5872_v13 = vpack.c.bf16 %v1868_v29, %v1864_v57  ;;  %6405 = vst [vmem:[#allocation21_spill] sm:$0xff] %v5874_v38  ;;  %v1739_v8 = vadd.f32 %v1738_v49, %v1546_v46  ;;  %v1554_v49 = vadd.f32 %v5788_v4, %v5455_v34  ;;  %v1871_v21 = vmax.f32 %v1737_v41, 0.0 }
 0x221   :  { %v1740_v14 = vpop.f32.mrf.mxu0  ;;  %v1560_v4 = vadd.f32 %v5809_v48, %v5463_v30  ;;  %v6411_v48 = vld [vmem:[#allocation32_spill] sm:$0xff] }
 0x222   :  { %6404 = vst [vmem:[#allocation20_spill] sm:$0xff] %v5872_v13  ;;  %v5876_v12 = vpop.f32.mrf.mxu1  ;;  %v1741_v50 = vadd.f32 %v1740_v14, %v1548_v7  ;;  %2959 = vmatprep.mubr.bf16.mxu0 %v5872_v13  ;;  %v1872_v51 = vmax.f32 %v1739_v8, 0.0  ;;  %v1556_v7 = vadd.f32 %v5794_v35, %v5463_v30  ;;  %v1558_v14 = vadd.f32 %v5804_v18, %v5455_v34 }
 0x223   :  { %v1742_v5 = vpop.f32.mrf.mxu0  ;;  %2960 = vmatmul.mubr.bf16.gmra.mxu0 %v5874_v38 }
 0x224   :  { %v5881_v10 = vpop.f32.mrf.mxu1  ;;  %v1743_v19 = vadd.f32 %v1742_v5, %v1550_v11  ;;  %v1875_v29 = vmax.f32 %v1741_v50, 0.0 }
 0x225   :  { %v1746_v57 = vpop.f32.mrf.mxu0 }
 0x226   :  { %v5884_v58 = vpop.f32.mrf.mxu1  ;;  %3113 = vmatmul.mubr.bf16.gmra.mxu1 %v6406_v17  ;;  %v1876_v59 = vmax.f32 %v1743_v19, 0.0  ;;  %v5898_v50 = vpack.c.bf16 %v1875_v29, %v1871_v21  ;;  %v1747_v17 = vadd.f32 %v1746_v57, %v1554_v49  ;;  %v6410_v21 = vld [vmem:[#allocation31_spill] sm:$0xff] }
 0x227   :  { %3120 = vmatprep.mubr.bf16.mxu1 %v6407_v62  ;;  %v1748_v60 = vpop.f32.mrf.mxu0 }
 0x228   :  { %v5890_v46 = vpop.f32.mrf.mxu1  ;;  %v5896_v11 = vpack.c.bf16 %v1876_v59, %v1872_v51  ;;  %6409 = vst [vmem:[#allocation23_spill] sm:$0xff] %v5898_v50  ;;  %v1749_v41 = vadd.f32 %v1748_v60, %v1556_v7  ;;  %v1564_v60 = vadd.f32 %v5812_v61, %v5455_v34  ;;  %v1879_v57 = vmax.f32 %v1747_v17, 0.0 }
 0x229   :  { %v1750_v8 = vpop.f32.mrf.mxu0 }
 0x22a   :  { %6408 = vst [vmem:[#allocation22_spill] sm:$0xff] %v5896_v11  ;;  %v5900_v5 = vpop.f32.mrf.mxu1  ;;  %v1751_v19 = vadd.f32 %v1750_v8, %v1558_v14  ;;  %2969 = vmatprep.mubr.bf16.mxu0 %v5896_v11  ;;  %v1880_v38 = vmax.f32 %v1749_v41, 0.0  ;;  %v1566_v14 = vadd.f32 %v5818_v2, %v5463_v30  ;;  %v1568_v8 = vadd.f32 %v5828_v1, %v5455_v34  ;;  %v6413_v34 = vld [vmem:[#allocation33_spill] sm:$0xff] }
 0x22b   :  { %v1752_v62 = vpop.f32.mrf.mxu0  ;;  %2970 = vmatmul.mubr.bf16.gmra.mxu0 %v5898_v50 }
 0x22c   :  { %v5905_v35 = vpop.f32.mrf.mxu1  ;;  %v1753_v18 = vadd.f32 %v1752_v62, %v1560_v4  ;;  %v1883_v59 = vmax.f32 %v1751_v19, 0.0 }
 0x22d   :  { %v1756_v51 = vpop.f32.mrf.mxu0 }
 0x22e   :  { %v5908_v29 = vpop.f32.mrf.mxu1  ;;  %3121 = vmatmul.mubr.bf16.gmra.mxu1 %v6410_v21  ;;  %v1884_v13 = vmax.f32 %v1753_v18, 0.0  ;;  %v1951_v19 = vpack.c.bf16 %v1883_v59, %v1879_v57  ;;  %v1570_v18 = vadd.f32 %v5833_v63, %v5463_v30  ;;  %v1757_v17 = vadd.f32 %v1756_v51, %v1564_v60 }
 0x22f   :  { %3128 = vmatprep.mubr.bf16.mxu1 %v6411_v48  ;;  %v1758_v49 = vpop.f32.mrf.mxu0 }
 0x230   :  { %v5914_v7 = vpop.f32.mrf.mxu1  ;;  %v1952_v4 = vpack.c.bf16 %v1884_v13, %v1880_v38  ;;  %v1759_v21 = vadd.f32 %v1758_v49, %v1566_v14  ;;  %v6414_v38 = vld [vmem:[#allocation34_spill] sm:$0xff]  ;;  %v1887_v59 = vmax.f32 %v1757_v17, 0.0 }
 0x231   :  { %6412 = vst [vmem:[#allocation24_spill] sm:$0xff] %v5914_v7  ;;  %v1760_v62 = vpop.f32.mrf.mxu0 }
 0x232   :  { %v5920_v41 = vpop.f32.mrf.mxu1  ;;  %v1761_v61 = vadd.f32 %v1760_v62, %v1568_v8  ;;  %2979 = vmatprep.mubr.bf16.mxu0 %v1952_v4  ;;  %v1888_v1 = vmax.f32 %v1759_v21, 0.0 }
 0x233   :  { %v1762_v48 = vpop.f32.mrf.mxu0  ;;  %2980 = vmatmul.mubr.bf16.gmra.mxu0 %v1951_v19 }
 0x234   :  { %v5924_v50 = vpop.f32.mrf.mxu1  ;;  %v1763_v2 = vadd.f32 %v1762_v48, %v1570_v18  ;;  %v1891_v11 = vmax.f32 %v1761_v61, 0.0 }
 0x236   :  { %v5926_v7 = vpop.f32.mrf.mxu1  ;;  %3129 = vmatmul.mubr.bf16.gmra.mxu1 %v6413_v34  ;;  %v1892_v13 = vmax.f32 %v1763_v2, 0.0  ;;  %v1955_v57 = vpack.c.bf16 %v1891_v11, %v1887_v59 }
 0x237   :  { %3136 = vmatprep.mubr.bf16.mxu1 %v6414_v38 }
 0x238   :  { %v5930_v30 = vpop.f32.mrf.mxu1  ;;  %v1956_v63 = vpack.c.bf16 %v1892_v13, %v1888_v1  ;;  %v6422_v13 = vld [vmem:[#allocation15_spill] sm:$0xff] }
 0x239   :  { %v6423_v38 = vsub.s32 0, %v6422_v13 }
 0x23a   :  { %v5932_v51 = vpop.f32.mrf.mxu1  ;;  %2989 = vmatprep.mubr.bf16.mxu0 %v1956_v63 }
 0x23b   :  { %2990 = vmatmul.mubr.bf16.gmra.mxu0 %v1955_v57 }
 0x23c   :  { %v5934_v60 = vpop.f32.mrf.mxu1  ;;  %3193 = vmatprep.mubr.bf16.mxu0 %v5514_v32 }
 0x23e   :  { %v5937_v49 = vpop.f32.mrf.mxu1  ;;  %3137 = vmatmul.mubr.bf16.gmra.mxu1 %v5491_v22 }
 0x23f   :  { %3144 = vmatprep.mubr.bf16.mxu1 %v5497_v40 }
 0x240   :  { %v5941_v14 = vpop.f32.mrf.mxu1 }
 0x242   :  { %v5943_v8 = vpop.f32.mrf.mxu1 }
 0x243   :  { %3194 = vmatmul.mubr.bf16.vlgmr.msra.gmra.mxu0 %v5520_v15 }
 0x244   :  { %v5945_v62 = vpop.f32.mrf.mxu1  ;;  %3201 = vmatprep.mubr.bf16.mxu0 %v5556_v28 }
 0x246   :  { %v5949_v11 = vpop.f32.mrf.mxu1  ;;  %3145 = vmatmul.mubr.bf16.gmra.mxu1 %v5529_v56 }
 0x247   :  { %3152 = vmatprep.mubr.bf16.mxu1 %v5536_v47 }
 0x248   :  { %v5953_v32 = vpop.f32.mrf.mxu1 }
 0x24a   :  { %v5955_v22 = vpop.f32.mrf.mxu1 }
 0x24b   :  { %3202 = vmatmul.mubr.bf16.gmra.mxu0 %v5561_v55 }
 0x24c   :  { %v5957_v40 = vpop.f32.mrf.mxu1  ;;  %3209 = vmatprep.mubr.bf16.mxu0 %v5594_v45 }
 0x24e   :  { %v5961_v18 = vpop.f32.mrf.mxu1  ;;  %3153 = vmatmul.mubr.bf16.gmra.mxu1 %v5571_v16 }
 0x24f   :  { %3305 = vmatprep.mubr.bf16.mxu1 %v1952_v4 }
 0x250   :  { %v5964_v15 = vpop.f32.mrf.mxu1 }
 0x252   :  { %v5966_v56 = vpop.f32.mrf.mxu1 }
 0x253   :  { %3210 = vmatmul.mubr.bf16.gmra.mxu0 %v5599_v23 }
 0x254   :  { %v5968_v47 = vpop.f32.mrf.mxu1  ;;  %3217 = vmatprep.mubr.bf16.mxu0 %v5632_v31 }
 0x256   :  { %v5972_v28 = vpop.f32.mrf.mxu1  ;;  %3306 = vmatmul.mubr.bf16.vlgmr.msra.gmra.mxu1 %v1951_v19 }
 0x257   :  { %3313 = vmatprep.mubr.bf16.mxu1 %v1956_v63  ;;  %v6424_v63 = vsub.s32 1, %v6422_v13 }
 0x258   :  { %v5974_v55 = vpop.f32.mrf.mxu1 }
 0x25a   :  { %v5976_v45 = vpop.f32.mrf.mxu1 }
 0x25b   :  { %3218 = vmatmul.mubr.bf16.gmra.mxu0 %v5637_v0 }
 0x25c   :  { %v5978_v16 = vpop.f32.mrf.mxu1  ;;  %3225 = vmatprep.mubr.bf16.mxu0 %v5670_v27 }
 0x25e   :  { %v5982_v4 = vpop.f32.mrf.mxu1  ;;  %3314 = vmatmul.mubr.bf16.gmra.mxu1 %v1955_v57 }
 0x260   :  { %v5984_v23 = vpop.f32.mrf.mxu1 }
 0x262   :  { %v5986_v31 = vpop.f32.mrf.mxu1 }
 0x263   :  { %3226 = vmatmul.mubr.bf16.gmra.mxu0 %v5673_v25 }
 0x264   :  { %v5988_v21 = vpop.f32.mrf.mxu1  ;;  %3233 = vmatprep.mubr.bf16.mxu0 %v5699_v39 }
 0x266   :  { %v5992_v19 = vpop.f32.mrf.mxu1 }
 0x268   :  { %v5994_v61 = vpop.f32.mrf.mxu1 }
 0x26a   :  { %v5996_v0 = vpop.f32.mrf.mxu1 }
 0x26b   :  { %3234 = vmatmul.mubr.bf16.gmra.mxu0 %v5701_v33 }
 0x26c   :  { %v5998_v27 = vpop.f32.mrf.mxu1  ;;  %3241 = vmatprep.mubr.bf16.mxu0 %v5727_v43  ;;  %v6025_v43 = vld [vmem:[%s6331_s4] sm:$0x7]  ;;  %s4798_s4 = smov [#allocation10]  }
 0x26d   :  { %6419 = vst [vmem:[#allocation29_spill] sm:$0xff] %v6025_v43  ;;  %v6034_v59 = vrot.slane %v6025_v43, %v6423_v38  ;;  %s3711_s15 = sshll.u32 %s4798_s4, 4  ;;  %s3712_s15 = int_to_ptr.vmem [resolvable:$true] %s3711_s15 }
 0x26e   :  { %v6002_v17 = vpop.f32.mrf.mxu1  ;;  %s4761_s16 = scalar_lea.vmem %s3712_s15, 6144  ;;  %p4766_p7 = scmp.lt.s32.totalorder %s3712_s15, %s3712_s15 }
 0x26f   :  { %p4762_p6 = scmp.ne.s32.totalorder %s3712_s15, %s4761_s16  ;;  %p4767_p8 = scmp.lt.s32.totalorder %s4761_s16, %s4761_s16 }
 0x270   :  { %v6004_v48 = vpop.f32.mrf.mxu1 }
 0x271   :  { %p4768_p9 = por %p4767_p8, %p4766_p7 }
 0x272   :  { %v6006_v2 = vpop.f32.mrf.mxu1 }
 0x273   :  { %3242 = vmatmul.mubr.bf16.gmra.mxu0 %v5729_v53  ;;  %p4769_p10 = pnand %p4768_p9, %p4762_p6 }
 0x274   :  { %v6008_v25 = vpop.f32.mrf.mxu1  ;;  %3249 = vmatprep.mubr.bf16.mxu0 %v5752_v20 }
 0x276   :  { %v6012_v39 = vpop.f32.mrf.mxu1 }
 0x277   :  { %6415 = vst [vmem:[#allocation25_spill] sm:$0xff] %v6012_v39 }
 0x278   :  { %v6014_v34 = vpop.f32.mrf.mxu1 }
 0x279   :  { %6416 = vst [vmem:[#allocation26_spill] sm:$0xff] %v6014_v34 }
 0x27a   :  { %v6016_v1 = vpop.f32.mrf.mxu1 }
 0x27b   :  { %6417 = vst [vmem:[#allocation27_spill] sm:$0xff] %v6016_v1  ;;  %3250 = vmatmul.mubr.bf16.gmra.mxu0 %v5754_v9  ;;  %v6039_v9 = vrot.slane %v6025_v43, %v6424_v63 }
 0x27c   :  { %v6018_v33 = vpop.f32.mrf.mxu1  ;;  %3257 = vmatprep.mubr.bf16.mxu0 %v5776_v6 }
 0x27d   :  { %6418 = vst [vmem:[#allocation28_spill] sm:$0xff] %v6018_v33 }
 0x27e   :  { %v6027_v53 = vpop.f32.mrf.mxu1 }
 0x27f   :  { %6420 = vst [vmem:[#allocation30_spill] sm:$0xff] %v6027_v53  ;;  %v2651_v53 = vadd.f32 %v5842_v24, %v6039_v9 }
 0x280   :  { %v6029_v20 = vpop.f32.mrf.mxu1 }
 0x281   :  { %6421 = vst [vmem:[#allocation31_spill] sm:$0xff] %v6029_v20  ;;  %v2649_v20 = vadd.f32 %v5836_v44, %v6034_v59 }
 0x282   :  { %v6041_v6 = vpop.f32.mrf.mxu1 }
 0x283   :  { %6425 = vst [vmem:[#allocation32_spill] sm:$0xff] %v6041_v6  ;;  %v2841_v33 = vpop.f32.mrf.mxu0  ;;  %3258 = vmatmul.mubr.bf16.gmra.mxu0 %v5778_v3  ;;  %v2655_v3 = vadd.f32 %v5857_v42, %v6039_v9  ;;  %v6428_v42 = vld [vmem:[#allocation16_spill] sm:$0xff] }
 0x284   :  { %v6043_v57 = vpop.f32.mrf.mxu1  ;;  %3265 = vmatprep.mubr.bf16.mxu0 %v5800_v52  ;;  %v2842_v63 = vadd.f32 %v2841_v33, %v2649_v20 }
 0x285   :  { %6426 = vst [vmem:[#allocation33_spill] sm:$0xff] %v6043_v57  ;;  %v2843_v13 = vpop.f32.mrf.mxu0  ;;  %v2653_v57 = vadd.f32 %v5852_v37, %v6034_v59  ;;  %v2661_v37 = vadd.f32 %v5866_v36, %v6039_v9 }
 0x286   :  { %v6051_v38 = vpop.f32.mrf.mxu1  ;;  %v2844_v43 = vadd.f32 %v2843_v13, %v2651_v53  ;;  %v2659_v53 = vadd.f32 %v5860_v26, %v6034_v59  ;;  %v2665_v26 = vadd.f32 %v5881_v10, %v6039_v9  ;;  %v6431_v10 = vld [vmem:[#allocation18_spill] sm:$0xff] }
 0x287   :  { %6427 = vst [vmem:[#allocation34_spill] sm:$0xff] %v6051_v38  ;;  %v2845_v6 = vpop.f32.mrf.mxu0 }
 0x288   :  { %v6053_v1 = vpop.f32.mrf.mxu1  ;;  %v4029_v44 = vpack.c.bf16 %v2844_v43, %v2842_v63  ;;  %v2846_v52 = vadd.f32 %v2845_v6, %v2653_v57 }
 0x289   :  { %v2847_v24 = vpop.f32.mrf.mxu0 }
 0x28a   :  { %v6059_v34 = vpop.f32.mrf.mxu1  ;;  %3642 = vst [vmem:[#allocation10] sm:$0xff] %v4029_v44  ;;  %v2848_v39 = vadd.f32 %v2847_v24, %v2655_v3 }
 0x28b   :  { %v2851_v33 = vpop.f32.mrf.mxu0  ;;  %3266 = vmatmul.mubr.bf16.gmra.mxu0 %v5802_v54  ;;  %v2663_v54 = vadd.f32 %v5876_v12, %v6034_v59  ;;  %v2671_v12 = vadd.f32 %v5890_v46, %v6039_v9 }
 0x28c   :  { %v6061_v38 = vpop.f32.mrf.mxu1  ;;  %v4031_v20 = vpack.c.bf16 %v2848_v39, %v2846_v52  ;;  %3273 = vmatprep.mubr.bf16.mxu0 %v6428_v42  ;;  %v2852_v6 = vadd.f32 %v2851_v33, %v2659_v53  ;;  %v6430_v53 = vld [vmem:[#allocation17_spill] sm:$0xff] }
 0x28d   :  { %v2853_v13 = vpop.f32.mrf.mxu0 }
 0x28e   :  { %v6069_v43 = vpop.f32.mrf.mxu1  ;;  %3644 = vst [vmem:[#allocation10 + $0xc] sm:$0xff] %v4031_v20  ;;  %v2854_v57 = vadd.f32 %v2853_v13, %v2661_v37  ;;  %v2669_v37 = vadd.f32 %v5884_v58, %v6034_v59 }
 0x28f   :  { %v2855_v3 = vpop.f32.mrf.mxu0 }
 0x290   :  { %v6071_v63 = vpop.f32.mrf.mxu1  ;;  %v4033_v44 = vpack.c.bf16 %v2854_v57, %v2852_v6  ;;  %v2856_v24 = vadd.f32 %v2855_v3, %v2663_v54 }
 0x291   :  { %v2857_v39 = vpop.f32.mrf.mxu0 }
 0x292   :  { %v6077_v36 = vpop.f32.mrf.mxu1  ;;  %3646 = vst [vmem:[#allocation10 + $0x18] sm:$0xff] %v4033_v44  ;;  %v2858_v52 = vadd.f32 %v2857_v39, %v2665_v26  ;;  %v2673_v44 = vadd.f32 %v5900_v5, %v6034_v59  ;;  %v2675_v39 = vadd.f32 %v5905_v35, %v6039_v9  ;;  %v6433_v5 = vld [vmem:[#allocation24_spill] sm:$0xff] }
 0x293   :  { %v2861_v33 = vpop.f32.mrf.mxu0  ;;  %3274 = vmatmul.mubr.bf16.gmra.mxu0 %v6430_v53 }
 0x294   :  { %v6079_v42 = vpop.f32.mrf.mxu1  ;;  %v4035_v20 = vpack.c.bf16 %v2858_v52, %v2856_v24  ;;  %3281 = vmatprep.mubr.bf16.mxu0 %v6431_v10  ;;  %v2862_v57 = vadd.f32 %v2861_v33, %v2669_v37  ;;  %v6432_v33 = vld [vmem:[#allocation19_spill] sm:$0xff]  ;;  %v2679_v37 = vadd.f32 %v5908_v29, %v6034_v59  ;;  %v2685_v29 = vadd.f32 %v5924_v50, %v6039_v9 }
 0x295   :  { %6429 = vst [vmem:[#allocation16_spill] sm:$0xff] %v6079_v42  ;;  %v2863_v13 = vpop.f32.mrf.mxu0 }
 0x296   :  { %v4109_v6 = vpop.f32.mrf.mxu1  ;;  %3648 = vst [vmem:[#allocation10 + $0x24] sm:$0xff] %v4035_v20  ;;  %v2864_v3 = vadd.f32 %v2863_v13, %v2671_v12  ;;  %v2681_v12 = vadd.f32 %v6433_v5, %v6039_v9 }
 0x297   :  { %v2865_v54 = vpop.f32.mrf.mxu0 }
 0x298   :  { %v4110_v26 = vpop.f32.mrf.mxu1  ;;  %v4037_v58 = vpack.c.bf16 %v2864_v3, %v2862_v57  ;;  %v2866_v52 = vadd.f32 %v2865_v54, %v2673_v44 }
 0x299   :  { %v6091_v53 = vadd.f32 %v4110_v26, %v4109_v6  ;;  %v2867_v46 = vpop.f32.mrf.mxu0  ;;  %v6434_v6 = vld [vmem:[#allocation20_spill] sm:$0xff] }
 0x29a   :  { %v4112_v24 = vpop.f32.mrf.mxu1  ;;  %3650 = vst [vmem:[#allocation10 + $0x30] sm:$0xff] %v4037_v58  ;;  %v2868_v10 = vadd.f32 %v2867_v46, %v2675_v39  ;;  %v2683_v58 = vadd.f32 %v5920_v41, %v6034_v59  ;;  %v2691_v41 = vadd.f32 %v5930_v30, %v6039_v9 }
 0x29b   :  { %v2871_v42 = vpop.f32.mrf.mxu0  ;;  %3282 = vmatmul.mubr.bf16.gmra.mxu0 %v6432_v33 }
 0x29c   :  { %v4113_v20 = vpop.f32.mrf.mxu1  ;;  %v4039_v13 = vpack.c.bf16 %v2868_v10, %v2866_v52  ;;  %3289 = vmatprep.mubr.bf16.mxu0 %v6434_v6  ;;  %v2872_v54 = vadd.f32 %v2871_v42, %v2679_v37  ;;  %v6435_v42 = vld [vmem:[#allocation21_spill] sm:$0xff]  ;;  %v2689_v37 = vadd.f32 %v5926_v7, %v6034_v59  ;;  %v6436_v6 = vld [vmem:[#allocation22_spill] sm:$0xff]  ;;  %v2695_v7 = vadd.f32 %v5934_v60, %v6039_v9 }
 0x29d   :  { %v6098_v35 = vadd.f32 %v4113_v20, %v4112_v24  ;;  %v2873_v57 = vpop.f32.mrf.mxu0 }
 0x29e   :  { %v4115_v3 = vpop.f32.mrf.mxu1  ;;  %3652 = vst [vmem:[#allocation10 + $0x3c] sm:$0xff] %v4039_v13  ;;  %v2874_v26 = vadd.f32 %v2873_v57, %v2681_v12 }
 0x29f   :  { %v2875_v44 = vpop.f32.mrf.mxu0 }
 0x2a0   :  { %v4116_v39 = vpop.f32.mrf.mxu1  ;;  %v4041_v46 = vpack.c.bf16 %v2874_v26, %v2872_v54  ;;  %v2876_v10 = vadd.f32 %v2875_v44, %v2683_v58  ;;  %v2693_v58 = vadd.f32 %v5932_v51, %v6034_v59  ;;  %v2701_v51 = vadd.f32 %v5941_v14, %v6039_v9 }
 0x2a1   :  { %v6105_v33 = vadd.f32 %v4116_v39, %v4115_v3  ;;  %v2877_v24 = vpop.f32.mrf.mxu0 }
 0x2a2   :  { %v4118_v52 = vpop.f32.mrf.mxu1  ;;  %3654 = vst [vmem:[#allocation10 + $0x48] sm:$0xff] %v4041_v46  ;;  %v2878_v20 = vadd.f32 %v2877_v24, %v2685_v29 }
 0x2a3   :  { %v2881_v5 = vpop.f32.mrf.mxu0  ;;  %3290 = vmatmul.mubr.bf16.gmra.mxu0 %v6435_v42  ;;  %v2699_v42 = vadd.f32 %v5937_v49, %v6034_v59 }
 0x2a4   :  { %v4119_v13 = vpop.f32.mrf.mxu1  ;;  %v4043_v12 = vpack.c.bf16 %v2878_v20, %v2876_v10  ;;  %3297 = vmatprep.mubr.bf16.mxu0 %v6436_v6  ;;  %v2882_v54 = vadd.f32 %v2881_v5, %v2689_v37  ;;  %v6437_v5 = vld [vmem:[#allocation23_spill] sm:$0xff] }
 0x2a5   :  { %v6112_v50 = vadd.f32 %v4119_v13, %v4118_v52  ;;  %v2883_v57 = vpop.f32.mrf.mxu0 }
 0x2a6   :  { %v4121_v3 = vpop.f32.mrf.mxu1  ;;  %3656 = vst [vmem:[#allocation10 + $0x54] sm:$0xff] %v4043_v12  ;;  %v2884_v26 = vadd.f32 %v2883_v57, %v2691_v41 }
 0x2a7   :  { %v2885_v44 = vpop.f32.mrf.mxu0 }
 0x2a8   :  { %v4122_v39 = vpop.f32.mrf.mxu1  ;;  %v4045_v29 = vpack.c.bf16 %v2884_v26, %v2882_v54  ;;  %v2886_v52 = vadd.f32 %v2885_v44, %v2693_v58  ;;  %v2703_v26 = vadd.f32 %v5943_v8, %v6034_v59  ;;  %v2705_v44 = vadd.f32 %v5945_v62, %v6039_v9 }
 0x2a9   :  { %v6119_v30 = vadd.f32 %v4122_v39, %v4121_v3  ;;  %v2887_v46 = vpop.f32.mrf.mxu0 }
 0x2aa   :  { %v4124_v24 = vpop.f32.mrf.mxu1  ;;  %3658 = vst [vmem:[#allocation10 + $0x60] sm:$0xff] %v4045_v29  ;;  %v2888_v10 = vadd.f32 %v2887_v46, %v2695_v7 }
 0x2ab   :  { %v2891_v20 = vpop.f32.mrf.mxu0  ;;  %3298 = vmatmul.mubr.bf16.gmra.mxu0 %v6437_v5 }
 0x2ac   :  { %v4125_v13 = vpop.f32.mrf.mxu1  ;;  %v4047_v37 = vpack.c.bf16 %v2888_v10, %v2886_v52  ;;  %v2892_v6 = vadd.f32 %v2891_v20, %v2699_v42  ;;  %v2709_v52 = vadd.f32 %v5949_v11, %v6034_v59  ;;  %v2711_v10 = vadd.f32 %v5953_v32, %v6039_v9 }
 0x2ad   :  { %v6126_v60 = vadd.f32 %v4125_v13, %v4124_v24  ;;  %v2893_v41 = vpop.f32.mrf.mxu0 }
 0x2ae   :  { %v4127_v12 = vpop.f32.mrf.mxu1  ;;  %3660 = vst [vmem:[#allocation10 + $0x6c] sm:$0xff] %v4047_v37  ;;  %v2894_v57 = vadd.f32 %v2893_v41, %v2701_v51  ;;  %v2713_v41 = vadd.f32 %v5955_v22, %v6034_v59 }
 0x2af   :  { %v2895_v3 = vpop.f32.mrf.mxu0 }
 0x2b0   :  { %v4128_v54 = vpop.f32.mrf.mxu1  ;;  %v4049_v49 = vpack.c.bf16 %v2894_v57, %v2892_v6  ;;  %v2896_v7 = vadd.f32 %v2895_v3, %v2703_v26 }
 0x2b1   :  { %v6132_v39 = vadd.f32 %v4128_v54, %v4127_v12  ;;  %v2897_v14 = vpop.f32.mrf.mxu0  ;;  %v2715_v12 = vadd.f32 %v5957_v40, %v6039_v9 }
 0x2b2   :  { %v4130_v58 = vpop.f32.mrf.mxu1  ;;  %3662 = vst [vmem:[#allocation10 + $0x78] sm:$0xff] %v4049_v49  ;;  %v2898_v29 = vadd.f32 %v2897_v14, %v2705_v44  ;;  %v2719_v49 = vadd.f32 %v5961_v18, %v6034_v59  ;;  %v2721_v14 = vadd.f32 %v5964_v15, %v6039_v9 }
 0x2b3   :  { %v2901_v46 = vpop.f32.mrf.mxu0 }
 0x2b4   :  { %v4131_v24 = vpop.f32.mrf.mxu1  ;;  %v4051_v8 = vpack.c.bf16 %v2898_v29, %v2896_v7  ;;  %v2902_v5 = vadd.f32 %v2901_v46, %v2709_v52 }
 0x2b5   :  { %v6138_v20 = vadd.f32 %v4131_v24, %v4130_v58  ;;  %v2903_v62 = vpop.f32.mrf.mxu0 }
 0x2b6   :  { %v4133_v13 = vpop.f32.mrf.mxu1  ;;  %3664 = vst [vmem:[#allocation10 + $0x84] sm:$0xff] %v4051_v8  ;;  %v2904_v42 = vadd.f32 %v2903_v62, %v2711_v10  ;;  %v2723_v10 = vadd.f32 %v5966_v56, %v6034_v59  ;;  %v2725_v8 = vadd.f32 %v5968_v47, %v6039_v9 }
 0x2b7   :  { %v2905_v51 = vpop.f32.mrf.mxu0 }
 0x2b8   :  { %v4134_v37 = vpop.f32.mrf.mxu1  ;;  %v4053_v11 = vpack.c.bf16 %v2904_v42, %v2902_v5  ;;  %v2906_v3 = vadd.f32 %v2905_v51, %v2713_v41  ;;  %v2729_v41 = vadd.f32 %v5972_v28, %v6034_v59 }
 0x2b9   :  { %v6144_v6 = vadd.f32 %v4134_v37, %v4133_v13  ;;  %v2907_v32 = vpop.f32.mrf.mxu0 }
 0x2ba   :  { %v4136_v57 = vpop.f32.mrf.mxu1  ;;  %3666 = vst [vmem:[#allocation10 + $0x90] sm:$0xff] %v4053_v11  ;;  %v2908_v54 = vadd.f32 %v2907_v32, %v2715_v12  ;;  %v2731_v12 = vadd.f32 %v5974_v55, %v6039_v9 }
 0x2bb   :  { %v2911_v26 = vpop.f32.mrf.mxu0 }
 0x2bc   :  { %v4137_v44 = vpop.f32.mrf.mxu1  ;;  %v4055_v22 = vpack.c.bf16 %v2908_v54, %v2906_v3  ;;  %v2912_v29 = vadd.f32 %v2911_v26, %v2719_v49  ;;  %v2735_v49 = vadd.f32 %v5978_v16, %v6039_v9 }
 0x2bd   :  { %v6150_v58 = vadd.f32 %v4137_v44, %v4136_v57  ;;  %v2913_v40 = vpop.f32.mrf.mxu0  ;;  %v2733_v44 = vadd.f32 %v5976_v45, %v6034_v59 }
 0x2be   :  { %v4139_v7 = vpop.f32.mrf.mxu1  ;;  %3668 = vst [vmem:[#allocation10 + $0x9c] sm:$0xff] %v4055_v22  ;;  %v2914_v46 = vadd.f32 %v2913_v40, %v2721_v14 }
 0x2bf   :  { %v2915_v24 = vpop.f32.mrf.mxu0 }
 0x2c0   :  { %v4140_v52 = vpop.f32.mrf.mxu1  ;;  %v4057_v18 = vpack.c.bf16 %v2914_v46, %v2912_v29  ;;  %v2916_v5 = vadd.f32 %v2915_v24, %v2723_v10  ;;  %v2739_v24 = vadd.f32 %v5982_v4, %v6034_v59 }
 0x2c1   :  { %v6156_v62 = vadd.f32 %v4140_v52, %v4139_v7  ;;  %v2917_v15 = vpop.f32.mrf.mxu0  ;;  %v2741_v52 = vadd.f32 %v5984_v23, %v6039_v9 }
 0x2c2   :  { %v4142_v13 = vpop.f32.mrf.mxu1  ;;  %3670 = vst [vmem:[#allocation10 + $0xa8] sm:$0xff] %v4057_v18  ;;  %v2918_v42 = vadd.f32 %v2917_v15, %v2725_v8 }
 0x2c3   :  { %v2921_v51 = vpop.f32.mrf.mxu0 }
 0x2c4   :  { %v4143_v37 = vpop.f32.mrf.mxu1  ;;  %v4059_v56 = vpack.c.bf16 %v2918_v42, %v2916_v5  ;;  %v2922_v57 = vadd.f32 %v2921_v51, %v2729_v41  ;;  %v2743_v42 = vadd.f32 %v5986_v31, %v6034_v59  ;;  %v2745_v51 = vadd.f32 %v5988_v21, %v6039_v9 }
 0x2c5   :  { %v6162_v11 = vadd.f32 %v4143_v37, %v4142_v13  ;;  %v2923_v47 = vpop.f32.mrf.mxu0 }
 0x2c6   :  { %v4145_v32 = vpop.f32.mrf.mxu1  ;;  %3672 = vst [vmem:[#allocation10 + $0xb4] sm:$0xff] %v4059_v56  ;;  %v2924_v3 = vadd.f32 %v2923_v47, %v2731_v12 }
 0x2c7   :  { %v2925_v54 = vpop.f32.mrf.mxu0 }
 0x2c8   :  { %v4146_v26 = vpop.f32.mrf.mxu1  ;;  %v4061_v28 = vpack.c.bf16 %v2924_v3, %v2922_v57  ;;  %v2926_v40 = vadd.f32 %v2925_v54, %v2733_v44  ;;  %v2749_v57 = vadd.f32 %v5992_v19, %v6034_v59  ;;  %v2751_v3 = vadd.f32 %v5994_v61, %v6039_v9 }
 0x2c9   :  { %v6168_v14 = vadd.f32 %v4146_v26, %v4145_v32  ;;  %v2927_v55 = vpop.f32.mrf.mxu0 }
 0x2ca   :  { %v4148_v22 = vpop.f32.mrf.mxu1  ;;  %3674 = vst [vmem:[#allocation10 + $0xc0] sm:$0xff] %v4061_v28  ;;  %v2928_v7 = vadd.f32 %v2927_v55, %v2735_v49 }
 0x2cb   :  { %v2931_v29 = vpop.f32.mrf.mxu0 }
 0x2cc   :  { %v4149_v46 = vpop.f32.mrf.mxu1  ;;  %v4063_v45 = vpack.c.bf16 %v2928_v7, %v2926_v40  ;;  %v2932_v18 = vadd.f32 %v2931_v29, %v2739_v24  ;;  %v2755_v40 = vadd.f32 %v5998_v27, %v6039_v9 }
 0x2cd   :  { %v6174_v10 = vadd.f32 %v4149_v46, %v4148_v22  ;;  %v2933_v16 = vpop.f32.mrf.mxu0  ;;  %v2753_v22 = vadd.f32 %v5996_v0, %v6034_v59 }
 0x2ce   :  { %v4151_v8 = vpop.f32.mrf.mxu1  ;;  %3676 = vst [vmem:[#allocation10 + $0xcc] sm:$0xff] %v4063_v45  ;;  %v2934_v15 = vadd.f32 %v2933_v16, %v2741_v52  ;;  %v2759_v16 = vadd.f32 %v6002_v17, %v6034_v59 }
 0x2cf   :  { %v2935_v13 = vpop.f32.mrf.mxu0 }
 0x2d0   :  { %v4152_v5 = vpop.f32.mrf.mxu1  ;;  %v4065_v4 = vpack.c.bf16 %v2934_v15, %v2932_v18  ;;  %v2936_v12 = vadd.f32 %v2935_v13, %v2743_v42 }
 0x2d1   :  { %v6180_v37 = vadd.f32 %v4152_v5, %v4151_v8  ;;  %v2937_v23 = vpop.f32.mrf.mxu0  ;;  %v2761_v8 = vadd.f32 %v6004_v48, %v6039_v9 }
 0x2d2   :  { %v4154_v41 = vpop.f32.mrf.mxu1  ;;  %3678 = vst [vmem:[#allocation10 + $0xd8] sm:$0xff] %v4065_v4  ;;  %v2938_v56 = vadd.f32 %v2937_v23, %v2745_v51  ;;  %v2763_v4 = vadd.f32 %v6006_v2, %v6034_v59  ;;  %v2765_v23 = vadd.f32 %v6008_v25, %v6039_v9 }
 0x2d3   :  { %v2941_v47 = vpop.f32.mrf.mxu0 }
 0x2d4   :  { %v4155_v32 = vpop.f32.mrf.mxu1  ;;  %v4067_v31 = vpack.c.bf16 %v2938_v56, %v2936_v12  ;;  %v2942_v44 = vadd.f32 %v2941_v47, %v2749_v57 }
 0x2d5   :  { %v6186_v54 = vadd.f32 %v4155_v32, %v4154_v41  ;;  %v2943_v21 = vpop.f32.mrf.mxu0 }
 0x2d6   :  { %v4157_v26 = vpop.f32.mrf.mxu1  ;;  %3680 = vst [vmem:[#allocation10 + $0xe4] sm:$0xff] %v4067_v31  ;;  %v2944_v49 = vadd.f32 %v2943_v21, %v2751_v3  ;;  %v6438_v3 = vld [vmem:[#allocation25_spill] sm:$0xff]  ;;  %v6439_v21 = vld [vmem:[#allocation26_spill] sm:$0xff] }
 0x2d7   :  { %v2945_v28 = vpop.f32.mrf.mxu0  ;;  %v2769_v31 = vadd.f32 %v6438_v3, %v6034_v59 }
 0x2d8   :  { %v4158_v55 = vpop.f32.mrf.mxu1  ;;  %v4069_v19 = vpack.c.bf16 %v2944_v49, %v2942_v44  ;;  %v2946_v46 = vadd.f32 %v2945_v28, %v2753_v22 }
 0x2d9   :  { %v6192_v7 = vadd.f32 %v4158_v55, %v4157_v26  ;;  %v2947_v61 = vpop.f32.mrf.mxu0  ;;  %v2771_v26 = vadd.f32 %v6439_v21, %v6039_v9 }
 0x2da   :  { %v4160_v29 = vpop.f32.mrf.mxu1  ;;  %3682 = vst [vmem:[#allocation10 + $0xf0] sm:$0xff] %v4069_v19  ;;  %v2948_v24 = vadd.f32 %v2947_v61, %v2755_v40  ;;  %v6440_v19 = vld [vmem:[#allocation27_spill] sm:$0xff] }
 0x2db   :  { %v2951_v52 = vpop.f32.mrf.mxu0  ;;  %v2773_v61 = vadd.f32 %v6440_v19, %v6034_v59  ;;  %v6446_v19 = vld [vmem:[#allocation34_spill] sm:$0xff] }
 0x2dc   :  { %v4161_v45 = vpop.f32.mrf.mxu1  ;;  %v4071_v0 = vpack.c.bf16 %v2948_v24, %v2946_v46  ;;  %v2952_v13 = vadd.f32 %v2951_v52, %v2759_v16 }
 0x2dd   :  { %v6198_v18 = vadd.f32 %v4161_v45, %v4160_v29  ;;  %v2953_v27 = vpop.f32.mrf.mxu0  ;;  %v6441_v29 = vld [vmem:[#allocation28_spill] sm:$0xff] }
 0x2de   :  { %v4163_v15 = vpop.f32.mrf.mxu1  ;;  %3684 = vst [vmem:[#allocation10 + $0xfc] sm:$0xff] %v4071_v0  ;;  %v2954_v5 = vadd.f32 %v2953_v27, %v2761_v8  ;;  %v2775_v46 = vadd.f32 %v6441_v29, %v6039_v9  ;;  %v2791_v29 = vadd.f32 %v6053_v1, %v6039_v9 }
 0x2df   :  { %v2955_v42 = vpop.f32.mrf.mxu0 }
 0x2e0   :  { %v4164_v51 = vpop.f32.mrf.mxu1  ;;  %v4073_v17 = vpack.c.bf16 %v2954_v5, %v2952_v13  ;;  %v2956_v56 = vadd.f32 %v2955_v42, %v2763_v4  ;;  %v6442_v13 = vld [vmem:[#allocation30_spill] sm:$0xff]  ;;  %v6443_v42 = vld [vmem:[#allocation31_spill] sm:$0xff] }
 0x2e1   :  { %v6204_v41 = vadd.f32 %v4164_v51, %v4163_v15  ;;  %v2957_v48 = vpop.f32.mrf.mxu0  ;;  %v2779_v5 = vadd.f32 %v6442_v13, %v6034_v59  ;;  %v2781_v51 = vadd.f32 %v6443_v42, %v6039_v9  ;;  %v2793_v13 = vadd.f32 %v6059_v34, %v6034_v59 }
 0x2e2   :  { %v4166_v12 = vpop.f32.mrf.mxu1  ;;  %3686 = vst [vmem:[#allocation10 + $0x108] sm:$0xff] %v4073_v17  ;;  %v2958_v47 = vadd.f32 %v2957_v48, %v2765_v23 }
 0x2e3   :  { %v2961_v32 = vpop.f32.mrf.mxu0 }
 0x2e4   :  { %v4167_v57 = vpop.f32.mrf.mxu1  ;;  %v4075_v2 = vpack.c.bf16 %v2958_v47, %v2956_v56  ;;  %v2962_v28 = vadd.f32 %v2961_v32, %v2769_v31  ;;  %v6445_v31 = vld [vmem:[#allocation33_spill] sm:$0xff] }
 0x2e5   :  { %v6210_v44 = vadd.f32 %v4167_v57, %v4166_v12  ;;  %v2963_v25 = vpop.f32.mrf.mxu0  ;;  %v6444_v57 = vld [vmem:[#allocation32_spill] sm:$0xff]  ;;  %v2785_v21 = vadd.f32 %v6445_v31, %v6039_v9 }
 0x2e6   :  { %v4169_v49 = vpop.f32.mrf.mxu1  ;;  %3688 = vst [vmem:[#allocation10 + $0x114] sm:$0xff] %v4075_v2  ;;  %v2964_v55 = vadd.f32 %v2963_v25, %v2771_v26  ;;  %v2783_v3 = vadd.f32 %v6444_v57, %v6034_v59 }
 0x2e7   :  { %v2965_v22 = vpop.f32.mrf.mxu0 }
 0x2e8   :  { %v4170_v40 = vpop.f32.mrf.mxu1  ;;  %v4077_v24 = vpack.c.bf16 %v2964_v55, %v2962_v28  ;;  %v2966_v8 = vadd.f32 %v2965_v22, %v2773_v61  ;;  %v2789_v61 = vadd.f32 %v6446_v19, %v6034_v59  ;;  %v6448_v19 = vld [vmem:[#allocation15_spill] sm:$0xff] }
 0x2e9   :  { %v6216_v52 = vadd.f32 %v4170_v40, %v4169_v49  ;;  %v2967_v45 = vpop.f32.mrf.mxu0 }
 0x2ea   :  { %v4172_v16 = vpop.f32.mrf.mxu1  ;;  %3690 = vst [vmem:[#allocation10 + $0x120] sm:$0xff] %v4077_v24  ;;  %v2968_v0 = vadd.f32 %v2967_v45, %v2775_v46 }
 0x2eb   :  { %v2971_v27 = vpop.f32.mrf.mxu0 }
 0x2ec   :  { %v4173_v15 = vpop.f32.mrf.mxu1  ;;  %v4079_v4 = vpack.c.bf16 %v2968_v0, %v2966_v8  ;;  %v2972_v12 = vadd.f32 %v2971_v27, %v2779_v5  ;;  %v2795_v5 = vadd.f32 %v6061_v38, %v6039_v9 }
 0x2ed   :  { %v6222_v23 = vadd.f32 %v4173_v15, %v4172_v16  ;;  %v2973_v17 = vpop.f32.mrf.mxu0 }
 0x2ee   :  { %v4175_v48 = vpop.f32.mrf.mxu1  ;;  %3692 = vst [vmem:[#allocation10 + $0x12c] sm:$0xff] %v4079_v4  ;;  %v2974_v56 = vadd.f32 %v2973_v17, %v2781_v51 }
 0x2ef   :  { %v2975_v47 = vpop.f32.mrf.mxu0 }
 0x2f0   :  { %v4176_v32 = vpop.f32.mrf.mxu1  ;;  %v4081_v26 = vpack.c.bf16 %v2974_v56, %v2972_v12  ;;  %v2976_v28 = vadd.f32 %v2975_v47, %v2783_v3  ;;  %v2799_v47 = vadd.f32 %v6069_v43, %v6034_v59 }
 0x2f1   :  { %v6228_v2 = vadd.f32 %v4176_v32, %v4175_v48  ;;  %v2977_v25 = vpop.f32.mrf.mxu0  ;;  %v2801_v32 = vadd.f32 %v6071_v63, %v6039_v9 }
 0x2f2   :  { %v4178_v49 = vpop.f32.mrf.mxu1  ;;  %3694 = vst [vmem:[#allocation10 + $0x138] sm:$0xff] %v4081_v26  ;;  %v2978_v55 = vadd.f32 %v2977_v25, %v2785_v21 }
 0x2f3   :  { %v2981_v22 = vpop.f32.mrf.mxu0 }
 0x2f4   :  { %v4179_v40 = vpop.f32.mrf.mxu1  ;;  %v4083_v46 = vpack.c.bf16 %v2978_v55, %v2976_v28  ;;  %v2982_v8 = vadd.f32 %v2981_v22, %v2789_v61  ;;  %v6447_v28 = vld [vmem:[#allocation16_spill] sm:$0xff]  ;;  %v6449_v61 = vsub.s32 2, %v6448_v19 }
 0x2f5   :  { %v6234_v24 = vadd.f32 %v4179_v40, %v4178_v49  ;;  %v2983_v45 = vpop.f32.mrf.mxu0  ;;  %v2803_v49 = vadd.f32 %v6077_v36, %v6034_v59  ;;  %v2805_v55 = vadd.f32 %v6447_v28, %v6039_v9 }
 0x2f6   :  { %v4181_v16 = vpop.f32.mrf.mxu1  ;;  %3696 = vst [vmem:[#allocation10 + $0x144] sm:$0xff] %v4083_v46  ;;  %v2984_v0 = vadd.f32 %v2983_v45, %v2791_v29  ;;  %v6450_v29 = vld [vmem:[#allocation29_spill] sm:$0xff] }
 0x2f7   :  { %v2985_v27 = vpop.f32.mrf.mxu0  ;;  %v6257_v46 = vrot.slane %v6450_v29, %v6449_v61 }
 0x2f8   :  { %v4182_v15 = vpop.f32.mrf.mxu1  ;;  %v4085_v42 = vpack.c.bf16 %v2984_v0, %v2982_v8  ;;  %v2986_v17 = vadd.f32 %v2985_v27, %v2793_v13 }
 0x2f9   :  { %v6240_v51 = vadd.f32 %v4182_v15, %v4181_v16  ;;  %v2987_v1 = vpop.f32.mrf.mxu0  ;;  %v3035_v15 = vadd.f32 %v6091_v53, %v6257_v46  ;;  %v3043_v53 = vadd.f32 %v6105_v33, %v6257_v46 }
 0x2fa   :  { %v4184_v4 = vpop.f32.mrf.mxu1  ;;  %3698 = vst [vmem:[#allocation10 + $0x150] sm:$0xff] %v4085_v42  ;;  %v2988_v48 = vadd.f32 %v2987_v1, %v2795_v5 }
 0x2fb   :  { %v2991_v12 = vpop.f32.mrf.mxu0 }
 0x2fc   :  { %v4185_v56 = vpop.f32.mrf.mxu1  ;;  %v4087_v34 = vpack.c.bf16 %v2988_v48, %v2986_v17  ;;  %v2992_v31 = vadd.f32 %v2991_v12, %v2799_v47  ;;  %v3038_v48 = vadd.f32 %v6098_v35, %v6257_v46  ;;  %v3046_v35 = vadd.f32 %v6112_v50, %v6257_v46 }
 0x2fd   :  { %v6246_v57 = vadd.f32 %v4185_v56, %v4184_v4  ;;  %v2993_v38 = vpop.f32.mrf.mxu0 }
 0x2fe   :  { %v4187_v3 = vpop.f32.mrf.mxu1  ;;  %3700 = vst [vmem:[#allocation10 + $0x15c] sm:$0xff] %v4087_v34  ;;  %v2994_v21 = vadd.f32 %v2993_v38, %v2801_v32 }
 0x2ff   :  { %v2995_v26 = vpop.f32.mrf.mxu0 }
 0x300   :  { %v4188_v25 = vpop.f32.mrf.mxu1  ;;  %v4089_v43 = vpack.c.bf16 %v2994_v21, %v2992_v31  ;;  %v2996_v45 = vadd.f32 %v2995_v26, %v2803_v49 }
 0x301   :  { %v6252_v22 = vadd.f32 %v4188_v25, %v4187_v3  ;;  %v2997_v63 = vpop.f32.mrf.mxu0 }
 0x302   :  { %v4190_v40 = vpop.f32.mrf.mxu1  ;;  %3702 = vst [vmem:[#allocation10 + $0x168] sm:$0xff] %v4089_v43  ;;  %v2998_v16 = vadd.f32 %v2997_v63, %v2805_v55 }
 0x303   :  { %v4221_v0 = vpop.f32.mrf.mxu0 }
 0x304   :  { %v4191_v8 = vpop.f32.mrf.mxu1  ;;  %v4091_v27 = vpack.c.bf16 %v2998_v16, %v2996_v45  ;;  %v3051_v16 = vadd.f32 %v6119_v30, %v6257_v46 }
 0x305   :  { %v6259_v59 = vadd.f32 %v4191_v8, %v4190_v40  ;;  %v4222_v9 = vpop.f32.mrf.mxu0 }
 0x306   :  { %v4193_v36 = vpop.f32.mrf.mxu1  ;;  %3704 = vst [vmem:[#allocation10 + $0x174] sm:$0xff] %v4091_v27  ;;  %v4223_v13 = vadd.f32 %v4222_v9, %v4221_v0 }
 0x307   :  { %v4224_v42 = vpop.f32.mrf.mxu0 }
 0x308   :  { %v4194_v5 = vpop.f32.mrf.mxu1  ;;  %v3196_v1 = vadd.f32 %v4223_v13, %v3035_v15 }
 0x309   :  { %v4225_v17 = vpop.f32.mrf.mxu0  ;;  %v4195_v61 = vadd.f32 %v4194_v5, %v4193_v36  ;;  %v3054_v36 = vadd.f32 %v6126_v60, %v6257_v46 }
 0x30a   :  { %v4196_v4 = vpop.f32.mrf.mxu1  ;;  %v4030_v12 = vpack.c.bf16 %v3196_v1, %v3196_v1  ;;  %v4226_v56 = vadd.f32 %v4225_v17, %v4224_v42 }
 0x30b   :  { %v4227_v32 = vpop.f32.mrf.mxu0  ;;  %v3147_v15 = vadd.f32 %v4195_v61, %v6257_v46 }
 0x30c   :  { %v4197_v47 = vpop.f32.mrf.mxu1  ;;  %3643 = vst [vmem:[#allocation10 + $0x8] sm:$0xf] %v4030_v12  ;;  %v3199_v34 = vadd.f32 %v4226_v56, %v3038_v48 }
 0x30d   :  { %v4228_v3 = vpop.f32.mrf.mxu0  ;;  %v4198_v13 = vadd.f32 %v4197_v47, %v4196_v4 }
 0x30e   :  { %v4199_v38 = vpop.f32.mrf.mxu1  ;;  %v4032_v31 = vpack.c.bf16 %v3199_v34, %v3199_v34  ;;  %v4229_v21 = vadd.f32 %v4228_v3, %v4227_v32 }
 0x30f   :  { %v4230_v25 = vpop.f32.mrf.mxu0  ;;  %v3150_v34 = vadd.f32 %v4198_v13, %v6257_v46  ;;  %v3067_v13 = vadd.f32 %v6144_v6, %v6257_v46  ;;  %v3075_v6 = vadd.f32 %v6156_v62, %v6257_v46 }
 0x310   :  { %v4200_v26 = vpop.f32.mrf.mxu1  ;;  %3645 = vst [vmem:[#allocation10 + $0x14] sm:$0xf] %v4032_v31  ;;  %v3204_v49 = vadd.f32 %v4229_v21, %v3043_v53  ;;  %v3059_v21 = vadd.f32 %v6132_v39, %v6257_v46 }
 0x311   :  { %v4231_v55 = vpop.f32.mrf.mxu0  ;;  %v4201_v56 = vadd.f32 %v4200_v26, %v4199_v38 }
 0x312   :  { %v4202_v28 = vpop.f32.mrf.mxu1  ;;  %v4034_v43 = vpack.c.bf16 %v3204_v49, %v3204_v49  ;;  %v4232_v63 = vadd.f32 %v4231_v55, %v4230_v25 }
 0x313   :  { %v4233_v19 = vpop.f32.mrf.mxu0  ;;  %v3155_v55 = vadd.f32 %v4201_v56, %v6257_v46 }
 0x314   :  { %v4203_v40 = vpop.f32.mrf.mxu1  ;;  %3647 = vst [vmem:[#allocation10 + $0x20] sm:$0xf] %v4034_v43  ;;  %v3207_v29 = vadd.f32 %v4232_v63, %v3046_v35 }
 0x315   :  { %v4234_v45 = vpop.f32.mrf.mxu0  ;;  %v4204_v35 = vadd.f32 %v4203_v40, %v4202_v28 }
 0x316   :  { %v4305_v33 = vpop.f32.mrf.mxu1  ;;  %v4036_v8 = vpack.c.bf16 %v3207_v29, %v3207_v29  ;;  %v4235_v0 = vadd.f32 %v4234_v45, %v4233_v19  ;;  %v3062_v45 = vadd.f32 %v6138_v20, %v6257_v46 }
 0x317   :  { %v4236_v27 = vpop.f32.mrf.mxu0 }
 0x318   :  { %v4306_v9 = vpop.f32.mrf.mxu1  ;;  %3649 = vst [vmem:[#allocation10 + $0x2c] sm:$0xf] %v4036_v8  ;;  %v3212_v50 = vadd.f32 %v4235_v0, %v3051_v16 }
 0x319   :  { %v4307_v42 = vadd.f32 %v4306_v9, %v4305_v33  ;;  %v4237_v1 = vpop.f32.mrf.mxu0 }
 0x31a   :  { %v4308_v17 = vpop.f32.mrf.mxu1  ;;  %v4038_v5 = vpack.c.bf16 %v3212_v50, %v3212_v50  ;;  %v4238_v12 = vadd.f32 %v4237_v1, %v4236_v27  ;;  %v3158_v27 = vadd.f32 %v4204_v35, %v6257_v46 }
 0x31b   :  { %v3308_v48 = vadd.f32 %v4307_v42, %v3147_v15  ;;  %v4239_v30 = vpop.f32.mrf.mxu0 }
 0x31c   :  { %v4309_v32 = vpop.f32.mrf.mxu1  ;;  %3651 = vst [vmem:[#allocation10 + $0x38] sm:$0xf] %v4038_v5  ;;  %v3215_v53 = vadd.f32 %v4238_v12, %v3054_v36 }
 0x31d   :  { %v4086_v3 = vpack.c.bf16 %v3308_v48, %v3308_v48  ;;  %v4310_v4 = vadd.f32 %v4309_v32, %v4308_v17  ;;  %v4240_v47 = vpop.f32.mrf.mxu0  ;;  %v3070_v48 = vadd.f32 %v6150_v58, %v6257_v46 }
 0x31e   :  { %v4311_v31 = vpop.f32.mrf.mxu1  ;;  %v4040_v25 = vpack.c.bf16 %v3215_v53, %v3215_v53  ;;  %v4241_v49 = vadd.f32 %v4240_v47, %v4239_v30 }
 0x31f   :  { %3699 = vst [vmem:[#allocation10 + $0x158] sm:$0xf] %v4086_v3  ;;  %v3311_v60 = vadd.f32 %v4310_v4, %v3150_v34  ;;  %v4242_v38 = vpop.f32.mrf.mxu0 }
 0x320   :  { %v4312_v26 = vpop.f32.mrf.mxu1  ;;  %3653 = vst [vmem:[#allocation10 + $0x44] sm:$0xf] %v4040_v25  ;;  %v3220_v63 = vadd.f32 %v4241_v49, %v3059_v21  ;;  %v3078_v21 = vadd.f32 %v6162_v11, %v6257_v46 }
 0x321   :  { %v4088_v43 = vpack.c.bf16 %v3311_v60, %v3311_v60  ;;  %v4313_v19 = vadd.f32 %v4312_v26, %v4311_v31  ;;  %v4243_v61 = vpop.f32.mrf.mxu0 }
 0x322   :  { %v4314_v29 = vpop.f32.mrf.mxu1  ;;  %v4042_v39 = vpack.c.bf16 %v3220_v63, %v3220_v63  ;;  %v4244_v16 = vadd.f32 %v4243_v61, %v4242_v38  ;;  %v3083_v38 = vadd.f32 %v6168_v14, %v6257_v46 }
 0x323   :  { %3701 = vst [vmem:[#allocation10 + $0x164] sm:$0xf] %v4088_v43  ;;  %v3316_v33 = vadd.f32 %v4313_v19, %v3155_v55  ;;  %v4245_v8 = vpop.f32.mrf.mxu0  ;;  %v3086_v19 = vadd.f32 %v6174_v10, %v6257_v46 }
 0x324   :  { %v4315_v0 = vpop.f32.mrf.mxu1  ;;  %3655 = vst [vmem:[#allocation10 + $0x50] sm:$0xf] %v4042_v39  ;;  %v3223_v28 = vadd.f32 %v4244_v16, %v3062_v45 }
 0x325   :  { %v4090_v9 = vpack.c.bf16 %v3316_v33, %v3316_v33  ;;  %v4316_v40 = vadd.f32 %v4315_v0, %v4314_v29  ;;  %v4246_v15 = vpop.f32.mrf.mxu0  ;;  %v3091_v33 = vadd.f32 %v6180_v37, %v6257_v46 }
 0x326   :  { %v4044_v50 = vpack.c.bf16 %v3223_v28, %v3223_v28  ;;  %v4247_v20 = vadd.f32 %v4246_v15, %v4245_v8 }
 0x327   :  { %3703 = vst [vmem:[#allocation10 + $0x170] sm:$0xf] %v4090_v9  ;;  %v3319_v42 = vadd.f32 %v4316_v40, %v3158_v27  ;;  %v4248_v1 = vpop.f32.mrf.mxu0  ;;  %v3094_v9 = vadd.f32 %v6186_v54, %v6257_v46 }
 0x328   :  { %3657 = vst [vmem:[#allocation10 + $0x5c] sm:$0xf] %v4044_v50  ;;  %v3228_v36 = vadd.f32 %v4247_v20, %v3067_v13  ;;  %v3099_v50 = vadd.f32 %v6192_v7, %v6257_v46 }
 0x329   :  { %v4092_v17 = vpack.c.bf16 %v3319_v42, %v3319_v42  ;;  %v4249_v5 = vpop.f32.mrf.mxu0 }
 0x32a   :  { %v4046_v12 = vpack.c.bf16 %v3228_v36, %v3228_v36  ;;  %v4250_v56 = vadd.f32 %v4249_v5, %v4248_v1  ;;  %v3102_v36 = vadd.f32 %v6198_v18, %v6257_v46 }
 0x32b   :  { %3705 = vst [vmem:[#allocation10 + $0x17c] sm:$0xf] %v4092_v17  ;;  %v4251_v30 = vpop.f32.mrf.mxu0 }
 0x32c   :  { %3659 = vst [vmem:[#allocation10 + $0x68] sm:$0xf] %v4046_v12  ;;  %v3231_v32 = vadd.f32 %v4250_v56, %v3070_v48 }
 0x32d   :  { %v4252_v34 = vpop.f32.mrf.mxu0 }
 0x32e   :  { %v4048_v3 = vpack.c.bf16 %v3231_v32, %v3231_v32  ;;  %v4253_v53 = vadd.f32 %v4252_v34, %v4251_v30  ;;  %v3107_v30 = vadd.f32 %v6204_v41, %v6257_v46 }
 0x32f   :  { %v4254_v4 = vpop.f32.mrf.mxu0 }
 0x330   :  { %3661 = vst [vmem:[#allocation10 + $0x74] sm:$0xf] %v4048_v3  ;;  %v3236_v47 = vadd.f32 %v4253_v53, %v3075_v6  ;;  %v3110_v53 = vadd.f32 %v6210_v44, %v6257_v46 }
 0x331   :  { %v4255_v31 = vpop.f32.mrf.mxu0 }
 0x332   :  { %v4050_v58 = vpack.c.bf16 %v3236_v47, %v3236_v47  ;;  %v4256_v25 = vadd.f32 %v4255_v31, %v4254_v4 }
 0x333   :  { %v4257_v60 = vpop.f32.mrf.mxu0 }
 0x334   :  { %3663 = vst [vmem:[#allocation10 + $0x80] sm:$0xf] %v4050_v58  ;;  %v3239_v49 = vadd.f32 %v4256_v25, %v3078_v21  ;;  %v3115_v58 = vadd.f32 %v6216_v52, %v6257_v46 }
 0x335   :  { %v4258_v55 = vpop.f32.mrf.mxu0 }
 0x336   :  { %v4052_v26 = vpack.c.bf16 %v3239_v49, %v3239_v49  ;;  %v4259_v62 = vadd.f32 %v4258_v55, %v4257_v60 }
 0x337   :  { %v4260_v35 = vpop.f32.mrf.mxu0 }
 0x338   :  { %3665 = vst [vmem:[#allocation10 + $0x8c] sm:$0xf] %v4052_v26  ;;  %v3244_v43 = vadd.f32 %v4259_v62, %v3083_v38  ;;  %v3118_v38 = vadd.f32 %v6222_v23, %v6257_v46 }
 0x339   :  { %v4261_v63 = vpop.f32.mrf.mxu0 }
 0x33a   :  { %v4054_v61 = vpack.c.bf16 %v3244_v43, %v3244_v43  ;;  %v4262_v11 = vadd.f32 %v4261_v63, %v4260_v35  ;;  %v3123_v63 = vadd.f32 %v6228_v2, %v6257_v46 }
 0x33b   :  { %v4263_v29 = vpop.f32.mrf.mxu0 }
 0x33c   :  { %3667 = vst [vmem:[#allocation10 + $0x98] sm:$0xf] %v4054_v61  ;;  %v3247_v45 = vadd.f32 %v4262_v11, %v3086_v19 }
 0x33d   :  { %v4264_v39 = vpop.f32.mrf.mxu0 }
 0x33e   :  { %v4056_v16 = vpack.c.bf16 %v3247_v45, %v3247_v45  ;;  %v4265_v14 = vadd.f32 %v4264_v39, %v4263_v29  ;;  %v3126_v45 = vadd.f32 %v6234_v24, %v6257_v46 }
 0x33f   :  { %v4266_v8 = vpop.f32.mrf.mxu0 }
 0x340   :  { %3669 = vst [vmem:[#allocation10 + $0xa4] sm:$0xf] %v4056_v16  ;;  %v3252_v0 = vadd.f32 %v4265_v14, %v3091_v33 }
 0x341   :  { %v4267_v27 = vpop.f32.mrf.mxu0 }
 0x342   :  { %v4058_v28 = vpack.c.bf16 %v3252_v0, %v3252_v0  ;;  %v4268_v10 = vadd.f32 %v4267_v27, %v4266_v8  ;;  %v3131_v8 = vadd.f32 %v6240_v51, %v6257_v46 }
 0x343   :  { %v4269_v40 = vpop.f32.mrf.mxu0 }
 0x344   :  { %3671 = vst [vmem:[#allocation10 + $0xb0] sm:$0xf] %v4058_v28  ;;  %v3255_v15 = vadd.f32 %v4268_v10, %v3094_v9  ;;  %v3134_v10 = vadd.f32 %v6246_v57, %v6257_v46 }
 0x345   :  { %v4270_v13 = vpop.f32.mrf.mxu0 }
 0x346   :  { %v4060_v42 = vpack.c.bf16 %v3255_v15, %v3255_v15  ;;  %v4271_v37 = vadd.f32 %v4270_v13, %v4269_v40 }
 0x347   :  { %v4272_v20 = vpop.f32.mrf.mxu0 }
 0x348   :  { %3673 = vst [vmem:[#allocation10 + $0xbc] sm:$0xf] %v4060_v42  ;;  %v3260_v1 = vadd.f32 %v4271_v37, %v3099_v50  ;;  %v3139_v42 = vadd.f32 %v6252_v22, %v6257_v46 }
 0x349   :  { %v4273_v17 = vpop.f32.mrf.mxu0 }
 0x34a   :  { %v4062_v5 = vpack.c.bf16 %v3260_v1, %v3260_v1  ;;  %v4274_v54 = vadd.f32 %v4273_v17, %v4272_v20 }
 0x34b   :  { %v4275_v48 = vpop.f32.mrf.mxu0 }
 0x34c   :  { %3675 = vst [vmem:[#allocation10 + $0xc8] sm:$0xf] %v4062_v5  ;;  %v3263_v12 = vadd.f32 %v4274_v54, %v3102_v36  ;;  %v3142_v36 = vadd.f32 %v6259_v59, %v6257_v46 }
 0x34d   :  { %v4276_v56 = vpop.f32.mrf.mxu0 }
 0x34e   :  { %v4064_v32 = vpack.c.bf16 %v3263_v12, %v3263_v12  ;;  %v4277_v7 = vadd.f32 %v4276_v56, %v4275_v48 }
 0x34f   :  { %v4278_v34 = vpop.f32.mrf.mxu0 }
 0x350   :  { %3677 = vst [vmem:[#allocation10 + $0xd4] sm:$0xf] %v4064_v32  ;;  %v3268_v6 = vadd.f32 %v4277_v7, %v3107_v30 }
 0x351   :  { %v4279_v3 = vpop.f32.mrf.mxu0 }
 0x352   :  { %v4066_v4 = vpack.c.bf16 %v3268_v6, %v3268_v6  ;;  %v4280_v18 = vadd.f32 %v4279_v3, %v4278_v34 }
 0x353   :  { %v4281_v47 = vpop.f32.mrf.mxu0 }
 0x354   :  { %3679 = vst [vmem:[#allocation10 + $0xe0] sm:$0xf] %v4066_v4  ;;  %v3271_v31 = vadd.f32 %v4280_v18, %v3110_v53 }
 0x355   :  { %v4282_v21 = vpop.f32.mrf.mxu0 }
 0x356   :  { %v4068_v25 = vpack.c.bf16 %v3271_v31, %v3271_v31  ;;  %v4283_v41 = vadd.f32 %v4282_v21, %v4281_v47 }
 0x357   :  { %v4284_v60 = vpop.f32.mrf.mxu0 }
 0x358   :  { %3681 = vst [vmem:[#allocation10 + $0xec] sm:$0xf] %v4068_v25  ;;  %v3276_v49 = vadd.f32 %v4283_v41, %v3115_v58 }
 0x359   :  { %v4285_v55 = vpop.f32.mrf.mxu0 }
 0x35a   :  { %v4070_v26 = vpack.c.bf16 %v3276_v49, %v3276_v49  ;;  %v4286_v44 = vadd.f32 %v4285_v55, %v4284_v60 }
 0x35b   :  { %v4287_v62 = vpop.f32.mrf.mxu0 }
 0x35c   :  { %3683 = vst [vmem:[#allocation10 + $0xf8] sm:$0xf] %v4070_v26  ;;  %v3279_v35 = vadd.f32 %v4286_v44, %v3118_v38 }
 0x35d   :  { %v4288_v43 = vpop.f32.mrf.mxu0 }
 0x35e   :  { %v4072_v19 = vpack.c.bf16 %v3279_v35, %v3279_v35  ;;  %v4289_v52 = vadd.f32 %v4288_v43, %v4287_v62 }
 0x35f   :  { %v4290_v61 = vpop.f32.mrf.mxu0 }
 0x360   :  { %3685 = vst [vmem:[#allocation10 + $0x104] sm:$0xf] %v4072_v19  ;;  %v3284_v11 = vadd.f32 %v4289_v52, %v3123_v63 }
 0x361   :  { %v4291_v29 = vpop.f32.mrf.mxu0 }
 0x362   :  { %v4074_v39 = vpack.c.bf16 %v3284_v11, %v3284_v11  ;;  %v4292_v23 = vadd.f32 %v4291_v29, %v4290_v61 }
 0x363   :  { %v4293_v33 = vpop.f32.mrf.mxu0 }
 0x364   :  { %3687 = vst [vmem:[#allocation10 + $0x110] sm:$0xf] %v4074_v39  ;;  %v3287_v16 = vadd.f32 %v4292_v23, %v3126_v45 }
 0x365   :  { %v4294_v14 = vpop.f32.mrf.mxu0 }
 0x366   :  { %v4076_v0 = vpack.c.bf16 %v3287_v16, %v3287_v16  ;;  %v4295_v2 = vadd.f32 %v4294_v14, %v4293_v33 }
 0x367   :  { %v4296_v27 = vpop.f32.mrf.mxu0 }
 0x368   :  { %3689 = vst [vmem:[#allocation10 + $0x11c] sm:$0xf] %v4076_v0  ;;  %v3292_v9 = vadd.f32 %v4295_v2, %v3131_v8 }
 0x369   :  { %v4297_v28 = vpop.f32.mrf.mxu0 }
 0x36a   :  { %v4078_v40 = vpack.c.bf16 %v3292_v9, %v3292_v9  ;;  %v4298_v24 = vadd.f32 %v4297_v28, %v4296_v27 }
 0x36b   :  { %v4299_v15 = vpop.f32.mrf.mxu0 }
 0x36c   :  { %3691 = vst [vmem:[#allocation10 + $0x128] sm:$0xf] %v4078_v40  ;;  %v3295_v13 = vadd.f32 %v4298_v24, %v3134_v10 }
 0x36d   :  { %v4300_v50 = vpop.f32.mrf.mxu0 }
 0x36e   :  { %v4080_v37 = vpack.c.bf16 %v3295_v13, %v3295_v13  ;;  %v4301_v51 = vadd.f32 %v4300_v50, %v4299_v15 }
 0x36f   :  { %v4302_v20 = vpop.f32.mrf.mxu0 }
 0x370   :  { %3693 = vst [vmem:[#allocation10 + $0x134] sm:$0xf] %v4080_v37  ;;  %v3300_v1 = vadd.f32 %v4301_v51, %v3139_v42 }
 0x371   :  { %v4303_v17 = vpop.f32.mrf.mxu0 }
 0x372   :  { %v4082_v5 = vpack.c.bf16 %v3300_v1, %v3300_v1  ;;  %v4304_v57 = vadd.f32 %v4303_v17, %v4302_v20 }
 0x374   :  { %3695 = vst [vmem:[#allocation10 + $0x140] sm:$0xf] %v4082_v5  ;;  %v3303_v54 = vadd.f32 %v4304_v57, %v3142_v36 }
 0x376   :  { %v4084_v48 = vpack.c.bf16 %v3303_v54, %v3303_v54 }
 0x378   :  { %3697 = vst [vmem:[#allocation10 + $0x14c] sm:$0xf] %v4084_v48 }
 0x379   :  { %4772 = shalt.err (!%p4769_p10)
}
 0x37a   :  { %3717 = dma.vmem_to_hbm [thread:$0]  %s3712_s15, 6144, %s6332_s5, [#allocation4], %s4793_s28, %s4793_s28, %s4794_s29  }
 0x37b   :  { %4787 = dma.done.wait [#allocation4], 6144  }
 0x37c   :  { %4788 = vsyncadd [#allocation4], 4294961152 }
 0x37d   :  { %3721 = vsyncpa [#allocation3], 1 }
 0x37e   :  { %3722 = vsyncpa [#allocation6], 1 }
 0x37f   :  { %3723 = vsyncpa [#allocation9], 1 }
 0x380   :  { %3724 = vsyncpa [#allocation4], 1 }

</bundles_post_ra>
